<compile_context>
chip_gen: v7x
topology: tpu7x:2x2x1
jax: 0.10.0
libtpu: 0.0.40
codegen_flags: <defaults>
</compile_context>

<pallas_src>
import jax
import jax.numpy as jnp
from jax.experimental import pallas as pl
from jax.experimental.pallas import tpu as pltpu

NUM_CLASSES = 3
_INV_SQRT2 = 0.7071067811865476
_OUT_LANES = 128      # logits padded to a full lane width inside the kernel
_B_TILE = 8           # sublane-full batch tile


# ----------------------------------------------------------------------------
# Single fused forward kernel (one batch tile per grid step)
# ----------------------------------------------------------------------------
def fused_forward_kernel(
        # ---- inputs ----------------------------------------------------------
        x_ref,                                          # (L, Bt, Cin) f32
        cw1_0_ref, cw1_1_ref, cw1_2_ref, cb1_ref,       # conv1 taps (Cin,C) bf16, (1,C) f32
        cw2_0_ref, cw2_1_ref, cw2_2_ref, cb2_ref,       # conv2 taps (C,C)  bf16, (1,C) f32
        wih0f_ref, wih0r_ref, bl0f_ref, bl0r_ref, whh0_ref,   # LSTM layer 0
        wih1f_ref, wih1r_ref, bl1f_ref, bl1r_ref, whh1_ref,   # LSTM layer 1
        wa_ref, ba_ref,                                 # attention (2H,1) bf16, (1,1) f32
        wf1_ref, bf1_ref,                               # fc1 (2H,H) bf16, (1,H) f32
        wf2_ref, bf2_ref,                               # fc_logits (H,128) bf16, (1,128) f32
        # ---- output ----------------------------------------------------------
        out_ref,                                        # (Bt, 128) f32
        # ---- VMEM scratch ----------------------------------------------------
        xpad1, xpad2,                                   # (L+2, Bt, Cin)/(L+2, Bt, C) bf16
        gxf, gxr,                                       # (L, Bt, 4H) f32 (reused per layer)
        hf, hr):                                        # (L, Bt, H)  f32 (reused per layer)
    L, Bt, _ = x_ref.shape
    H = hf.shape[-1]
    G = 4 * H
    f32 = jnp.float32
    bf16 = jnp.bfloat16

    # ------------------ CNN stage: two k=3 / pad=1 convs + ReLU ---------------
    # Output[l] = W0·x[l-1] + W1·x[l] + W2·x[l+1] + b.  The zero halo lives in a
    # padded VMEM scratch; the three shifted views are static leading-dim slices
    # (no jnp.concatenate slab copies).
    def conv_relu(xpad_ref, x_bf, w0, w1, w2, b):
        c_in = x_bf.shape[-1]
        zrow = jnp.zeros((1, Bt, c_in), bf16)
        xpad_ref[0:1] = zrow
        xpad_ref[L + 1:L + 2] = zrow
        xpad_ref[1:L + 1] = x_bf
        y = (jnp.einsum("lbc,cd->lbd", xpad_ref[0:L], w0,
                        preferred_element_type=f32)
             + jnp.einsum("lbc,cd->lbd", xpad_ref[1:L + 1], w1,
                          preferred_element_type=f32)
             + jnp.einsum("lbc,cd->lbd", xpad_ref[2:L + 2], w2,
                          preferred_element_type=f32)
             + b)
        return jnp.maximum(y, 0.0)

    h1a = conv_relu(xpad1, x_ref[...].astype(bf16),
                    cw1_0_ref[...], cw1_1_ref[...], cw1_2_ref[...], cb1_ref[...])
    h2a = conv_relu(xpad2, h1a.astype(bf16),
                    cw2_0_ref[...], cw2_1_ref[...], cw2_2_ref[...], cb2_ref[...])

    # ------------------ shared bi-LSTM machinery ------------------------------
    def lstm_cell(gates, c_prev):                    # PyTorch gate order i,f,g,o
        i = jax.nn.sigmoid(gates[:, 0:H])
        f = jax.nn.sigmoid(gates[:, H:2 * H])
        g = jnp.tanh(gates[:, 2 * H:3 * H])
        o = jax.nn.sigmoid(gates[:, 3 * H:4 * H])
        c = f * c_prev + i * g
        return o * jnp.tanh(c), c

    # whh-hoist + unroll guard: full unroll only for short sequences.
    unroll = True if L <= 16 else 8

    def run_bilstm(whh_blk_ref):
        # Block-diagonal (2H, 8H) bf16 recurrence weight, hoisted out of loop.
        whh_blk = whh_blk_ref[...]

        def step(t, carry):
            hc, c_f, c_r = carry                     # hc = [h_f | h_r]  (Bt, 2H) f32
            tr = L - 1 - t
            # ONE MXU push covers both directions' h @ W_hh.
            ghh = jnp.dot(hc.astype(bf16), whh_blk, preferred_element_type=f32)
            h_f, c_f = lstm_cell(gxf[t] + ghh[:, :G], c_f)
            h_r, c_r = lstm_cell(gxr[tr] + ghh[:, G:], c_r)
            hf[t] = h_f                              # leading-dim indexed stores
            hr[tr] = h_r
            return jnp.concatenate([h_f, h_r], axis=-1), c_f, c_r

        hc0 = jnp.zeros((Bt, 2 * H), f32)
        c0 = jnp.zeros((Bt, H), f32)
        jax.lax.fori_loop(0, L, step, (hc0, c0, c0), unroll=unroll)

    # ------------------ bi-LSTM layer 0 ---------------------------------------
    h2_bf = h2a.astype(bf16)
    gxf[...] = (jnp.einsum("lbc,ck->lbk", h2_bf, wih0f_ref[...],
                           preferred_element_type=f32) + bl0f_ref[...])
    gxr[...] = (jnp.einsum("lbc,ck->lbk", h2_bf, wih0r_ref[...],
                           preferred_element_type=f32) + bl0r_ref[...])
    run_bilstm(whh0_ref)

    # ------------------ bi-LSTM layer 1 ---------------------------------------
    # Layer-1 input is the combined (L, Bt, 2H) hidden sequence; the unsplit
    # (2H, 4H) input weights give one K=2H contraction per direction.  The
    # gate/hidden scratches are then reused (layer-0 contents are dead).
    h0c_bf = jnp.concatenate([hf[...], hr[...]], axis=-1).astype(bf16)
    gxf[...] = (jnp.einsum("lbh,hk->lbk", h0c_bf, wih1f_ref[...],
                           preferred_element_type=f32) + bl1f_ref[...])
    gxr[...] = (jnp.einsum("lbh,hk->lbk", h0c_bf, wih1r_ref[...],
                           preferred_element_type=f32) + bl1r_ref[...])
    run_bilstm(whh1_ref)

    # ------------------ attention + fc1 + GELU + fc_logits --------------------
    h1c = jnp.concatenate([hf[...], hr[...]], axis=-1)          # (L, Bt, 2H) f32
    scores = (jnp.einsum("lbh,hk->lbk", h1c.astype(bf16), wa_ref[...],
                         preferred_element_type=f32) + ba_ref[0, 0])  # (L, Bt, 1)
    m = jnp.max(scores, axis=0, keepdims=True)                   # softmax over time
    e = jnp.exp(scores - m)
    attn = e * pl.reciprocal(jnp.sum(e, axis=0, keepdims=True), approx=True)
    ctx = jnp.sum(h1c * attn, axis=0)                            # (Bt, 2H)
    # TODO(synk): nn.Dropout(context) is identity in eval mode; not implemented.

    hid = (jnp.dot(ctx.astype(bf16), wf1_ref[...],
                   preferred_element_type=f32) + bf1_ref[...])
    # exact GELU (PyTorch nn.GELU default): 0.5*x*(1+erf(x/sqrt(2)))
    hid = 0.5 * hid * (1.0 + jax.lax.erf(hid * _INV_SQRT2))
    out_ref[...] = (jnp.dot(hid.astype(bf16), wf2_ref[...],
                            preferred_element_type=f32) + bf2_ref[...])


# ----------------------------------------------------------------------------
# Parameter init (deterministic, torch-shaped) and one-time kernel re-layout
# ----------------------------------------------------------------------------
def init_params(key, input_size, cnn_channels, hidden, output_size):
    def nrm(k, shape, fan_in):
        return (jax.random.normal(k, shape, jnp.float32)
                * (1.0 / jnp.sqrt(jnp.float32(fan_in))))

    keys = iter(jax.random.split(key, 32))
    p = {}
    p["conv1_w"] = nrm(next(keys), (cnn_channels, input_size, 3), input_size * 3)
    p["conv1_b"] = nrm(next(keys), (cnn_channels,), input_size * 3)
    p["conv2_w"] = nrm(next(keys), (cnn_channels, cnn_channels, 3), cnn_channels * 3)
    p["conv2_b"] = nrm(next(keys), (cnn_channels,), cnn_channels * 3)

    def lstm_params(k, din, h):
        k1, k2, k3, k4 = jax.random.split(k, 4)
        return (nrm(k1, (4 * h, din), din),   # weight_ih
                nrm(k2, (4 * h, h), h),       # weight_hh
                nrm(k3, (4 * h,), h),         # bias_ih
                nrm(k4, (4 * h,), h))         # bias_hh

    p["lstm0_f"] = lstm_params(next(keys), cnn_channels, hidden)
    p["lstm0_r"] = lstm_params(next(keys), cnn_channels, hidden)
    p["lstm1_f"] = lstm_params(next(keys), 2 * hidden, hidden)
    p["lstm1_r"] = lstm_params(next(keys), 2 * hidden, hidden)

    p["attn_w"] = nrm(next(keys), (1, 2 * hidden), 2 * hidden)
    p["attn_b"] = nrm(next(keys), (1,), 2 * hidden)
    p["fc1_w"] = nrm(next(keys), (hidden, 2 * hidden), 2 * hidden)
    p["fc1_b"] = nrm(next(keys), (hidden,), 2 * hidden)
    p["fc2_w"] = nrm(next(keys), (output_size, hidden), hidden)
    p["fc2_b"] = nrm(next(keys), (output_size,), hidden)
    return p


def prep_params(p):
    """One-time re-layout of torch-shaped params into kernel operand layout.

    Matmul weights are cast to bf16 (MXU operands); biases stay f32.  The two
    recurrence weights of each biLSTM layer are fused into one block-diagonal
    (2H, 8H) matrix; fc_logits is zero-padded to 128 output lanes.
    """
    f32, bf16 = jnp.float32, jnp.bfloat16
    P = {}
    for tag, wkey, bkey in (("1", "conv1_w", "conv1_b"),
                            ("2", "conv2_w", "conv2_b")):
        w = jnp.asarray(p[wkey], f32)
        b = jnp.asarray(p[bkey], f32)
        P[f"cw{tag}_0"] = w[:, :, 0].T.astype(bf16)      # (Cin, Cout) per tap
        P[f"cw{tag}_1"] = w[:, :, 1].T.astype(bf16)
        P[f"cw{tag}_2"] = w[:, :, 2].T.astype(bf16)
        P[f"cb{tag}"] = b.reshape(1, -1)

    def lstm_dir(key):
        wih, whh, bih, bhh = (jnp.asarray(a, f32) for a in p[key])
        return wih.T.astype(bf16), whh.T, (bih + bhh).reshape(1, -1)

    def blockdiag(whhf_t, whhr_t):
        h = whhf_t.shape[0]
        blk = jnp.zeros((2 * h, 8 * h), f32)
        blk = blk.at[:h, :4 * h].set(whhf_t)
        blk = blk.at[h:, 4 * h:].set(whhr_t)
        return blk.astype(bf16)

    wih0f, whh0f_t, bl0f = lstm_dir("lstm0_f")
    wih0r, whh0r_t, bl0r = lstm_dir("lstm0_r")
    wih1f, whh1f_t, bl1f = lstm_dir("lstm1_f")
    wih1r, whh1r_t, bl1r = lstm_dir("lstm1_r")
    P.update(wih0f=wih0f, wih0r=wih0r, bl0f=bl0f, bl0r=bl0r,
             whh0=blockdiag(whh0f_t, whh0r_t),
             wih1f=wih1f, wih1r=wih1r, bl1f=bl1f, bl1r=bl1r,
             whh1=blockdiag(whh1f_t, whh1r_t))

    P["wa"] = jnp.asarray(p["attn_w"], f32).T.astype(bf16)      # (2H, 1)
    P["ba"] = jnp.asarray(p["attn_b"], f32).reshape(1, 1)
    P["wf1"] = jnp.asarray(p["fc1_w"], f32).T.astype(bf16)      # (2H, H)
    P["bf1"] = jnp.asarray(p["fc1_b"], f32).reshape(1, -1)

    hdim = P["wf1"].shape[1]
    odim = p["fc2_w"].shape[0]
    wf2 = jnp.zeros((hdim, _OUT_LANES), f32).at[:, :odim].set(
        jnp.asarray(p["fc2_w"], f32).T)
    bf2 = jnp.zeros((1, _OUT_LANES), f32).at[0, :odim].set(
        jnp.asarray(p["fc2_b"], f32))
    P["wf2"] = wf2.astype(bf16)
    P["bf2"] = bf2
    return P


# ----------------------------------------------------------------------------
# Forward pass: one batch-tiled pallas_call, weights resident in VMEM
# ----------------------------------------------------------------------------
def _full_spec(arr):
    zeros = (0,) * arr.ndim
    return pl.BlockSpec(arr.shape, lambda b, _z=zeros: _z)


@jax.jit
def forward(x, P):
    # x: (B, L, input_size), batch-first like the torch module.
    B, L, Cin = x.shape
    H = P["whh0"].shape[0] // 2
    C = P["cb1"].shape[1]

    Bt = _B_TILE
    B_pad = ((B + Bt - 1) // Bt) * Bt
    x_t = jnp.transpose(x, (1, 0, 2))                 # time-major (L, B, Cin)
    if B_pad != B:
        x_t = jnp.pad(x_t, ((0, 0), (0, B_pad - B), (0, 0)))

    weights = (P["cw1_0"], P["cw1_1"], P["cw1_2"], P["cb1"],
               P["cw2_0"], P["cw2_1"], P["cw2_2"], P["cb2"],
               P["wih0f"], P["wih0r"], P["bl0f"], P["bl0r"], P["whh0"],
               P["wih1f"], P["wih1r"], P["bl1f"], P["bl1r"], P["whh1"],
               P["wa"], P["ba"], P["wf1"], P["bf1"], P["wf2"], P["bf2"])

    in_specs = ([pl.BlockSpec((L, Bt, Cin), lambda b: (0, b, 0))]
                + [_full_spec(w) for w in weights])
    out_spec = pl.BlockSpec((Bt, _OUT_LANES), lambda b: (b, 0))

    scratch = [pltpu.VMEM((L + 2, Bt, Cin), jnp.bfloat16),   # conv1 padded input
               pltpu.VMEM((L + 2, Bt, C), jnp.bfloat16),     # conv2 padded input
               pltpu.VMEM((L, Bt, 4 * H), jnp.float32),      # fwd gates (reused)
               pltpu.VMEM((L, Bt, 4 * H), jnp.float32),      # rev gates (reused)
               pltpu.VMEM((L, Bt, H), jnp.float32),          # fwd hidden (reused)
               pltpu.VMEM((L, Bt, H), jnp.float32)]          # rev hidden (reused)

    # Explicit scoped-VMEM budget: resident weights + tile i/o + scratch with
    # double-buffer headroom, clamped to v7x's 64 MiB physical cap.
    scratch_bytes = ((L + 2) * Bt * (Cin + C) * 2 + L * Bt * (8 * H + 2 * H) * 4)
    io_bytes = L * Bt * Cin * 4 + Bt * _OUT_LANES * 4
    w_bytes = sum(int(w.size) * w.dtype.itemsize for w in weights)
    vmem_limit = int(min(64 * 2**20,
                         max(16 * 2**20,
                             2 * (scratch_bytes + io_bytes + w_bytes) + (4 << 20))))

    out = pl.pallas_call(
        fused_forward_kernel,
        out_shape=jax.ShapeDtypeStruct((B_pad, _OUT_LANES), jnp.float32),
        grid=(B_pad // Bt,),
        in_specs=in_specs,
        out_specs=out_spec,
        scratch_shapes=scratch,
        compiler_params=pltpu.CompilerParams(
            dimension_semantics=("parallel",),      # batch tiles across v7x TCs
            vmem_limit_bytes=vmem_limit),
    )(x_t, *weights)
    return out[:B, :NUM_CLASSES]


if __name__ == "__main__":
    B, L = 2, 8
    INPUT_SIZE = 4
    CNN_CHANNELS = 16
    HIDDEN = 32

    key = jax.random.PRNGKey(0)
    k_x, k_p = jax.random.split(key)
    x = jax.random.normal(k_x, (B, L, INPUT_SIZE), jnp.float32)

    raw_params = init_params(k_p, INPUT_SIZE, CNN_CHANNELS, HIDDEN, NUM_CLASSES)
    params = prep_params(raw_params)     # one-time weight re-layout, outside forward

    logits = forward(x, params)
    jax.block_until_ready(logits)
    assert logits.shape == (B, NUM_CLASSES), logits.shape
    print("KERNEL_OK")
</pallas_src>

<mosaic_0001>
module attributes {stable_mosaic.version = 11 : i64} {
  func.func @fused_forward_kernel(%arg0: i32, %arg1: memref<8x8x4xf32, #tpu.memory_space<vmem>>, %arg2: memref<4x16xbf16, #tpu.memory_space<vmem>>, %arg3: memref<4x16xbf16, #tpu.memory_space<vmem>>, %arg4: memref<4x16xbf16, #tpu.memory_space<vmem>>, %arg5: memref<1x16xf32, #tpu.memory_space<vmem>>, %arg6: memref<16x16xbf16, #tpu.memory_space<vmem>>, %arg7: memref<16x16xbf16, #tpu.memory_space<vmem>>, %arg8: memref<16x16xbf16, #tpu.memory_space<vmem>>, %arg9: memref<1x16xf32, #tpu.memory_space<vmem>>, %arg10: memref<16x128xbf16, #tpu.memory_space<vmem>>, %arg11: memref<16x128xbf16, #tpu.memory_space<vmem>>, %arg12: memref<1x128xf32, #tpu.memory_space<vmem>>, %arg13: memref<1x128xf32, #tpu.memory_space<vmem>>, %arg14: memref<64x256xbf16, #tpu.memory_space<vmem>>, %arg15: memref<64x128xbf16, #tpu.memory_space<vmem>>, %arg16: memref<64x128xbf16, #tpu.memory_space<vmem>>, %arg17: memref<1x128xf32, #tpu.memory_space<vmem>>, %arg18: memref<1x128xf32, #tpu.memory_space<vmem>>, %arg19: memref<64x256xbf16, #tpu.memory_space<vmem>>, %arg20: memref<64x1xbf16, #tpu.memory_space<vmem>>, %arg21: memref<1x1xf32, #tpu.memory_space<vmem>>, %arg22: memref<64x32xbf16, #tpu.memory_space<vmem>>, %arg23: memref<1x32xf32, #tpu.memory_space<vmem>>, %arg24: memref<32x128xbf16, #tpu.memory_space<vmem>>, %arg25: memref<1x128xf32, #tpu.memory_space<vmem>>, %arg26: memref<8x128xf32, #tpu.memory_space<vmem>>, %arg27: memref<10x8x4xbf16, #tpu.memory_space<vmem>>, %arg28: memref<10x8x16xbf16, #tpu.memory_space<vmem>>, %arg29: memref<8x8x128xf32, #tpu.memory_space<vmem>>, %arg30: memref<8x8x128xf32, #tpu.memory_space<vmem>>, %arg31: memref<8x8x32xf32, #tpu.memory_space<vmem>>, %arg32: memref<8x8x32xf32, #tpu.memory_space<vmem>>) attributes {dimension_semantics = [#tpu.dimension_semantics<parallel>], iteration_bounds = array<i64: 1>, scalar_prefetch = 0 : i64, scratch_operands = 6 : i64, tpu.core_type = #tpu.core_type<tc>, window_params = [{transform_indices = @transform_0, window_bounds = array<i64: 8, 8, 4>}, {pipeline_mode = #tpu.pipeline_mode<synchronous>, transform_indices = @transform_1, window_bounds = array<i64: 4, 16>}, {pipeline_mode = #tpu.pipeline_mode<synchronous>, transform_indices = @transform_2, window_bounds = array<i64: 4, 16>}, {pipeline_mode = #tpu.pipeline_mode<synchronous>, transform_indices = @transform_3, window_bounds = array<i64: 4, 16>}, {pipeline_mode = #tpu.pipeline_mode<synchronous>, transform_indices = @transform_4, window_bounds = array<i64: 1, 16>}, {pipeline_mode = #tpu.pipeline_mode<synchronous>, transform_indices = @transform_5, window_bounds = array<i64: 16, 16>}, {pipeline_mode = #tpu.pipeline_mode<synchronous>, transform_indices = @transform_6, window_bounds = array<i64: 16, 16>}, {pipeline_mode = #tpu.pipeline_mode<synchronous>, transform_indices = @transform_7, window_bounds = array<i64: 16, 16>}, {pipeline_mode = #tpu.pipeline_mode<synchronous>, transform_indices = @transform_8, window_bounds = array<i64: 1, 16>}, {pipeline_mode = #tpu.pipeline_mode<synchronous>, transform_indices = @transform_9, window_bounds = array<i64: 16, 128>}, {pipeline_mode = #tpu.pipeline_mode<synchronous>, transform_indices = @transform_10, window_bounds = array<i64: 16, 128>}, {pipeline_mode = #tpu.pipeline_mode<synchronous>, transform_indices = @transform_11, window_bounds = array<i64: 1, 128>}, {pipeline_mode = #tpu.pipeline_mode<synchronous>, transform_indices = @transform_12, window_bounds = array<i64: 1, 128>}, {pipeline_mode = #tpu.pipeline_mode<synchronous>, transform_indices = @transform_13, window_bounds = array<i64: 64, 256>}, {pipeline_mode = #tpu.pipeline_mode<synchronous>, transform_indices = @transform_14, window_bounds = array<i64: 64, 128>}, {pipeline_mode = #tpu.pipeline_mode<synchronous>, transform_indices = @transform_15, window_bounds = array<i64: 64, 128>}, {pipeline_mode = #tpu.pipeline_mode<synchronous>, transform_indices = @transform_16, window_bounds = array<i64: 1, 128>}, {pipeline_mode = #tpu.pipeline_mode<synchronous>, transform_indices = @transform_17, window_bounds = array<i64: 1, 128>}, {pipeline_mode = #tpu.pipeline_mode<synchronous>, transform_indices = @transform_18, window_bounds = array<i64: 64, 256>}, {pipeline_mode = #tpu.pipeline_mode<synchronous>, transform_indices = @transform_19, window_bounds = array<i64: 64, 1>}, {pipeline_mode = #tpu.pipeline_mode<synchronous>, transform_indices = @transform_20, window_bounds = array<i64: 1, 1>}, {pipeline_mode = #tpu.pipeline_mode<synchronous>, transform_indices = @transform_21, window_bounds = array<i64: 64, 32>}, {pipeline_mode = #tpu.pipeline_mode<synchronous>, transform_indices = @transform_22, window_bounds = array<i64: 1, 32>}, {pipeline_mode = #tpu.pipeline_mode<synchronous>, transform_indices = @transform_23, window_bounds = array<i64: 32, 128>}, {pipeline_mode = #tpu.pipeline_mode<synchronous>, transform_indices = @transform_24, window_bounds = array<i64: 1, 128>}, {transform_indices = @transform_25, window_bounds = array<i64: 8, 128>}]} {
    %c0 = arith.constant 0 : index
    %c0_0 = arith.constant 0 : index
    %c0_1 = arith.constant 0 : index
    %0 = vector.load %arg1[%c0, %c0_0, %c0_1] : memref<8x8x4xf32, #tpu.memory_space<vmem>>, vector<8x8x4xf32>
    %1 = arith.truncf %0 : vector<8x8x4xf32> to vector<8x8x4xbf16>
    %c0_2 = arith.constant 0 : index
    %c0_3 = arith.constant 0 : index
    %2 = vector.load %arg2[%c0_2, %c0_3] : memref<4x16xbf16, #tpu.memory_space<vmem>>, vector<4x16xbf16>
    %c0_4 = arith.constant 0 : index
    %c0_5 = arith.constant 0 : index
    %3 = vector.load %arg3[%c0_4, %c0_5] : memref<4x16xbf16, #tpu.memory_space<vmem>>, vector<4x16xbf16>
    %c0_6 = arith.constant 0 : index
    %c0_7 = arith.constant 0 : index
    %4 = vector.load %arg4[%c0_6, %c0_7] : memref<4x16xbf16, #tpu.memory_space<vmem>>, vector<4x16xbf16>
    %c0_8 = arith.constant 0 : index
    %c0_9 = arith.constant 0 : index
    %5 = vector.load %arg5[%c0_8, %c0_9] : memref<1x16xf32, #tpu.memory_space<vmem>>, vector<1x16xf32>
    %cst = arith.constant 0.000000e+00 : bf16
    %6 = vector.broadcast %cst : bf16 to vector<1x8x4xbf16>
    %c0_10 = arith.constant 0 : index
    %c0_11 = arith.constant 0 : index
    %c0_12 = arith.constant 0 : index
    %7 = vector.load %arg27[%c0_10, %c0_11, %c0_12] : memref<10x8x4xbf16, #tpu.memory_space<vmem>>, vector<1x8x4xbf16>
    tpu.vector_store %arg27[%c0_10, %c0_11, %c0_12], %6 {strides = array<i32>} : memref<10x8x4xbf16, #tpu.memory_space<vmem>>, vector<1x8x4xbf16>,
    %c9 = arith.constant 9 : index
    %c0_13 = arith.constant 0 : index
    %c0_14 = arith.constant 0 : index
    %8 = vector.load %arg27[%c9, %c0_13, %c0_14] : memref<10x8x4xbf16, #tpu.memory_space<vmem>>, vector<1x8x4xbf16>
    tpu.vector_store %arg27[%c9, %c0_13, %c0_14], %6 {strides = array<i32>} : memref<10x8x4xbf16, #tpu.memory_space<vmem>>, vector<1x8x4xbf16>,
    %c1 = arith.constant 1 : index
    %c0_15 = arith.constant 0 : index
    %c0_16 = arith.constant 0 : index
    %9 = vector.load %arg27[%c1, %c0_15, %c0_16] : memref<10x8x4xbf16, #tpu.memory_space<vmem>>, vector<8x8x4xbf16>
    tpu.vector_store %arg27[%c1, %c0_15, %c0_16], %1 {strides = array<i32>} : memref<10x8x4xbf16, #tpu.memory_space<vmem>>, vector<8x8x4xbf16>,
    %c0_17 = arith.constant 0 : index
    %c0_18 = arith.constant 0 : index
    %c0_19 = arith.constant 0 : index
    %10 = vector.load %arg27[%c0_17, %c0_18, %c0_19] : memref<10x8x4xbf16, #tpu.memory_space<vmem>>, vector<8x8x4xbf16>
    "tpu.trace_start"() <{level = 10 : i32, message = "lbc,cd->lbd"}> : () -> ()
    %cst_20 = arith.constant dense<0.000000e+00> : vector<8x8x16xf32>
    %11 = tpu.matmul %10, %2, %cst_20 {dimension_numbers = #tpu.dot_dimension_numbers<[2], [0], [0, 1], [1], [0, 0, 0, 1, 1, 1], [], []>} : vector<8x8x4xbf16>, vector<4x16xbf16>, vector<8x8x16xf32> -> vector<8x8x16xf32>
    "tpu.trace_stop"() : () -> ()
    %c1_21 = arith.constant 1 : index
    %c0_22 = arith.constant 0 : index
    %c0_23 = arith.constant 0 : index
    %12 = vector.load %arg27[%c1_21, %c0_22, %c0_23] : memref<10x8x4xbf16, #tpu.memory_space<vmem>>, vector<8x8x4xbf16>
    "tpu.trace_start"() <{level = 10 : i32, message = "lbc,cd->lbd"}> : () -> ()
    %cst_24 = arith.constant dense<0.000000e+00> : vector<8x8x16xf32>
    %13 = tpu.matmul %12, %3, %cst_24 {dimension_numbers = #tpu.dot_dimension_numbers<[2], [0], [0, 1], [1], [0, 0, 0, 1, 1, 1], [], []>} : vector<8x8x4xbf16>, vector<4x16xbf16>, vector<8x8x16xf32> -> vector<8x8x16xf32>
    "tpu.trace_stop"() : () -> ()
    %14 = arith.addf %11, %13 : vector<8x8x16xf32>
    %c2 = arith.constant 2 : index
    %c0_25 = arith.constant 0 : index
    %c0_26 = arith.constant 0 : index
    %15 = vector.load %arg27[%c2, %c0_25, %c0_26] : memref<10x8x4xbf16, #tpu.memory_space<vmem>>, vector<8x8x4xbf16>
    "tpu.trace_start"() <{level = 10 : i32, message = "lbc,cd->lbd"}> : () -> ()
    %cst_27 = arith.constant dense<0.000000e+00> : vector<8x8x16xf32>
    %16 = tpu.matmul %15, %4, %cst_27 {dimension_numbers = #tpu.dot_dimension_numbers<[2], [0], [0, 1], [1], [0, 0, 0, 1, 1, 1], [], []>} : vector<8x8x4xbf16>, vector<4x16xbf16>, vector<8x8x16xf32> -> vector<8x8x16xf32>
    "tpu.trace_stop"() : () -> ()
    %17 = arith.addf %14, %16 : vector<8x8x16xf32>
    %18 = vector.shape_cast %5 : vector<1x16xf32> to vector<1x1x16xf32>
    %19 = vector.broadcast %18 : vector<1x1x16xf32> to vector<8x8x16xf32>
    %20 = arith.addf %17, %19 : vector<8x8x16xf32>
    %cst_28 = arith.constant 0.000000e+00 : f32
    %21 = vector.broadcast %cst_28 : f32 to vector<8x8x16xf32>
    %22 = arith.maximumf %20, %21 : vector<8x8x16xf32>
    %23 = arith.truncf %22 : vector<8x8x16xf32> to vector<8x8x16xbf16>
    %c0_29 = arith.constant 0 : index
    %c0_30 = arith.constant 0 : index
    %24 = vector.load %arg6[%c0_29, %c0_30] : memref<16x16xbf16, #tpu.memory_space<vmem>>, vector<16x16xbf16>
    %c0_31 = arith.constant 0 : index
    %c0_32 = arith.constant 0 : index
    %25 = vector.load %arg7[%c0_31, %c0_32] : memref<16x16xbf16, #tpu.memory_space<vmem>>, vector<16x16xbf16>
    %c0_33 = arith.constant 0 : index
    %c0_34 = arith.constant 0 : index
    %26 = vector.load %arg8[%c0_33, %c0_34] : memref<16x16xbf16, #tpu.memory_space<vmem>>, vector<16x16xbf16>
    %c0_35 = arith.constant 0 : index
    %c0_36 = arith.constant 0 : index
    %27 = vector.load %arg9[%c0_35, %c0_36] : memref<1x16xf32, #tpu.memory_space<vmem>>, vector<1x16xf32>
    %cst_37 = arith.constant 0.000000e+00 : bf16
    %28 = vector.broadcast %cst_37 : bf16 to vector<1x8x16xbf16>
    %c0_38 = arith.constant 0 : index
    %c0_39 = arith.constant 0 : index
    %c0_40 = arith.constant 0 : index
    %29 = vector.load %arg28[%c0_38, %c0_39, %c0_40] : memref<10x8x16xbf16, #tpu.memory_space<vmem>>, vector<1x8x16xbf16>
    tpu.vector_store %arg28[%c0_38, %c0_39, %c0_40], %28 {strides = array<i32>} : memref<10x8x16xbf16, #tpu.memory_space<vmem>>, vector<1x8x16xbf16>,
    %c9_41 = arith.constant 9 : index
    %c0_42 = arith.constant 0 : index
    %c0_43 = arith.constant 0 : index
    %30 = vector.load %arg28[%c9_41, %c0_42, %c0_43] : memref<10x8x16xbf16, #tpu.memory_space<vmem>>, vector<1x8x16xbf16>
    tpu.vector_store %arg28[%c9_41, %c0_42, %c0_43], %28 {strides = array<i32>} : memref<10x8x16xbf16, #tpu.memory_space<vmem>>, vector<1x8x16xbf16>,
    %c1_44 = arith.constant 1 : index
    %c0_45 = arith.constant 0 : index
    %c0_46 = arith.constant 0 : index
    %31 = vector.load %arg28[%c1_44, %c0_45, %c0_46] : memref<10x8x16xbf16, #tpu.memory_space<vmem>>, vector<8x8x16xbf16>
    tpu.vector_store %arg28[%c1_44, %c0_45, %c0_46], %23 {strides = array<i32>} : memref<10x8x16xbf16, #tpu.memory_space<vmem>>, vector<8x8x16xbf16>,
    %c0_47 = arith.constant 0 : index
    %c0_48 = arith.constant 0 : index
    %c0_49 = arith.constant 0 : index
    %32 = vector.load %arg28[%c0_47, %c0_48, %c0_49] : memref<10x8x16xbf16, #tpu.memory_space<vmem>>, vector<8x8x16xbf16>
    "tpu.trace_start"() <{level = 10 : i32, message = "lbc,cd->lbd"}> : () -> ()
    %cst_50 = arith.constant dense<0.000000e+00> : vector<8x8x16xf32>
    %33 = tpu.matmul %32, %24, %cst_50 {dimension_numbers = #tpu.dot_dimension_numbers<[2], [0], [0, 1], [1], [0, 0, 0, 1, 1, 1], [], []>} : vector<8x8x16xbf16>, vector<16x16xbf16>, vector<8x8x16xf32> -> vector<8x8x16xf32>
    "tpu.trace_stop"() : () -> ()
    %c1_51 = arith.constant 1 : index
    %c0_52 = arith.constant 0 : index
    %c0_53 = arith.constant 0 : index
    %34 = vector.load %arg28[%c1_51, %c0_52, %c0_53] : memref<10x8x16xbf16, #tpu.memory_space<vmem>>, vector<8x8x16xbf16>
    "tpu.trace_start"() <{level = 10 : i32, message = "lbc,cd->lbd"}> : () -> ()
    %cst_54 = arith.constant dense<0.000000e+00> : vector<8x8x16xf32>
    %35 = tpu.matmul %34, %25, %cst_54 {dimension_numbers = #tpu.dot_dimension_numbers<[2], [0], [0, 1], [1], [0, 0, 0, 1, 1, 1], [], []>} : vector<8x8x16xbf16>, vector<16x16xbf16>, vector<8x8x16xf32> -> vector<8x8x16xf32>
    "tpu.trace_stop"() : () -> ()
    %36 = arith.addf %33, %35 : vector<8x8x16xf32>
    %c2_55 = arith.constant 2 : index
    %c0_56 = arith.constant 0 : index
    %c0_57 = arith.constant 0 : index
    %37 = vector.load %arg28[%c2_55, %c0_56, %c0_57] : memref<10x8x16xbf16, #tpu.memory_space<vmem>>, vector<8x8x16xbf16>
    "tpu.trace_start"() <{level = 10 : i32, message = "lbc,cd->lbd"}> : () -> ()
    %cst_58 = arith.constant dense<0.000000e+00> : vector<8x8x16xf32>
    %38 = tpu.matmul %37, %26, %cst_58 {dimension_numbers = #tpu.dot_dimension_numbers<[2], [0], [0, 1], [1], [0, 0, 0, 1, 1, 1], [], []>} : vector<8x8x16xbf16>, vector<16x16xbf16>, vector<8x8x16xf32> -> vector<8x8x16xf32>
    "tpu.trace_stop"() : () -> ()
    %39 = arith.addf %36, %38 : vector<8x8x16xf32>
    %40 = vector.shape_cast %27 : vector<1x16xf32> to vector<1x1x16xf32>
    %41 = vector.broadcast %40 : vector<1x1x16xf32> to vector<8x8x16xf32>
    %42 = arith.addf %39, %41 : vector<8x8x16xf32>
    %cst_59 = arith.constant 0.000000e+00 : f32
    %43 = vector.broadcast %cst_59 : f32 to vector<8x8x16xf32>
    %44 = arith.maximumf %42, %43 : vector<8x8x16xf32>
    %45 = arith.truncf %44 : vector<8x8x16xf32> to vector<8x8x16xbf16>
    %c0_60 = arith.constant 0 : index
    %c0_61 = arith.constant 0 : index
    %46 = vector.load %arg10[%c0_60, %c0_61] : memref<16x128xbf16, #tpu.memory_space<vmem>>, vector<16x128xbf16>
    "tpu.trace_start"() <{level = 10 : i32, message = "lbc,ck->lbk"}> : () -> ()
    %cst_62 = arith.constant dense<0.000000e+00> : vector<8x8x128xf32>
    %47 = tpu.matmul %45, %46, %cst_62 {dimension_numbers = #tpu.dot_dimension_numbers<[2], [0], [0, 1], [1], [0, 0, 0, 1, 1, 1], [], []>} : vector<8x8x16xbf16>, vector<16x128xbf16>, vector<8x8x128xf32> -> vector<8x8x128xf32>
    "tpu.trace_stop"() : () -> ()
    %c0_63 = arith.constant 0 : index
    %c0_64 = arith.constant 0 : index
    %48 = vector.load %arg12[%c0_63, %c0_64] : memref<1x128xf32, #tpu.memory_space<vmem>>, vector<1x128xf32>
    %49 = vector.shape_cast %48 : vector<1x128xf32> to vector<1x1x128xf32>
    %50 = vector.broadcast %49 : vector<1x1x128xf32> to vector<8x8x128xf32>
    %51 = arith.addf %47, %50 : vector<8x8x128xf32>
    %c0_65 = arith.constant 0 : index
    %c0_66 = arith.constant 0 : index
    %c0_67 = arith.constant 0 : index
    %52 = vector.load %arg29[%c0_65, %c0_66, %c0_67] : memref<8x8x128xf32, #tpu.memory_space<vmem>>, vector<8x8x128xf32>
    tpu.vector_store %arg29[%c0_65, %c0_66, %c0_67], %51 {strides = array<i32>} : memref<8x8x128xf32, #tpu.memory_space<vmem>>, vector<8x8x128xf32>,
    %c0_68 = arith.constant 0 : index
    %c0_69 = arith.constant 0 : index
    %53 = vector.load %arg11[%c0_68, %c0_69] : memref<16x128xbf16, #tpu.memory_space<vmem>>, vector<16x128xbf16>
    "tpu.trace_start"() <{level = 10 : i32, message = "lbc,ck->lbk"}> : () -> ()
    %cst_70 = arith.constant dense<0.000000e+00> : vector<8x8x128xf32>
    %54 = tpu.matmul %45, %53, %cst_70 {dimension_numbers = #tpu.dot_dimension_numbers<[2], [0], [0, 1], [1], [0, 0, 0, 1, 1, 1], [], []>} : vector<8x8x16xbf16>, vector<16x128xbf16>, vector<8x8x128xf32> -> vector<8x8x128xf32>
    "tpu.trace_stop"() : () -> ()
    %c0_71 = arith.constant 0 : index
    %c0_72 = arith.constant 0 : index
    %55 = vector.load %arg13[%c0_71, %c0_72] : memref<1x128xf32, #tpu.memory_space<vmem>>, vector<1x128xf32>
    %56 = vector.shape_cast %55 : vector<1x128xf32> to vector<1x1x128xf32>
    %57 = vector.broadcast %56 : vector<1x1x128xf32> to vector<8x8x128xf32>
    %58 = arith.addf %54, %57 : vector<8x8x128xf32>
    %c0_73 = arith.constant 0 : index
    %c0_74 = arith.constant 0 : index
    %c0_75 = arith.constant 0 : index
    %59 = vector.load %arg30[%c0_73, %c0_74, %c0_75] : memref<8x8x128xf32, #tpu.memory_space<vmem>>, vector<8x8x128xf32>
    tpu.vector_store %arg30[%c0_73, %c0_74, %c0_75], %58 {strides = array<i32>} : memref<8x8x128xf32, #tpu.memory_space<vmem>>, vector<8x8x128xf32>,
    %c0_76 = arith.constant 0 : index
    %c0_77 = arith.constant 0 : index
    %60 = vector.load %arg14[%c0_76, %c0_77] : memref<64x256xbf16, #tpu.memory_space<vmem>>, vector<64x256xbf16>
    %cst_78 = arith.constant 0.000000e+00 : f32
    %61 = vector.broadcast %cst_78 : f32 to vector<8x64xf32>
    %cst_79 = arith.constant 0.000000e+00 : f32
    %62 = vector.broadcast %cst_79 : f32 to vector<8x32xf32>
    %c0_i32 = arith.constant 0 : i32
    %c7_i32 = arith.constant 7 : i32
    %63 = arith.subi %c7_i32, %c0_i32 : i32
    %64 = arith.truncf %61 : vector<8x64xf32> to vector<8x64xbf16>
    %cst_80 = arith.constant dense<0.000000e+00> : vector<8x256xf32>
    %65 = tpu.matmul %64, %60, %cst_80 {dimension_numbers = #tpu.dot_dimension_numbers<[1], [0], [0], [1], [0, 0, 1, 1], [], []>} : vector<8x64xbf16>, vector<64x256xbf16>, vector<8x256xf32> -> vector<8x256xf32>
    %66 = arith.index_cast %c0_i32 : i32 to index
    %c0_81 = arith.constant 0 : index
    %c0_82 = arith.constant 0 : index
    %67 = vector.load %arg29[%66, %c0_81, %c0_82] : memref<8x8x128xf32, #tpu.memory_space<vmem>>, vector<1x8x128xf32>
    %68 = vector.shape_cast %67 : vector<1x8x128xf32> to vector<8x128xf32>
    %69 = vector.extract_strided_slice %65 {offsets = [0, 0], sizes = [8, 128], strides = [1, 1]} : vector<8x256xf32> to vector<8x128xf32>
    %70 = arith.addf %68, %69 : vector<8x128xf32>
    %71 = vector.extract_strided_slice %70 {offsets = [0, 0], sizes = [8, 32], strides = [1, 1]} : vector<8x128xf32> to vector<8x32xf32>
    %72 = arith.negf %71 : vector<8x32xf32>
    %73 = math.exp %72 : vector<8x32xf32>
    %cst_83 = arith.constant 1.000000e+00 : f32
    %74 = vector.broadcast %cst_83 : f32 to vector<8x32xf32>
    %75 = arith.addf %74, %73 : vector<8x32xf32>
    %76 = arith.divf %74, %75 : vector<8x32xf32>
    %77 = vector.extract_strided_slice %70 {offsets = [0, 32], sizes = [8, 32], strides = [1, 1]} : vector<8x128xf32> to vector<8x32xf32>
    %78 = arith.negf %77 : vector<8x32xf32>
    %79 = math.exp %78 : vector<8x32xf32>
    %cst_84 = arith.constant 1.000000e+00 : f32
    %80 = vector.broadcast %cst_84 : f32 to vector<8x32xf32>
    %81 = arith.addf %80, %79 : vector<8x32xf32>
    %82 = arith.divf %80, %81 : vector<8x32xf32>
    %83 = vector.extract_strided_slice %70 {offsets = [0, 64], sizes = [8, 32], strides = [1, 1]} : vector<8x128xf32> to vector<8x32xf32>
    %84 = math.tanh %83 : vector<8x32xf32>
    %85 = vector.extract_strided_slice %70 {offsets = [0, 96], sizes = [8, 32], strides = [1, 1]} : vector<8x128xf32> to vector<8x32xf32>
    %86 = arith.negf %85 : vector<8x32xf32>
    %87 = math.exp %86 : vector<8x32xf32>
    %cst_85 = arith.constant 1.000000e+00 : f32
    %88 = vector.broadcast %cst_85 : f32 to vector<8x32xf32>
    %89 = arith.addf %88, %87 : vector<8x32xf32>
    %90 = arith.divf %88, %89 : vector<8x32xf32>
    %91 = arith.mulf %82, %62 : vector<8x32xf32>
    %92 = arith.mulf %76, %84 : vector<8x32xf32>
    %93 = arith.addf %91, %92 : vector<8x32xf32>
    %94 = math.tanh %93 : vector<8x32xf32>
    %95 = arith.mulf %90, %94 : vector<8x32xf32>
    %96 = arith.index_cast %63 : i32 to index
    %c0_86 = arith.constant 0 : index
    %c0_87 = arith.constant 0 : index
    %97 = vector.load %arg30[%96, %c0_86, %c0_87] : memref<8x8x128xf32, #tpu.memory_space<vmem>>, vector<1x8x128xf32>
    %98 = vector.shape_cast %97 : vector<1x8x128xf32> to vector<8x128xf32>
    %99 = vector.extract_strided_slice %65 {offsets = [0, 128], sizes = [8, 128], strides = [1, 1]} : vector<8x256xf32> to vector<8x128xf32>
    %100 = arith.addf %98, %99 : vector<8x128xf32>
    %101 = vector.extract_strided_slice %100 {offsets = [0, 0], sizes = [8, 32], strides = [1, 1]} : vector<8x128xf32> to vector<8x32xf32>
    %102 = arith.negf %101 : vector<8x32xf32>
    %103 = math.exp %102 : vector<8x32xf32>
    %cst_88 = arith.constant 1.000000e+00 : f32
    %104 = vector.broadcast %cst_88 : f32 to vector<8x32xf32>
    %105 = arith.addf %104, %103 : vector<8x32xf32>
    %106 = arith.divf %104, %105 : vector<8x32xf32>
    %107 = vector.extract_strided_slice %100 {offsets = [0, 32], sizes = [8, 32], strides = [1, 1]} : vector<8x128xf32> to vector<8x32xf32>
    %108 = arith.negf %107 : vector<8x32xf32>
    %109 = math.exp %108 : vector<8x32xf32>
    %cst_89 = arith.constant 1.000000e+00 : f32
    %110 = vector.broadcast %cst_89 : f32 to vector<8x32xf32>
    %111 = arith.addf %110, %109 : vector<8x32xf32>
    %112 = arith.divf %110, %111 : vector<8x32xf32>
    %113 = vector.extract_strided_slice %100 {offsets = [0, 64], sizes = [8, 32], strides = [1, 1]} : vector<8x128xf32> to vector<8x32xf32>
    %114 = math.tanh %113 : vector<8x32xf32>
    %115 = vector.extract_strided_slice %100 {offsets = [0, 96], sizes = [8, 32], strides = [1, 1]} : vector<8x128xf32> to vector<8x32xf32>
    %116 = arith.negf %115 : vector<8x32xf32>
    %117 = math.exp %116 : vector<8x32xf32>
    %cst_90 = arith.constant 1.000000e+00 : f32
    %118 = vector.broadcast %cst_90 : f32 to vector<8x32xf32>
    %119 = arith.addf %118, %117 : vector<8x32xf32>
    %120 = arith.divf %118, %119 : vector<8x32xf32>
    %121 = arith.mulf %112, %62 : vector<8x32xf32>
    %122 = arith.mulf %106, %114 : vector<8x32xf32>
    %123 = arith.addf %121, %122 : vector<8x32xf32>
    %124 = math.tanh %123 : vector<8x32xf32>
    %125 = arith.mulf %120, %124 : vector<8x32xf32>
    %126 = arith.index_cast %c0_i32 : i32 to index
    %c0_91 = arith.constant 0 : index
    %c0_92 = arith.constant 0 : index
    %127 = vector.load %arg31[%126, %c0_91, %c0_92] : memref<8x8x32xf32, #tpu.memory_space<vmem>>, vector<1x8x32xf32>
    %128 = vector.shape_cast %127 : vector<1x8x32xf32> to vector<8x32xf32>
    %129 = vector.shape_cast %95 : vector<8x32xf32> to vector<1x8x32xf32>
    tpu.vector_store %arg31[%126, %c0_91, %c0_92], %129 {strides = array<i32>} : memref<8x8x32xf32, #tpu.memory_space<vmem>>, vector<1x8x32xf32>,
    %130 = arith.index_cast %63 : i32 to index
    %c0_93 = arith.constant 0 : index
    %c0_94 = arith.constant 0 : index
    %131 = vector.load %arg32[%130, %c0_93, %c0_94] : memref<8x8x32xf32, #tpu.memory_space<vmem>>, vector<1x8x32xf32>
    %132 = vector.shape_cast %131 : vector<1x8x32xf32> to vector<8x32xf32>
    %133 = vector.shape_cast %125 : vector<8x32xf32> to vector<1x8x32xf32>
    tpu.vector_store %arg32[%130, %c0_93, %c0_94], %133 {strides = array<i32>} : memref<8x8x32xf32, #tpu.memory_space<vmem>>, vector<1x8x32xf32>,
    %134 = tpu.concatenate %95, %125 in 1 : vector<8x32xf32>, vector<8x32xf32> -> vector<8x64xf32>
    %c1_i32 = arith.constant 1 : i32
    %c7_i32_95 = arith.constant 7 : i32
    %135 = arith.subi %c7_i32_95, %c1_i32 : i32
    %136 = arith.truncf %134 : vector<8x64xf32> to vector<8x64xbf16>
    %cst_96 = arith.constant dense<0.000000e+00> : vector<8x256xf32>
    %137 = tpu.matmul %136, %60, %cst_96 {dimension_numbers = #tpu.dot_dimension_numbers<[1], [0], [0], [1], [0, 0, 1, 1], [], []>} : vector<8x64xbf16>, vector<64x256xbf16>, vector<8x256xf32> -> vector<8x256xf32>
    %138 = arith.index_cast %c1_i32 : i32 to index
    %c0_97 = arith.constant 0 : index
    %c0_98 = arith.constant 0 : index
    %139 = vector.load %arg29[%138, %c0_97, %c0_98] : memref<8x8x128xf32, #tpu.memory_space<vmem>>, vector<1x8x128xf32>
    %140 = vector.shape_cast %139 : vector<1x8x128xf32> to vector<8x128xf32>
    %141 = vector.extract_strided_slice %137 {offsets = [0, 0], sizes = [8, 128], strides = [1, 1]} : vector<8x256xf32> to vector<8x128xf32>
    %142 = arith.addf %140, %141 : vector<8x128xf32>
    %143 = vector.extract_strided_slice %142 {offsets = [0, 0], sizes = [8, 32], strides = [1, 1]} : vector<8x128xf32> to vector<8x32xf32>
    %144 = arith.negf %143 : vector<8x32xf32>
    %145 = math.exp %144 : vector<8x32xf32>
    %cst_99 = arith.constant 1.000000e+00 : f32
    %146 = vector.broadcast %cst_99 : f32 to vector<8x32xf32>
    %147 = arith.addf %146, %145 : vector<8x32xf32>
    %148 = arith.divf %146, %147 : vector<8x32xf32>
    %149 = vector.extract_strided_slice %142 {offsets = [0, 32], sizes = [8, 32], strides = [1, 1]} : vector<8x128xf32> to vector<8x32xf32>
    %150 = arith.negf %149 : vector<8x32xf32>
    %151 = math.exp %150 : vector<8x32xf32>
    %cst_100 = arith.constant 1.000000e+00 : f32
    %152 = vector.broadcast %cst_100 : f32 to vector<8x32xf32>
    %153 = arith.addf %152, %151 : vector<8x32xf32>
    %154 = arith.divf %152, %153 : vector<8x32xf32>
    %155 = vector.extract_strided_slice %142 {offsets = [0, 64], sizes = [8, 32], strides = [1, 1]} : vector<8x128xf32> to vector<8x32xf32>
    %156 = math.tanh %155 : vector<8x32xf32>
    %157 = vector.extract_strided_slice %142 {offsets = [0, 96], sizes = [8, 32], strides = [1, 1]} : vector<8x128xf32> to vector<8x32xf32>
    %158 = arith.negf %157 : vector<8x32xf32>
    %159 = math.exp %158 : vector<8x32xf32>
    %cst_101 = arith.constant 1.000000e+00 : f32
    %160 = vector.broadcast %cst_101 : f32 to vector<8x32xf32>
    %161 = arith.addf %160, %159 : vector<8x32xf32>
    %162 = arith.divf %160, %161 : vector<8x32xf32>
    %163 = arith.mulf %154, %93 : vector<8x32xf32>
    %164 = arith.mulf %148, %156 : vector<8x32xf32>
    %165 = arith.addf %163, %164 : vector<8x32xf32>
    %166 = math.tanh %165 : vector<8x32xf32>
    %167 = arith.mulf %162, %166 : vector<8x32xf32>
    %168 = arith.index_cast %135 : i32 to index
    %c0_102 = arith.constant 0 : index
    %c0_103 = arith.constant 0 : index
    %169 = vector.load %arg30[%168, %c0_102, %c0_103] : memref<8x8x128xf32, #tpu.memory_space<vmem>>, vector<1x8x128xf32>
    %170 = vector.shape_cast %169 : vector<1x8x128xf32> to vector<8x128xf32>
    %171 = vector.extract_strided_slice %137 {offsets = [0, 128], sizes = [8, 128], strides = [1, 1]} : vector<8x256xf32> to vector<8x128xf32>
    %172 = arith.addf %170, %171 : vector<8x128xf32>
    %173 = vector.extract_strided_slice %172 {offsets = [0, 0], sizes = [8, 32], strides = [1, 1]} : vector<8x128xf32> to vector<8x32xf32>
    %174 = arith.negf %173 : vector<8x32xf32>
    %175 = math.exp %174 : vector<8x32xf32>
    %cst_104 = arith.constant 1.000000e+00 : f32
    %176 = vector.broadcast %cst_104 : f32 to vector<8x32xf32>
    %177 = arith.addf %176, %175 : vector<8x32xf32>
    %178 = arith.divf %176, %177 : vector<8x32xf32>
    %179 = vector.extract_strided_slice %172 {offsets = [0, 32], sizes = [8, 32], strides = [1, 1]} : vector<8x128xf32> to vector<8x32xf32>
    %180 = arith.negf %179 : vector<8x32xf32>
    %181 = math.exp %180 : vector<8x32xf32>
    %cst_105 = arith.constant 1.000000e+00 : f32
    %182 = vector.broadcast %cst_105 : f32 to vector<8x32xf32>
    %183 = arith.addf %182, %181 : vector<8x32xf32>
    %184 = arith.divf %182, %183 : vector<8x32xf32>
    %185 = vector.extract_strided_slice %172 {offsets = [0, 64], sizes = [8, 32], strides = [1, 1]} : vector<8x128xf32> to vector<8x32xf32>
    %186 = math.tanh %185 : vector<8x32xf32>
    %187 = vector.extract_strided_slice %172 {offsets = [0, 96], sizes = [8, 32], strides = [1, 1]} : vector<8x128xf32> to vector<8x32xf32>
    %188 = arith.negf %187 : vector<8x32xf32>
    %189 = math.exp %188 : vector<8x32xf32>
    %cst_106 = arith.constant 1.000000e+00 : f32
    %190 = vector.broadcast %cst_106 : f32 to vector<8x32xf32>
    %191 = arith.addf %190, %189 : vector<8x32xf32>
    %192 = arith.divf %190, %191 : vector<8x32xf32>
    %193 = arith.mulf %184, %123 : vector<8x32xf32>
    %194 = arith.mulf %178, %186 : vector<8x32xf32>
    %195 = arith.addf %193, %194 : vector<8x32xf32>
    %196 = math.tanh %195 : vector<8x32xf32>
    %197 = arith.mulf %192, %196 : vector<8x32xf32>
    %198 = arith.index_cast %c1_i32 : i32 to index
    %c0_107 = arith.constant 0 : index
    %c0_108 = arith.constant 0 : index
    %199 = vector.load %arg31[%198, %c0_107, %c0_108] : memref<8x8x32xf32, #tpu.memory_space<vmem>>, vector<1x8x32xf32>
    %200 = vector.shape_cast %199 : vector<1x8x32xf32> to vector<8x32xf32>
    %201 = vector.shape_cast %167 : vector<8x32xf32> to vector<1x8x32xf32>
    tpu.vector_store %arg31[%198, %c0_107, %c0_108], %201 {strides = array<i32>} : memref<8x8x32xf32, #tpu.memory_space<vmem>>, vector<1x8x32xf32>,
    %202 = arith.index_cast %135 : i32 to index
    %c0_109 = arith.constant 0 : index
    %c0_110 = arith.constant 0 : index
    %203 = vector.load %arg32[%202, %c0_109, %c0_110] : memref<8x8x32xf32, #tpu.memory_space<vmem>>, vector<1x8x32xf32>
    %204 = vector.shape_cast %203 : vector<1x8x32xf32> to vector<8x32xf32>
    %205 = vector.shape_cast %197 : vector<8x32xf32> to vector<1x8x32xf32>
    tpu.vector_store %arg32[%202, %c0_109, %c0_110], %205 {strides = array<i32>} : memref<8x8x32xf32, #tpu.memory_space<vmem>>, vector<1x8x32xf32>,
    %206 = tpu.concatenate %167, %197 in 1 : vector<8x32xf32>, vector<8x32xf32> -> vector<8x64xf32>
    %c2_i32 = arith.constant 2 : i32
    %c7_i32_111 = arith.constant 7 : i32
    %207 = arith.subi %c7_i32_111, %c2_i32 : i32
    %208 = arith.truncf %206 : vector<8x64xf32> to vector<8x64xbf16>
    %cst_112 = arith.constant dense<0.000000e+00> : vector<8x256xf32>
    %209 = tpu.matmul %208, %60, %cst_112 {dimension_numbers = #tpu.dot_dimension_numbers<[1], [0], [0], [1], [0, 0, 1, 1], [], []>} : vector<8x64xbf16>, vector<64x256xbf16>, vector<8x256xf32> -> vector<8x256xf32>
    %210 = arith.index_cast %c2_i32 : i32 to index
    %c0_113 = arith.constant 0 : index
    %c0_114 = arith.constant 0 : index
    %211 = vector.load %arg29[%210, %c0_113, %c0_114] : memref<8x8x128xf32, #tpu.memory_space<vmem>>, vector<1x8x128xf32>
    %212 = vector.shape_cast %211 : vector<1x8x128xf32> to vector<8x128xf32>
    %213 = vector.extract_strided_slice %209 {offsets = [0, 0], sizes = [8, 128], strides = [1, 1]} : vector<8x256xf32> to vector<8x128xf32>
    %214 = arith.addf %212, %213 : vector<8x128xf32>
    %215 = vector.extract_strided_slice %214 {offsets = [0, 0], sizes = [8, 32], strides = [1, 1]} : vector<8x128xf32> to vector<8x32xf32>
    %216 = arith.negf %215 : vector<8x32xf32>
    %217 = math.exp %216 : vector<8x32xf32>
    %cst_115 = arith.constant 1.000000e+00 : f32
    %218 = vector.broadcast %cst_115 : f32 to vector<8x32xf32>
    %219 = arith.addf %218, %217 : vector<8x32xf32>
    %220 = arith.divf %218, %219 : vector<8x32xf32>
    %221 = vector.extract_strided_slice %214 {offsets = [0, 32], sizes = [8, 32], strides = [1, 1]} : vector<8x128xf32> to vector<8x32xf32>
    %222 = arith.negf %221 : vector<8x32xf32>
    %223 = math.exp %222 : vector<8x32xf32>
    %cst_116 = arith.constant 1.000000e+00 : f32
    %224 = vector.broadcast %cst_116 : f32 to vector<8x32xf32>
    %225 = arith.addf %224, %223 : vector<8x32xf32>
    %226 = arith.divf %224, %225 : vector<8x32xf32>
    %227 = vector.extract_strided_slice %214 {offsets = [0, 64], sizes = [8, 32], strides = [1, 1]} : vector<8x128xf32> to vector<8x32xf32>
    %228 = math.tanh %227 : vector<8x32xf32>
    %229 = vector.extract_strided_slice %214 {offsets = [0, 96], sizes = [8, 32], strides = [1, 1]} : vector<8x128xf32> to vector<8x32xf32>
    %230 = arith.negf %229 : vector<8x32xf32>
    %231 = math.exp %230 : vector<8x32xf32>
    %cst_117 = arith.constant 1.000000e+00 : f32
    %232 = vector.broadcast %cst_117 : f32 to vector<8x32xf32>
    %233 = arith.addf %232, %231 : vector<8x32xf32>
    %234 = arith.divf %232, %233 : vector<8x32xf32>
    %235 = arith.mulf %226, %165 : vector<8x32xf32>
    %236 = arith.mulf %220, %228 : vector<8x32xf32>
    %237 = arith.addf %235, %236 : vector<8x32xf32>
    %238 = math.tanh %237 : vector<8x32xf32>
    %239 = arith.mulf %234, %238 : vector<8x32xf32>
    %240 = arith.index_cast %207 : i32 to index
    %c0_118 = arith.constant 0 : index
    %c0_119 = arith.constant 0 : index
    %241 = vector.load %arg30[%240, %c0_118, %c0_119] : memref<8x8x128xf32, #tpu.memory_space<vmem>>, vector<1x8x128xf32>
    %242 = vector.shape_cast %241 : vector<1x8x128xf32> to vector<8x128xf32>
    %243 = vector.extract_strided_slice %209 {offsets = [0, 128], sizes = [8, 128], strides = [1, 1]} : vector<8x256xf32> to vector<8x128xf32>
    %244 = arith.addf %242, %243 : vector<8x128xf32>
    %245 = vector.extract_strided_slice %244 {offsets = [0, 0], sizes = [8, 32], strides = [1, 1]} : vector<8x128xf32> to vector<8x32xf32>
    %246 = arith.negf %245 : vector<8x32xf32>
    %247 = math.exp %246 : vector<8x32xf32>
    %cst_120 = arith.constant 1.000000e+00 : f32
    %248 = vector.broadcast %cst_120 : f32 to vector<8x32xf32>
    %249 = arith.addf %248, %247 : vector<8x32xf32>
    %250 = arith.divf %248, %249 : vector<8x32xf32>
    %251 = vector.extract_strided_slice %244 {offsets = [0, 32], sizes = [8, 32], strides = [1, 1]} : vector<8x128xf32> to vector<8x32xf32>
    %252 = arith.negf %251 : vector<8x32xf32>
    %253 = math.exp %252 : vector<8x32xf32>
    %cst_121 = arith.constant 1.000000e+00 : f32
    %254 = vector.broadcast %cst_121 : f32 to vector<8x32xf32>
    %255 = arith.addf %254, %253 : vector<8x32xf32>
    %256 = arith.divf %254, %255 : vector<8x32xf32>
    %257 = vector.extract_strided_slice %244 {offsets = [0, 64], sizes = [8, 32], strides = [1, 1]} : vector<8x128xf32> to vector<8x32xf32>
    %258 = math.tanh %257 : vector<8x32xf32>
    %259 = vector.extract_strided_slice %244 {offsets = [0, 96], sizes = [8, 32], strides = [1, 1]} : vector<8x128xf32> to vector<8x32xf32>
    %260 = arith.negf %259 : vector<8x32xf32>
    %261 = math.exp %260 : vector<8x32xf32>
    %cst_122 = arith.constant 1.000000e+00 : f32
    %262 = vector.broadcast %cst_122 : f32 to vector<8x32xf32>
    %263 = arith.addf %262, %261 : vector<8x32xf32>
    %264 = arith.divf %262, %263 : vector<8x32xf32>
    %265 = arith.mulf %256, %195 : vector<8x32xf32>
    %266 = arith.mulf %250, %258 : vector<8x32xf32>
    %267 = arith.addf %265, %266 : vector<8x32xf32>
    %268 = math.tanh %267 : vector<8x32xf32>
    %269 = arith.mulf %264, %268 : vector<8x32xf32>
    %270 = arith.index_cast %c2_i32 : i32 to index
    %c0_123 = arith.constant 0 : index
    %c0_124 = arith.constant 0 : index
    %271 = vector.load %arg31[%270, %c0_123, %c0_124] : memref<8x8x32xf32, #tpu.memory_space<vmem>>, vector<1x8x32xf32>
    %272 = vector.shape_cast %271 : vector<1x8x32xf32> to vector<8x32xf32>
    %273 = vector.shape_cast %239 : vector<8x32xf32> to vector<1x8x32xf32>
    tpu.vector_store %arg31[%270, %c0_123, %c0_124], %273 {strides = array<i32>} : memref<8x8x32xf32, #tpu.memory_space<vmem>>, vector<1x8x32xf32>,
    %274 = arith.index_cast %207 : i32 to index
    %c0_125 = arith.constant 0 : index
    %c0_126 = arith.constant 0 : index
    %275 = vector.load %arg32[%274, %c0_125, %c0_126] : memref<8x8x32xf32, #tpu.memory_space<vmem>>, vector<1x8x32xf32>
    %276 = vector.shape_cast %275 : vector<1x8x32xf32> to vector<8x32xf32>
    %277 = vector.shape_cast %269 : vector<8x32xf32> to vector<1x8x32xf32>
    tpu.vector_store %arg32[%274, %c0_125, %c0_126], %277 {strides = array<i32>} : memref<8x8x32xf32, #tpu.memory_space<vmem>>, vector<1x8x32xf32>,
    %278 = tpu.concatenate %239, %269 in 1 : vector<8x32xf32>, vector<8x32xf32> -> vector<8x64xf32>
    %c3_i32 = arith.constant 3 : i32
    %c7_i32_127 = arith.constant 7 : i32
    %279 = arith.subi %c7_i32_127, %c3_i32 : i32
    %280 = arith.truncf %278 : vector<8x64xf32> to vector<8x64xbf16>
    %cst_128 = arith.constant dense<0.000000e+00> : vector<8x256xf32>
    %281 = tpu.matmul %280, %60, %cst_128 {dimension_numbers = #tpu.dot_dimension_numbers<[1], [0], [0], [1], [0, 0, 1, 1], [], []>} : vector<8x64xbf16>, vector<64x256xbf16>, vector<8x256xf32> -> vector<8x256xf32>
    %282 = arith.index_cast %c3_i32 : i32 to index
    %c0_129 = arith.constant 0 : index
    %c0_130 = arith.constant 0 : index
    %283 = vector.load %arg29[%282, %c0_129, %c0_130] : memref<8x8x128xf32, #tpu.memory_space<vmem>>, vector<1x8x128xf32>
    %284 = vector.shape_cast %283 : vector<1x8x128xf32> to vector<8x128xf32>
    %285 = vector.extract_strided_slice %281 {offsets = [0, 0], sizes = [8, 128], strides = [1, 1]} : vector<8x256xf32> to vector<8x128xf32>
    %286 = arith.addf %284, %285 : vector<8x128xf32>
    %287 = vector.extract_strided_slice %286 {offsets = [0, 0], sizes = [8, 32], strides = [1, 1]} : vector<8x128xf32> to vector<8x32xf32>
    %288 = arith.negf %287 : vector<8x32xf32>
    %289 = math.exp %288 : vector<8x32xf32>
    %cst_131 = arith.constant 1.000000e+00 : f32
    %290 = vector.broadcast %cst_131 : f32 to vector<8x32xf32>
    %291 = arith.addf %290, %289 : vector<8x32xf32>
    %292 = arith.divf %290, %291 : vector<8x32xf32>
    %293 = vector.extract_strided_slice %286 {offsets = [0, 32], sizes = [8, 32], strides = [1, 1]} : vector<8x128xf32> to vector<8x32xf32>
    %294 = arith.negf %293 : vector<8x32xf32>
    %295 = math.exp %294 : vector<8x32xf32>
    %cst_132 = arith.constant 1.000000e+00 : f32
    %296 = vector.broadcast %cst_132 : f32 to vector<8x32xf32>
    %297 = arith.addf %296, %295 : vector<8x32xf32>
    %298 = arith.divf %296, %297 : vector<8x32xf32>
    %299 = vector.extract_strided_slice %286 {offsets = [0, 64], sizes = [8, 32], strides = [1, 1]} : vector<8x128xf32> to vector<8x32xf32>
    %300 = math.tanh %299 : vector<8x32xf32>
    %301 = vector.extract_strided_slice %286 {offsets = [0, 96], sizes = [8, 32], strides = [1, 1]} : vector<8x128xf32> to vector<8x32xf32>
    %302 = arith.negf %301 : vector<8x32xf32>
    %303 = math.exp %302 : vector<8x32xf32>
    %cst_133 = arith.constant 1.000000e+00 : f32
    %304 = vector.broadcast %cst_133 : f32 to vector<8x32xf32>
    %305 = arith.addf %304, %303 : vector<8x32xf32>
    %306 = arith.divf %304, %305 : vector<8x32xf32>
    %307 = arith.mulf %298, %237 : vector<8x32xf32>
    %308 = arith.mulf %292, %300 : vector<8x32xf32>
    %309 = arith.addf %307, %308 : vector<8x32xf32>
    %310 = math.tanh %309 : vector<8x32xf32>
    %311 = arith.mulf %306, %310 : vector<8x32xf32>
    %312 = arith.index_cast %279 : i32 to index
    %c0_134 = arith.constant 0 : index
    %c0_135 = arith.constant 0 : index
    %313 = vector.load %arg30[%312, %c0_134, %c0_135] : memref<8x8x128xf32, #tpu.memory_space<vmem>>, vector<1x8x128xf32>
    %314 = vector.shape_cast %313 : vector<1x8x128xf32> to vector<8x128xf32>
    %315 = vector.extract_strided_slice %281 {offsets = [0, 128], sizes = [8, 128], strides = [1, 1]} : vector<8x256xf32> to vector<8x128xf32>
    %316 = arith.addf %314, %315 : vector<8x128xf32>
    %317 = vector.extract_strided_slice %316 {offsets = [0, 0], sizes = [8, 32], strides = [1, 1]} : vector<8x128xf32> to vector<8x32xf32>
    %318 = arith.negf %317 : vector<8x32xf32>
    %319 = math.exp %318 : vector<8x32xf32>
    %cst_136 = arith.constant 1.000000e+00 : f32
    %320 = vector.broadcast %cst_136 : f32 to vector<8x32xf32>
    %321 = arith.addf %320, %319 : vector<8x32xf32>
    %322 = arith.divf %320, %321 : vector<8x32xf32>
    %323 = vector.extract_strided_slice %316 {offsets = [0, 32], sizes = [8, 32], strides = [1, 1]} : vector<8x128xf32> to vector<8x32xf32>
    %324 = arith.negf %323 : vector<8x32xf32>
    %325 = math.exp %324 : vector<8x32xf32>
    %cst_137 = arith.constant 1.000000e+00 : f32
    %326 = vector.broadcast %cst_137 : f32 to vector<8x32xf32>
    %327 = arith.addf %326, %325 : vector<8x32xf32>
    %328 = arith.divf %326, %327 : vector<8x32xf32>
    %329 = vector.extract_strided_slice %316 {offsets = [0, 64], sizes = [8, 32], strides = [1, 1]} : vector<8x128xf32> to vector<8x32xf32>
    %330 = math.tanh %329 : vector<8x32xf32>
    %331 = vector.extract_strided_slice %316 {offsets = [0, 96], sizes = [8, 32], strides = [1, 1]} : vector<8x128xf32> to vector<8x32xf32>
    %332 = arith.negf %331 : vector<8x32xf32>
    %333 = math.exp %332 : vector<8x32xf32>
    %cst_138 = arith.constant 1.000000e+00 : f32
    %334 = vector.broadcast %cst_138 : f32 to vector<8x32xf32>
    %335 = arith.addf %334, %333 : vector<8x32xf32>
    %336 = arith.divf %334, %335 : vector<8x32xf32>
    %337 = arith.mulf %328, %267 : vector<8x32xf32>
    %338 = arith.mulf %322, %330 : vector<8x32xf32>
    %339 = arith.addf %337, %338 : vector<8x32xf32>
    %340 = math.tanh %339 : vector<8x32xf32>
    %341 = arith.mulf %336, %340 : vector<8x32xf32>
    %342 = arith.index_cast %c3_i32 : i32 to index
    %c0_139 = arith.constant 0 : index
    %c0_140 = arith.constant 0 : index
    %343 = vector.load %arg31[%342, %c0_139, %c0_140] : memref<8x8x32xf32, #tpu.memory_space<vmem>>, vector<1x8x32xf32>
    %344 = vector.shape_cast %343 : vector<1x8x32xf32> to vector<8x32xf32>
    %345 = vector.shape_cast %311 : vector<8x32xf32> to vector<1x8x32xf32>
    tpu.vector_store %arg31[%342, %c0_139, %c0_140], %345 {strides = array<i32>} : memref<8x8x32xf32, #tpu.memory_space<vmem>>, vector<1x8x32xf32>,
    %346 = arith.index_cast %279 : i32 to index
    %c0_141 = arith.constant 0 : index
    %c0_142 = arith.constant 0 : index
    %347 = vector.load %arg32[%346, %c0_141, %c0_142] : memref<8x8x32xf32, #tpu.memory_space<vmem>>, vector<1x8x32xf32>
    %348 = vector.shape_cast %347 : vector<1x8x32xf32> to vector<8x32xf32>
    %349 = vector.shape_cast %341 : vector<8x32xf32> to vector<1x8x32xf32>
    tpu.vector_store %arg32[%346, %c0_141, %c0_142], %349 {strides = array<i32>} : memref<8x8x32xf32, #tpu.memory_space<vmem>>, vector<1x8x32xf32>,
    %350 = tpu.concatenate %311, %341 in 1 : vector<8x32xf32>, vector<8x32xf32> -> vector<8x64xf32>
    %c4_i32 = arith.constant 4 : i32
    %c7_i32_143 = arith.constant 7 : i32
    %351 = arith.subi %c7_i32_143, %c4_i32 : i32
    %352 = arith.truncf %350 : vector<8x64xf32> to vector<8x64xbf16>
    %cst_144 = arith.constant dense<0.000000e+00> : vector<8x256xf32>
    %353 = tpu.matmul %352, %60, %cst_144 {dimension_numbers = #tpu.dot_dimension_numbers<[1], [0], [0], [1], [0, 0, 1, 1], [], []>} : vector<8x64xbf16>, vector<64x256xbf16>, vector<8x256xf32> -> vector<8x256xf32>
    %354 = arith.index_cast %c4_i32 : i32 to index
    %c0_145 = arith.constant 0 : index
    %c0_146 = arith.constant 0 : index
    %355 = vector.load %arg29[%354, %c0_145, %c0_146] : memref<8x8x128xf32, #tpu.memory_space<vmem>>, vector<1x8x128xf32>
    %356 = vector.shape_cast %355 : vector<1x8x128xf32> to vector<8x128xf32>
    %357 = vector.extract_strided_slice %353 {offsets = [0, 0], sizes = [8, 128], strides = [1, 1]} : vector<8x256xf32> to vector<8x128xf32>
    %358 = arith.addf %356, %357 : vector<8x128xf32>
    %359 = vector.extract_strided_slice %358 {offsets = [0, 0], sizes = [8, 32], strides = [1, 1]} : vector<8x128xf32> to vector<8x32xf32>
    %360 = arith.negf %359 : vector<8x32xf32>
    %361 = math.exp %360 : vector<8x32xf32>
    %cst_147 = arith.constant 1.000000e+00 : f32
    %362 = vector.broadcast %cst_147 : f32 to vector<8x32xf32>
    %363 = arith.addf %362, %361 : vector<8x32xf32>
    %364 = arith.divf %362, %363 : vector<8x32xf32>
    %365 = vector.extract_strided_slice %358 {offsets = [0, 32], sizes = [8, 32], strides = [1, 1]} : vector<8x128xf32> to vector<8x32xf32>
    %366 = arith.negf %365 : vector<8x32xf32>
    %367 = math.exp %366 : vector<8x32xf32>
    %cst_148 = arith.constant 1.000000e+00 : f32
    %368 = vector.broadcast %cst_148 : f32 to vector<8x32xf32>
    %369 = arith.addf %368, %367 : vector<8x32xf32>
    %370 = arith.divf %368, %369 : vector<8x32xf32>
    %371 = vector.extract_strided_slice %358 {offsets = [0, 64], sizes = [8, 32], strides = [1, 1]} : vector<8x128xf32> to vector<8x32xf32>
    %372 = math.tanh %371 : vector<8x32xf32>
    %373 = vector.extract_strided_slice %358 {offsets = [0, 96], sizes = [8, 32], strides = [1, 1]} : vector<8x128xf32> to vector<8x32xf32>
    %374 = arith.negf %373 : vector<8x32xf32>
    %375 = math.exp %374 : vector<8x32xf32>
    %cst_149 = arith.constant 1.000000e+00 : f32
    %376 = vector.broadcast %cst_149 : f32 to vector<8x32xf32>
    %377 = arith.addf %376, %375 : vector<8x32xf32>
    %378 = arith.divf %376, %377 : vector<8x32xf32>
    %379 = arith.mulf %370, %309 : vector<8x32xf32>
    %380 = arith.mulf %364, %372 : vector<8x32xf32>
    %381 = arith.addf %379, %380 : vector<8x32xf32>
    %382 = math.tanh %381 : vector<8x32xf32>
    %383 = arith.mulf %378, %382 : vector<8x32xf32>
    %384 = arith.index_cast %351 : i32 to index
    %c0_150 = arith.constant 0 : index
    %c0_151 = arith.constant 0 : index
    %385 = vector.load %arg30[%384, %c0_150, %c0_151] : memref<8x8x128xf32, #tpu.memory_space<vmem>>, vector<1x8x128xf32>
    %386 = vector.shape_cast %385 : vector<1x8x128xf32> to vector<8x128xf32>
    %387 = vector.extract_strided_slice %353 {offsets = [0, 128], sizes = [8, 128], strides = [1, 1]} : vector<8x256xf32> to vector<8x128xf32>
    %388 = arith.addf %386, %387 : vector<8x128xf32>
    %389 = vector.extract_strided_slice %388 {offsets = [0, 0], sizes = [8, 32], strides = [1, 1]} : vector<8x128xf32> to vector<8x32xf32>
    %390 = arith.negf %389 : vector<8x32xf32>
    %391 = math.exp %390 : vector<8x32xf32>
    %cst_152 = arith.constant 1.000000e+00 : f32
    %392 = vector.broadcast %cst_152 : f32 to vector<8x32xf32>
    %393 = arith.addf %392, %391 : vector<8x32xf32>
    %394 = arith.divf %392, %393 : vector<8x32xf32>
    %395 = vector.extract_strided_slice %388 {offsets = [0, 32], sizes = [8, 32], strides = [1, 1]} : vector<8x128xf32> to vector<8x32xf32>
    %396 = arith.negf %395 : vector<8x32xf32>
    %397 = math.exp %396 : vector<8x32xf32>
    %cst_153 = arith.constant 1.000000e+00 : f32
    %398 = vector.broadcast %cst_153 : f32 to vector<8x32xf32>
    %399 = arith.addf %398, %397 : vector<8x32xf32>
    %400 = arith.divf %398, %399 : vector<8x32xf32>
    %401 = vector.extract_strided_slice %388 {offsets = [0, 64], sizes = [8, 32], strides = [1, 1]} : vector<8x128xf32> to vector<8x32xf32>
    %402 = math.tanh %401 : vector<8x32xf32>
    %403 = vector.extract_strided_slice %388 {offsets = [0, 96], sizes = [8, 32], strides = [1, 1]} : vector<8x128xf32> to vector<8x32xf32>
    %404 = arith.negf %403 : vector<8x32xf32>
    %405 = math.exp %404 : vector<8x32xf32>
    %cst_154 = arith.constant 1.000000e+00 : f32
    %406 = vector.broadcast %cst_154 : f32 to vector<8x32xf32>
    %407 = arith.addf %406, %405 : vector<8x32xf32>
    %408 = arith.divf %406, %407 : vector<8x32xf32>
    %409 = arith.mulf %400, %339 : vector<8x32xf32>
    %410 = arith.mulf %394, %402 : vector<8x32xf32>
    %411 = arith.addf %409, %410 : vector<8x32xf32>
    %412 = math.tanh %411 : vector<8x32xf32>
    %413 = arith.mulf %408, %412 : vector<8x32xf32>
    %414 = arith.index_cast %c4_i32 : i32 to index
    %c0_155 = arith.constant 0 : index
    %c0_156 = arith.constant 0 : index
    %415 = vector.load %arg31[%414, %c0_155, %c0_156] : memref<8x8x32xf32, #tpu.memory_space<vmem>>, vector<1x8x32xf32>
    %416 = vector.shape_cast %415 : vector<1x8x32xf32> to vector<8x32xf32>
    %417 = vector.shape_cast %383 : vector<8x32xf32> to vector<1x8x32xf32>
    tpu.vector_store %arg31[%414, %c0_155, %c0_156], %417 {strides = array<i32>} : memref<8x8x32xf32, #tpu.memory_space<vmem>>, vector<1x8x32xf32>,
    %418 = arith.index_cast %351 : i32 to index
    %c0_157 = arith.constant 0 : index
    %c0_158 = arith.constant 0 : index
    %419 = vector.load %arg32[%418, %c0_157, %c0_158] : memref<8x8x32xf32, #tpu.memory_space<vmem>>, vector<1x8x32xf32>
    %420 = vector.shape_cast %419 : vector<1x8x32xf32> to vector<8x32xf32>
    %421 = vector.shape_cast %413 : vector<8x32xf32> to vector<1x8x32xf32>
    tpu.vector_store %arg32[%418, %c0_157, %c0_158], %421 {strides = array<i32>} : memref<8x8x32xf32, #tpu.memory_space<vmem>>, vector<1x8x32xf32>,
    %422 = tpu.concatenate %383, %413 in 1 : vector<8x32xf32>, vector<8x32xf32> -> vector<8x64xf32>
    %c5_i32 = arith.constant 5 : i32
    %c7_i32_159 = arith.constant 7 : i32
    %423 = arith.subi %c7_i32_159, %c5_i32 : i32
    %424 = arith.truncf %422 : vector<8x64xf32> to vector<8x64xbf16>
    %cst_160 = arith.constant dense<0.000000e+00> : vector<8x256xf32>
    %425 = tpu.matmul %424, %60, %cst_160 {dimension_numbers = #tpu.dot_dimension_numbers<[1], [0], [0], [1], [0, 0, 1, 1], [], []>} : vector<8x64xbf16>, vector<64x256xbf16>, vector<8x256xf32> -> vector<8x256xf32>
    %426 = arith.index_cast %c5_i32 : i32 to index
    %c0_161 = arith.constant 0 : index
    %c0_162 = arith.constant 0 : index
    %427 = vector.load %arg29[%426, %c0_161, %c0_162] : memref<8x8x128xf32, #tpu.memory_space<vmem>>, vector<1x8x128xf32>
    %428 = vector.shape_cast %427 : vector<1x8x128xf32> to vector<8x128xf32>
    %429 = vector.extract_strided_slice %425 {offsets = [0, 0], sizes = [8, 128], strides = [1, 1]} : vector<8x256xf32> to vector<8x128xf32>
    %430 = arith.addf %428, %429 : vector<8x128xf32>
    %431 = vector.extract_strided_slice %430 {offsets = [0, 0], sizes = [8, 32], strides = [1, 1]} : vector<8x128xf32> to vector<8x32xf32>
    %432 = arith.negf %431 : vector<8x32xf32>
    %433 = math.exp %432 : vector<8x32xf32>
    %cst_163 = arith.constant 1.000000e+00 : f32
    %434 = vector.broadcast %cst_163 : f32 to vector<8x32xf32>
    %435 = arith.addf %434, %433 : vector<8x32xf32>
    %436 = arith.divf %434, %435 : vector<8x32xf32>
    %437 = vector.extract_strided_slice %430 {offsets = [0, 32], sizes = [8, 32], strides = [1, 1]} : vector<8x128xf32> to vector<8x32xf32>
    %438 = arith.negf %437 : vector<8x32xf32>
    %439 = math.exp %438 : vector<8x32xf32>
    %cst_164 = arith.constant 1.000000e+00 : f32
    %440 = vector.broadcast %cst_164 : f32 to vector<8x32xf32>
    %441 = arith.addf %440, %439 : vector<8x32xf32>
    %442 = arith.divf %440, %441 : vector<8x32xf32>
    %443 = vector.extract_strided_slice %430 {offsets = [0, 64], sizes = [8, 32], strides = [1, 1]} : vector<8x128xf32> to vector<8x32xf32>
    %444 = math.tanh %443 : vector<8x32xf32>
    %445 = vector.extract_strided_slice %430 {offsets = [0, 96], sizes = [8, 32], strides = [1, 1]} : vector<8x128xf32> to vector<8x32xf32>
    %446 = arith.negf %445 : vector<8x32xf32>
    %447 = math.exp %446 : vector<8x32xf32>
    %cst_165 = arith.constant 1.000000e+00 : f32
    %448 = vector.broadcast %cst_165 : f32 to vector<8x32xf32>
    %449 = arith.addf %448, %447 : vector<8x32xf32>
    %450 = arith.divf %448, %449 : vector<8x32xf32>
    %451 = arith.mulf %442, %381 : vector<8x32xf32>
    %452 = arith.mulf %436, %444 : vector<8x32xf32>
    %453 = arith.addf %451, %452 : vector<8x32xf32>
    %454 = math.tanh %453 : vector<8x32xf32>
    %455 = arith.mulf %450, %454 : vector<8x32xf32>
    %456 = arith.index_cast %423 : i32 to index
    %c0_166 = arith.constant 0 : index
    %c0_167 = arith.constant 0 : index
    %457 = vector.load %arg30[%456, %c0_166, %c0_167] : memref<8x8x128xf32, #tpu.memory_space<vmem>>, vector<1x8x128xf32>
    %458 = vector.shape_cast %457 : vector<1x8x128xf32> to vector<8x128xf32>
    %459 = vector.extract_strided_slice %425 {offsets = [0, 128], sizes = [8, 128], strides = [1, 1]} : vector<8x256xf32> to vector<8x128xf32>
    %460 = arith.addf %458, %459 : vector<8x128xf32>
    %461 = vector.extract_strided_slice %460 {offsets = [0, 0], sizes = [8, 32], strides = [1, 1]} : vector<8x128xf32> to vector<8x32xf32>
    %462 = arith.negf %461 : vector<8x32xf32>
    %463 = math.exp %462 : vector<8x32xf32>
    %cst_168 = arith.constant 1.000000e+00 : f32
    %464 = vector.broadcast %cst_168 : f32 to vector<8x32xf32>
    %465 = arith.addf %464, %463 : vector<8x32xf32>
    %466 = arith.divf %464, %465 : vector<8x32xf32>
    %467 = vector.extract_strided_slice %460 {offsets = [0, 32], sizes = [8, 32], strides = [1, 1]} : vector<8x128xf32> to vector<8x32xf32>
    %468 = arith.negf %467 : vector<8x32xf32>
    %469 = math.exp %468 : vector<8x32xf32>
    %cst_169 = arith.constant 1.000000e+00 : f32
    %470 = vector.broadcast %cst_169 : f32 to vector<8x32xf32>
    %471 = arith.addf %470, %469 : vector<8x32xf32>
    %472 = arith.divf %470, %471 : vector<8x32xf32>
    %473 = vector.extract_strided_slice %460 {offsets = [0, 64], sizes = [8, 32], strides = [1, 1]} : vector<8x128xf32> to vector<8x32xf32>
    %474 = math.tanh %473 : vector<8x32xf32>
    %475 = vector.extract_strided_slice %460 {offsets = [0, 96], sizes = [8, 32], strides = [1, 1]} : vector<8x128xf32> to vector<8x32xf32>
    %476 = arith.negf %475 : vector<8x32xf32>
    %477 = math.exp %476 : vector<8x32xf32>
    %cst_170 = arith.constant 1.000000e+00 : f32
    %478 = vector.broadcast %cst_170 : f32 to vector<8x32xf32>
    %479 = arith.addf %478, %477 : vector<8x32xf32>
    %480 = arith.divf %478, %479 : vector<8x32xf32>
    %481 = arith.mulf %472, %411 : vector<8x32xf32>
    %482 = arith.mulf %466, %474 : vector<8x32xf32>
    %483 = arith.addf %481, %482 : vector<8x32xf32>
    %484 = math.tanh %483 : vector<8x32xf32>
    %485 = arith.mulf %480, %484 : vector<8x32xf32>
    %486 = arith.index_cast %c5_i32 : i32 to index
    %c0_171 = arith.constant 0 : index
    %c0_172 = arith.constant 0 : index
    %487 = vector.load %arg31[%486, %c0_171, %c0_172] : memref<8x8x32xf32, #tpu.memory_space<vmem>>, vector<1x8x32xf32>
    %488 = vector.shape_cast %487 : vector<1x8x32xf32> to vector<8x32xf32>
    %489 = vector.shape_cast %455 : vector<8x32xf32> to vector<1x8x32xf32>
    tpu.vector_store %arg31[%486, %c0_171, %c0_172], %489 {strides = array<i32>} : memref<8x8x32xf32, #tpu.memory_space<vmem>>, vector<1x8x32xf32>,
    %490 = arith.index_cast %423 : i32 to index
    %c0_173 = arith.constant 0 : index
    %c0_174 = arith.constant 0 : index
    %491 = vector.load %arg32[%490, %c0_173, %c0_174] : memref<8x8x32xf32, #tpu.memory_space<vmem>>, vector<1x8x32xf32>
    %492 = vector.shape_cast %491 : vector<1x8x32xf32> to vector<8x32xf32>
    %493 = vector.shape_cast %485 : vector<8x32xf32> to vector<1x8x32xf32>
    tpu.vector_store %arg32[%490, %c0_173, %c0_174], %493 {strides = array<i32>} : memref<8x8x32xf32, #tpu.memory_space<vmem>>, vector<1x8x32xf32>,
    %494 = tpu.concatenate %455, %485 in 1 : vector<8x32xf32>, vector<8x32xf32> -> vector<8x64xf32>
    %c6_i32 = arith.constant 6 : i32
    %c7_i32_175 = arith.constant 7 : i32
    %495 = arith.subi %c7_i32_175, %c6_i32 : i32
    %496 = arith.truncf %494 : vector<8x64xf32> to vector<8x64xbf16>
    %cst_176 = arith.constant dense<0.000000e+00> : vector<8x256xf32>
    %497 = tpu.matmul %496, %60, %cst_176 {dimension_numbers = #tpu.dot_dimension_numbers<[1], [0], [0], [1], [0, 0, 1, 1], [], []>} : vector<8x64xbf16>, vector<64x256xbf16>, vector<8x256xf32> -> vector<8x256xf32>
    %498 = arith.index_cast %c6_i32 : i32 to index
    %c0_177 = arith.constant 0 : index
    %c0_178 = arith.constant 0 : index
    %499 = vector.load %arg29[%498, %c0_177, %c0_178] : memref<8x8x128xf32, #tpu.memory_space<vmem>>, vector<1x8x128xf32>
    %500 = vector.shape_cast %499 : vector<1x8x128xf32> to vector<8x128xf32>
    %501 = vector.extract_strided_slice %497 {offsets = [0, 0], sizes = [8, 128], strides = [1, 1]} : vector<8x256xf32> to vector<8x128xf32>
    %502 = arith.addf %500, %501 : vector<8x128xf32>
    %503 = vector.extract_strided_slice %502 {offsets = [0, 0], sizes = [8, 32], strides = [1, 1]} : vector<8x128xf32> to vector<8x32xf32>
    %504 = arith.negf %503 : vector<8x32xf32>
    %505 = math.exp %504 : vector<8x32xf32>
    %cst_179 = arith.constant 1.000000e+00 : f32
    %506 = vector.broadcast %cst_179 : f32 to vector<8x32xf32>
    %507 = arith.addf %506, %505 : vector<8x32xf32>
    %508 = arith.divf %506, %507 : vector<8x32xf32>
    %509 = vector.extract_strided_slice %502 {offsets = [0, 32], sizes = [8, 32], strides = [1, 1]} : vector<8x128xf32> to vector<8x32xf32>
    %510 = arith.negf %509 : vector<8x32xf32>
    %511 = math.exp %510 : vector<8x32xf32>
    %cst_180 = arith.constant 1.000000e+00 : f32
    %512 = vector.broadcast %cst_180 : f32 to vector<8x32xf32>
    %513 = arith.addf %512, %511 : vector<8x32xf32>
    %514 = arith.divf %512, %513 : vector<8x32xf32>
    %515 = vector.extract_strided_slice %502 {offsets = [0, 64], sizes = [8, 32], strides = [1, 1]} : vector<8x128xf32> to vector<8x32xf32>
    %516 = math.tanh %515 : vector<8x32xf32>
    %517 = vector.extract_strided_slice %502 {offsets = [0, 96], sizes = [8, 32], strides = [1, 1]} : vector<8x128xf32> to vector<8x32xf32>
    %518 = arith.negf %517 : vector<8x32xf32>
    %519 = math.exp %518 : vector<8x32xf32>
    %cst_181 = arith.constant 1.000000e+00 : f32
    %520 = vector.broadcast %cst_181 : f32 to vector<8x32xf32>
    %521 = arith.addf %520, %519 : vector<8x32xf32>
    %522 = arith.divf %520, %521 : vector<8x32xf32>
    %523 = arith.mulf %514, %453 : vector<8x32xf32>
    %524 = arith.mulf %508, %516 : vector<8x32xf32>
    %525 = arith.addf %523, %524 : vector<8x32xf32>
    %526 = math.tanh %525 : vector<8x32xf32>
    %527 = arith.mulf %522, %526 : vector<8x32xf32>
    %528 = arith.index_cast %495 : i32 to index
    %c0_182 = arith.constant 0 : index
    %c0_183 = arith.constant 0 : index
    %529 = vector.load %arg30[%528, %c0_182, %c0_183] : memref<8x8x128xf32, #tpu.memory_space<vmem>>, vector<1x8x128xf32>
    %530 = vector.shape_cast %529 : vector<1x8x128xf32> to vector<8x128xf32>
    %531 = vector.extract_strided_slice %497 {offsets = [0, 128], sizes = [8, 128], strides = [1, 1]} : vector<8x256xf32> to vector<8x128xf32>
    %532 = arith.addf %530, %531 : vector<8x128xf32>
    %533 = vector.extract_strided_slice %532 {offsets = [0, 0], sizes = [8, 32], strides = [1, 1]} : vector<8x128xf32> to vector<8x32xf32>
    %534 = arith.negf %533 : vector<8x32xf32>
    %535 = math.exp %534 : vector<8x32xf32>
    %cst_184 = arith.constant 1.000000e+00 : f32
    %536 = vector.broadcast %cst_184 : f32 to vector<8x32xf32>
    %537 = arith.addf %536, %535 : vector<8x32xf32>
    %538 = arith.divf %536, %537 : vector<8x32xf32>
    %539 = vector.extract_strided_slice %532 {offsets = [0, 32], sizes = [8, 32], strides = [1, 1]} : vector<8x128xf32> to vector<8x32xf32>
    %540 = arith.negf %539 : vector<8x32xf32>
    %541 = math.exp %540 : vector<8x32xf32>
    %cst_185 = arith.constant 1.000000e+00 : f32
    %542 = vector.broadcast %cst_185 : f32 to vector<8x32xf32>
    %543 = arith.addf %542, %541 : vector<8x32xf32>
    %544 = arith.divf %542, %543 : vector<8x32xf32>
    %545 = vector.extract_strided_slice %532 {offsets = [0, 64], sizes = [8, 32], strides = [1, 1]} : vector<8x128xf32> to vector<8x32xf32>
    %546 = math.tanh %545 : vector<8x32xf32>
    %547 = vector.extract_strided_slice %532 {offsets = [0, 96], sizes = [8, 32], strides = [1, 1]} : vector<8x128xf32> to vector<8x32xf32>
    %548 = arith.negf %547 : vector<8x32xf32>
    %549 = math.exp %548 : vector<8x32xf32>
    %cst_186 = arith.constant 1.000000e+00 : f32
    %550 = vector.broadcast %cst_186 : f32 to vector<8x32xf32>
    %551 = arith.addf %550, %549 : vector<8x32xf32>
    %552 = arith.divf %550, %551 : vector<8x32xf32>
    %553 = arith.mulf %544, %483 : vector<8x32xf32>
    %554 = arith.mulf %538, %546 : vector<8x32xf32>
    %555 = arith.addf %553, %554 : vector<8x32xf32>
    %556 = math.tanh %555 : vector<8x32xf32>
    %557 = arith.mulf %552, %556 : vector<8x32xf32>
    %558 = arith.index_cast %c6_i32 : i32 to index
    %c0_187 = arith.constant 0 : index
    %c0_188 = arith.constant 0 : index
    %559 = vector.load %arg31[%558, %c0_187, %c0_188] : memref<8x8x32xf32, #tpu.memory_space<vmem>>, vector<1x8x32xf32>
    %560 = vector.shape_cast %559 : vector<1x8x32xf32> to vector<8x32xf32>
    %561 = vector.shape_cast %527 : vector<8x32xf32> to vector<1x8x32xf32>
    tpu.vector_store %arg31[%558, %c0_187, %c0_188], %561 {strides = array<i32>} : memref<8x8x32xf32, #tpu.memory_space<vmem>>, vector<1x8x32xf32>,
    %562 = arith.index_cast %495 : i32 to index
    %c0_189 = arith.constant 0 : index
    %c0_190 = arith.constant 0 : index
    %563 = vector.load %arg32[%562, %c0_189, %c0_190] : memref<8x8x32xf32, #tpu.memory_space<vmem>>, vector<1x8x32xf32>
    %564 = vector.shape_cast %563 : vector<1x8x32xf32> to vector<8x32xf32>
    %565 = vector.shape_cast %557 : vector<8x32xf32> to vector<1x8x32xf32>
    tpu.vector_store %arg32[%562, %c0_189, %c0_190], %565 {strides = array<i32>} : memref<8x8x32xf32, #tpu.memory_space<vmem>>, vector<1x8x32xf32>,
    %566 = tpu.concatenate %527, %557 in 1 : vector<8x32xf32>, vector<8x32xf32> -> vector<8x64xf32>
    %c7_i32_191 = arith.constant 7 : i32
    %c7_i32_192 = arith.constant 7 : i32
    %567 = arith.subi %c7_i32_192, %c7_i32_191 : i32
    %568 = arith.truncf %566 : vector<8x64xf32> to vector<8x64xbf16>
    %cst_193 = arith.constant dense<0.000000e+00> : vector<8x256xf32>
    %569 = tpu.matmul %568, %60, %cst_193 {dimension_numbers = #tpu.dot_dimension_numbers<[1], [0], [0], [1], [0, 0, 1, 1], [], []>} : vector<8x64xbf16>, vector<64x256xbf16>, vector<8x256xf32> -> vector<8x256xf32>
    %570 = arith.index_cast %c7_i32_191 : i32 to index
    %c0_194 = arith.constant 0 : index
    %c0_195 = arith.constant 0 : index
    %571 = vector.load %arg29[%570, %c0_194, %c0_195] : memref<8x8x128xf32, #tpu.memory_space<vmem>>, vector<1x8x128xf32>
    %572 = vector.shape_cast %571 : vector<1x8x128xf32> to vector<8x128xf32>
    %573 = vector.extract_strided_slice %569 {offsets = [0, 0], sizes = [8, 128], strides = [1, 1]} : vector<8x256xf32> to vector<8x128xf32>
    %574 = arith.addf %572, %573 : vector<8x128xf32>
    %575 = vector.extract_strided_slice %574 {offsets = [0, 0], sizes = [8, 32], strides = [1, 1]} : vector<8x128xf32> to vector<8x32xf32>
    %576 = arith.negf %575 : vector<8x32xf32>
    %577 = math.exp %576 : vector<8x32xf32>
    %cst_196 = arith.constant 1.000000e+00 : f32
    %578 = vector.broadcast %cst_196 : f32 to vector<8x32xf32>
    %579 = arith.addf %578, %577 : vector<8x32xf32>
    %580 = arith.divf %578, %579 : vector<8x32xf32>
    %581 = vector.extract_strided_slice %574 {offsets = [0, 32], sizes = [8, 32], strides = [1, 1]} : vector<8x128xf32> to vector<8x32xf32>
    %582 = arith.negf %581 : vector<8x32xf32>
    %583 = math.exp %582 : vector<8x32xf32>
    %cst_197 = arith.constant 1.000000e+00 : f32
    %584 = vector.broadcast %cst_197 : f32 to vector<8x32xf32>
    %585 = arith.addf %584, %583 : vector<8x32xf32>
    %586 = arith.divf %584, %585 : vector<8x32xf32>
    %587 = vector.extract_strided_slice %574 {offsets = [0, 64], sizes = [8, 32], strides = [1, 1]} : vector<8x128xf32> to vector<8x32xf32>
    %588 = math.tanh %587 : vector<8x32xf32>
    %589 = vector.extract_strided_slice %574 {offsets = [0, 96], sizes = [8, 32], strides = [1, 1]} : vector<8x128xf32> to vector<8x32xf32>
    %590 = arith.negf %589 : vector<8x32xf32>
    %591 = math.exp %590 : vector<8x32xf32>
    %cst_198 = arith.constant 1.000000e+00 : f32
    %592 = vector.broadcast %cst_198 : f32 to vector<8x32xf32>
    %593 = arith.addf %592, %591 : vector<8x32xf32>
    %594 = arith.divf %592, %593 : vector<8x32xf32>
    %595 = arith.mulf %586, %525 : vector<8x32xf32>
    %596 = arith.mulf %580, %588 : vector<8x32xf32>
    %597 = arith.addf %595, %596 : vector<8x32xf32>
    %598 = math.tanh %597 : vector<8x32xf32>
    %599 = arith.mulf %594, %598 : vector<8x32xf32>
    %600 = arith.index_cast %567 : i32 to index
    %c0_199 = arith.constant 0 : index
    %c0_200 = arith.constant 0 : index
    %601 = vector.load %arg30[%600, %c0_199, %c0_200] : memref<8x8x128xf32, #tpu.memory_space<vmem>>, vector<1x8x128xf32>
    %602 = vector.shape_cast %601 : vector<1x8x128xf32> to vector<8x128xf32>
    %603 = vector.extract_strided_slice %569 {offsets = [0, 128], sizes = [8, 128], strides = [1, 1]} : vector<8x256xf32> to vector<8x128xf32>
    %604 = arith.addf %602, %603 : vector<8x128xf32>
    %605 = vector.extract_strided_slice %604 {offsets = [0, 0], sizes = [8, 32], strides = [1, 1]} : vector<8x128xf32> to vector<8x32xf32>
    %606 = arith.negf %605 : vector<8x32xf32>
    %607 = math.exp %606 : vector<8x32xf32>
    %cst_201 = arith.constant 1.000000e+00 : f32
    %608 = vector.broadcast %cst_201 : f32 to vector<8x32xf32>
    %609 = arith.addf %608, %607 : vector<8x32xf32>
    %610 = arith.divf %608, %609 : vector<8x32xf32>
    %611 = vector.extract_strided_slice %604 {offsets = [0, 32], sizes = [8, 32], strides = [1, 1]} : vector<8x128xf32> to vector<8x32xf32>
    %612 = arith.negf %611 : vector<8x32xf32>
    %613 = math.exp %612 : vector<8x32xf32>
    %cst_202 = arith.constant 1.000000e+00 : f32
    %614 = vector.broadcast %cst_202 : f32 to vector<8x32xf32>
    %615 = arith.addf %614, %613 : vector<8x32xf32>
    %616 = arith.divf %614, %615 : vector<8x32xf32>
    %617 = vector.extract_strided_slice %604 {offsets = [0, 64], sizes = [8, 32], strides = [1, 1]} : vector<8x128xf32> to vector<8x32xf32>
    %618 = math.tanh %617 : vector<8x32xf32>
    %619 = vector.extract_strided_slice %604 {offsets = [0, 96], sizes = [8, 32], strides = [1, 1]} : vector<8x128xf32> to vector<8x32xf32>
    %620 = arith.negf %619 : vector<8x32xf32>
    %621 = math.exp %620 : vector<8x32xf32>
    %cst_203 = arith.constant 1.000000e+00 : f32
    %622 = vector.broadcast %cst_203 : f32 to vector<8x32xf32>
    %623 = arith.addf %622, %621 : vector<8x32xf32>
    %624 = arith.divf %622, %623 : vector<8x32xf32>
    %625 = arith.mulf %616, %555 : vector<8x32xf32>
    %626 = arith.mulf %610, %618 : vector<8x32xf32>
    %627 = arith.addf %625, %626 : vector<8x32xf32>
    %628 = math.tanh %627 : vector<8x32xf32>
    %629 = arith.mulf %624, %628 : vector<8x32xf32>
    %630 = arith.index_cast %c7_i32_191 : i32 to index
    %c0_204 = arith.constant 0 : index
    %c0_205 = arith.constant 0 : index
    %631 = vector.load %arg31[%630, %c0_204, %c0_205] : memref<8x8x32xf32, #tpu.memory_space<vmem>>, vector<1x8x32xf32>
    %632 = vector.shape_cast %631 : vector<1x8x32xf32> to vector<8x32xf32>
    %633 = vector.shape_cast %599 : vector<8x32xf32> to vector<1x8x32xf32>
    tpu.vector_store %arg31[%630, %c0_204, %c0_205], %633 {strides = array<i32>} : memref<8x8x32xf32, #tpu.memory_space<vmem>>, vector<1x8x32xf32>,
    %634 = arith.index_cast %567 : i32 to index
    %c0_206 = arith.constant 0 : index
    %c0_207 = arith.constant 0 : index
    %635 = vector.load %arg32[%634, %c0_206, %c0_207] : memref<8x8x32xf32, #tpu.memory_space<vmem>>, vector<1x8x32xf32>
    %636 = vector.shape_cast %635 : vector<1x8x32xf32> to vector<8x32xf32>
    %637 = vector.shape_cast %629 : vector<8x32xf32> to vector<1x8x32xf32>
    tpu.vector_store %arg32[%634, %c0_206, %c0_207], %637 {strides = array<i32>} : memref<8x8x32xf32, #tpu.memory_space<vmem>>, vector<1x8x32xf32>,
    %638 = tpu.concatenate %599, %629 in 1 : vector<8x32xf32>, vector<8x32xf32> -> vector<8x64xf32>
    %c8_i32 = arith.constant 8 : i32
    %c0_208 = arith.constant 0 : index
    %c0_209 = arith.constant 0 : index
    %c0_210 = arith.constant 0 : index
    %639 = vector.load %arg31[%c0_208, %c0_209, %c0_210] : memref<8x8x32xf32, #tpu.memory_space<vmem>>, vector<8x8x32xf32>
    %c0_211 = arith.constant 0 : index
    %c0_212 = arith.constant 0 : index
    %c0_213 = arith.constant 0 : index
    %640 = vector.load %arg32[%c0_211, %c0_212, %c0_213] : memref<8x8x32xf32, #tpu.memory_space<vmem>>, vector<8x8x32xf32>
    %641 = tpu.concatenate %639, %640 in 2 : vector<8x8x32xf32>, vector<8x8x32xf32> -> vector<8x8x64xf32>
    %642 = arith.truncf %641 : vector<8x8x64xf32> to vector<8x8x64xbf16>
    %c0_214 = arith.constant 0 : index
    %c0_215 = arith.constant 0 : index
    %643 = vector.load %arg15[%c0_214, %c0_215] : memref<64x128xbf16, #tpu.memory_space<vmem>>, vector<64x128xbf16>
    "tpu.trace_start"() <{level = 10 : i32, message = "lbh,hk->lbk"}> : () -> ()
    %cst_216 = arith.constant dense<0.000000e+00> : vector<8x8x128xf32>
    %644 = tpu.matmul %642, %643, %cst_216 {dimension_numbers = #tpu.dot_dimension_numbers<[2], [0], [0, 1], [1], [0, 0, 0, 1, 1, 1], [], []>} : vector<8x8x64xbf16>, vector<64x128xbf16>, vector<8x8x128xf32> -> vector<8x8x128xf32>
    "tpu.trace_stop"() : () -> ()
    %c0_217 = arith.constant 0 : index
    %c0_218 = arith.constant 0 : index
    %645 = vector.load %arg17[%c0_217, %c0_218] : memref<1x128xf32, #tpu.memory_space<vmem>>, vector<1x128xf32>
    %646 = vector.shape_cast %645 : vector<1x128xf32> to vector<1x1x128xf32>
    %647 = vector.broadcast %646 : vector<1x1x128xf32> to vector<8x8x128xf32>
    %648 = arith.addf %644, %647 : vector<8x8x128xf32>
    %c0_219 = arith.constant 0 : index
    %c0_220 = arith.constant 0 : index
    %c0_221 = arith.constant 0 : index
    %649 = vector.load %arg29[%c0_219, %c0_220, %c0_221] : memref<8x8x128xf32, #tpu.memory_space<vmem>>, vector<8x8x128xf32>
    tpu.vector_store %arg29[%c0_219, %c0_220, %c0_221], %648 {strides = array<i32>} : memref<8x8x128xf32, #tpu.memory_space<vmem>>, vector<8x8x128xf32>,
    %c0_222 = arith.constant 0 : index
    %c0_223 = arith.constant 0 : index
    %650 = vector.load %arg16[%c0_222, %c0_223] : memref<64x128xbf16, #tpu.memory_space<vmem>>, vector<64x128xbf16>
    "tpu.trace_start"() <{level = 10 : i32, message = "lbh,hk->lbk"}> : () -> ()
    %cst_224 = arith.constant dense<0.000000e+00> : vector<8x8x128xf32>
    %651 = tpu.matmul %642, %650, %cst_224 {dimension_numbers = #tpu.dot_dimension_numbers<[2], [0], [0, 1], [1], [0, 0, 0, 1, 1, 1], [], []>} : vector<8x8x64xbf16>, vector<64x128xbf16>, vector<8x8x128xf32> -> vector<8x8x128xf32>
    "tpu.trace_stop"() : () -> ()
    %c0_225 = arith.constant 0 : index
    %c0_226 = arith.constant 0 : index
    %652 = vector.load %arg18[%c0_225, %c0_226] : memref<1x128xf32, #tpu.memory_space<vmem>>, vector<1x128xf32>
    %653 = vector.shape_cast %652 : vector<1x128xf32> to vector<1x1x128xf32>
    %654 = vector.broadcast %653 : vector<1x1x128xf32> to vector<8x8x128xf32>
    %655 = arith.addf %651, %654 : vector<8x8x128xf32>
    %c0_227 = arith.constant 0 : index
    %c0_228 = arith.constant 0 : index
    %c0_229 = arith.constant 0 : index
    %656 = vector.load %arg30[%c0_227, %c0_228, %c0_229] : memref<8x8x128xf32, #tpu.memory_space<vmem>>, vector<8x8x128xf32>
    tpu.vector_store %arg30[%c0_227, %c0_228, %c0_229], %655 {strides = array<i32>} : memref<8x8x128xf32, #tpu.memory_space<vmem>>, vector<8x8x128xf32>,
    %c0_230 = arith.constant 0 : index
    %c0_231 = arith.constant 0 : index
    %657 = vector.load %arg19[%c0_230, %c0_231] : memref<64x256xbf16, #tpu.memory_space<vmem>>, vector<64x256xbf16>
    %cst_232 = arith.constant 0.000000e+00 : f32
    %658 = vector.broadcast %cst_232 : f32 to vector<8x64xf32>
    %cst_233 = arith.constant 0.000000e+00 : f32
    %659 = vector.broadcast %cst_233 : f32 to vector<8x32xf32>
    %c0_i32_234 = arith.constant 0 : i32
    %c7_i32_235 = arith.constant 7 : i32
    %660 = arith.subi %c7_i32_235, %c0_i32_234 : i32
    %661 = arith.truncf %658 : vector<8x64xf32> to vector<8x64xbf16>
    %cst_236 = arith.constant dense<0.000000e+00> : vector<8x256xf32>
    %662 = tpu.matmul %661, %657, %cst_236 {dimension_numbers = #tpu.dot_dimension_numbers<[1], [0], [0], [1], [0, 0, 1, 1], [], []>} : vector<8x64xbf16>, vector<64x256xbf16>, vector<8x256xf32> -> vector<8x256xf32>
    %663 = arith.index_cast %c0_i32_234 : i32 to index
    %c0_237 = arith.constant 0 : index
    %c0_238 = arith.constant 0 : index
    %664 = vector.load %arg29[%663, %c0_237, %c0_238] : memref<8x8x128xf32, #tpu.memory_space<vmem>>, vector<1x8x128xf32>
    %665 = vector.shape_cast %664 : vector<1x8x128xf32> to vector<8x128xf32>
    %666 = vector.extract_strided_slice %662 {offsets = [0, 0], sizes = [8, 128], strides = [1, 1]} : vector<8x256xf32> to vector<8x128xf32>
    %667 = arith.addf %665, %666 : vector<8x128xf32>
    %668 = vector.extract_strided_slice %667 {offsets = [0, 0], sizes = [8, 32], strides = [1, 1]} : vector<8x128xf32> to vector<8x32xf32>
    %669 = arith.negf %668 : vector<8x32xf32>
    %670 = math.exp %669 : vector<8x32xf32>
    %cst_239 = arith.constant 1.000000e+00 : f32
    %671 = vector.broadcast %cst_239 : f32 to vector<8x32xf32>
    %672 = arith.addf %671, %670 : vector<8x32xf32>
    %673 = arith.divf %671, %672 : vector<8x32xf32>
    %674 = vector.extract_strided_slice %667 {offsets = [0, 32], sizes = [8, 32], strides = [1, 1]} : vector<8x128xf32> to vector<8x32xf32>
    %675 = arith.negf %674 : vector<8x32xf32>
    %676 = math.exp %675 : vector<8x32xf32>
    %cst_240 = arith.constant 1.000000e+00 : f32
    %677 = vector.broadcast %cst_240 : f32 to vector<8x32xf32>
    %678 = arith.addf %677, %676 : vector<8x32xf32>
    %679 = arith.divf %677, %678 : vector<8x32xf32>
    %680 = vector.extract_strided_slice %667 {offsets = [0, 64], sizes = [8, 32], strides = [1, 1]} : vector<8x128xf32> to vector<8x32xf32>
    %681 = math.tanh %680 : vector<8x32xf32>
    %682 = vector.extract_strided_slice %667 {offsets = [0, 96], sizes = [8, 32], strides = [1, 1]} : vector<8x128xf32> to vector<8x32xf32>
    %683 = arith.negf %682 : vector<8x32xf32>
    %684 = math.exp %683 : vector<8x32xf32>
    %cst_241 = arith.constant 1.000000e+00 : f32
    %685 = vector.broadcast %cst_241 : f32 to vector<8x32xf32>
    %686 = arith.addf %685, %684 : vector<8x32xf32>
    %687 = arith.divf %685, %686 : vector<8x32xf32>
    %688 = arith.mulf %679, %659 : vector<8x32xf32>
    %689 = arith.mulf %673, %681 : vector<8x32xf32>
    %690 = arith.addf %688, %689 : vector<8x32xf32>
    %691 = math.tanh %690 : vector<8x32xf32>
    %692 = arith.mulf %687, %691 : vector<8x32xf32>
    %693 = arith.index_cast %660 : i32 to index
    %c0_242 = arith.constant 0 : index
    %c0_243 = arith.constant 0 : index
    %694 = vector.load %arg30[%693, %c0_242, %c0_243] : memref<8x8x128xf32, #tpu.memory_space<vmem>>, vector<1x8x128xf32>
    %695 = vector.shape_cast %694 : vector<1x8x128xf32> to vector<8x128xf32>
    %696 = vector.extract_strided_slice %662 {offsets = [0, 128], sizes = [8, 128], strides = [1, 1]} : vector<8x256xf32> to vector<8x128xf32>
    %697 = arith.addf %695, %696 : vector<8x128xf32>
    %698 = vector.extract_strided_slice %697 {offsets = [0, 0], sizes = [8, 32], strides = [1, 1]} : vector<8x128xf32> to vector<8x32xf32>
    %699 = arith.negf %698 : vector<8x32xf32>
    %700 = math.exp %699 : vector<8x32xf32>
    %cst_244 = arith.constant 1.000000e+00 : f32
    %701 = vector.broadcast %cst_244 : f32 to vector<8x32xf32>
    %702 = arith.addf %701, %700 : vector<8x32xf32>
    %703 = arith.divf %701, %702 : vector<8x32xf32>
    %704 = vector.extract_strided_slice %697 {offsets = [0, 32], sizes = [8, 32], strides = [1, 1]} : vector<8x128xf32> to vector<8x32xf32>
    %705 = arith.negf %704 : vector<8x32xf32>
    %706 = math.exp %705 : vector<8x32xf32>
    %cst_245 = arith.constant 1.000000e+00 : f32
    %707 = vector.broadcast %cst_245 : f32 to vector<8x32xf32>
    %708 = arith.addf %707, %706 : vector<8x32xf32>
    %709 = arith.divf %707, %708 : vector<8x32xf32>
    %710 = vector.extract_strided_slice %697 {offsets = [0, 64], sizes = [8, 32], strides = [1, 1]} : vector<8x128xf32> to vector<8x32xf32>
    %711 = math.tanh %710 : vector<8x32xf32>
    %712 = vector.extract_strided_slice %697 {offsets = [0, 96], sizes = [8, 32], strides = [1, 1]} : vector<8x128xf32> to vector<8x32xf32>
    %713 = arith.negf %712 : vector<8x32xf32>
    %714 = math.exp %713 : vector<8x32xf32>
    %cst_246 = arith.constant 1.000000e+00 : f32
    %715 = vector.broadcast %cst_246 : f32 to vector<8x32xf32>
    %716 = arith.addf %715, %714 : vector<8x32xf32>
    %717 = arith.divf %715, %716 : vector<8x32xf32>
    %718 = arith.mulf %709, %659 : vector<8x32xf32>
    %719 = arith.mulf %703, %711 : vector<8x32xf32>
    %720 = arith.addf %718, %719 : vector<8x32xf32>
    %721 = math.tanh %720 : vector<8x32xf32>
    %722 = arith.mulf %717, %721 : vector<8x32xf32>
    %723 = arith.index_cast %c0_i32_234 : i32 to index
    %c0_247 = arith.constant 0 : index
    %c0_248 = arith.constant 0 : index
    %724 = vector.load %arg31[%723, %c0_247, %c0_248] : memref<8x8x32xf32, #tpu.memory_space<vmem>>, vector<1x8x32xf32>
    %725 = vector.shape_cast %724 : vector<1x8x32xf32> to vector<8x32xf32>
    %726 = vector.shape_cast %692 : vector<8x32xf32> to vector<1x8x32xf32>
    tpu.vector_store %arg31[%723, %c0_247, %c0_248], %726 {strides = array<i32>} : memref<8x8x32xf32, #tpu.memory_space<vmem>>, vector<1x8x32xf32>,
    %727 = arith.index_cast %660 : i32 to index
    %c0_249 = arith.constant 0 : index
    %c0_250 = arith.constant 0 : index
    %728 = vector.load %arg32[%727, %c0_249, %c0_250] : memref<8x8x32xf32, #tpu.memory_space<vmem>>, vector<1x8x32xf32>
    %729 = vector.shape_cast %728 : vector<1x8x32xf32> to vector<8x32xf32>
    %730 = vector.shape_cast %722 : vector<8x32xf32> to vector<1x8x32xf32>
    tpu.vector_store %arg32[%727, %c0_249, %c0_250], %730 {strides = array<i32>} : memref<8x8x32xf32, #tpu.memory_space<vmem>>, vector<1x8x32xf32>,
    %731 = tpu.concatenate %692, %722 in 1 : vector<8x32xf32>, vector<8x32xf32> -> vector<8x64xf32>
    %c1_i32_251 = arith.constant 1 : i32
    %c7_i32_252 = arith.constant 7 : i32
    %732 = arith.subi %c7_i32_252, %c1_i32_251 : i32
    %733 = arith.truncf %731 : vector<8x64xf32> to vector<8x64xbf16>
    %cst_253 = arith.constant dense<0.000000e+00> : vector<8x256xf32>
    %734 = tpu.matmul %733, %657, %cst_253 {dimension_numbers = #tpu.dot_dimension_numbers<[1], [0], [0], [1], [0, 0, 1, 1], [], []>} : vector<8x64xbf16>, vector<64x256xbf16>, vector<8x256xf32> -> vector<8x256xf32>
    %735 = arith.index_cast %c1_i32_251 : i32 to index
    %c0_254 = arith.constant 0 : index
    %c0_255 = arith.constant 0 : index
    %736 = vector.load %arg29[%735, %c0_254, %c0_255] : memref<8x8x128xf32, #tpu.memory_space<vmem>>, vector<1x8x128xf32>
    %737 = vector.shape_cast %736 : vector<1x8x128xf32> to vector<8x128xf32>
    %738 = vector.extract_strided_slice %734 {offsets = [0, 0], sizes = [8, 128], strides = [1, 1]} : vector<8x256xf32> to vector<8x128xf32>
    %739 = arith.addf %737, %738 : vector<8x128xf32>
    %740 = vector.extract_strided_slice %739 {offsets = [0, 0], sizes = [8, 32], strides = [1, 1]} : vector<8x128xf32> to vector<8x32xf32>
    %741 = arith.negf %740 : vector<8x32xf32>
    %742 = math.exp %741 : vector<8x32xf32>
    %cst_256 = arith.constant 1.000000e+00 : f32
    %743 = vector.broadcast %cst_256 : f32 to vector<8x32xf32>
    %744 = arith.addf %743, %742 : vector<8x32xf32>
    %745 = arith.divf %743, %744 : vector<8x32xf32>
    %746 = vector.extract_strided_slice %739 {offsets = [0, 32], sizes = [8, 32], strides = [1, 1]} : vector<8x128xf32> to vector<8x32xf32>
    %747 = arith.negf %746 : vector<8x32xf32>
    %748 = math.exp %747 : vector<8x32xf32>
    %cst_257 = arith.constant 1.000000e+00 : f32
    %749 = vector.broadcast %cst_257 : f32 to vector<8x32xf32>
    %750 = arith.addf %749, %748 : vector<8x32xf32>
    %751 = arith.divf %749, %750 : vector<8x32xf32>
    %752 = vector.extract_strided_slice %739 {offsets = [0, 64], sizes = [8, 32], strides = [1, 1]} : vector<8x128xf32> to vector<8x32xf32>
    %753 = math.tanh %752 : vector<8x32xf32>
    %754 = vector.extract_strided_slice %739 {offsets = [0, 96], sizes = [8, 32], strides = [1, 1]} : vector<8x128xf32> to vector<8x32xf32>
    %755 = arith.negf %754 : vector<8x32xf32>
    %756 = math.exp %755 : vector<8x32xf32>
    %cst_258 = arith.constant 1.000000e+00 : f32
    %757 = vector.broadcast %cst_258 : f32 to vector<8x32xf32>
    %758 = arith.addf %757, %756 : vector<8x32xf32>
    %759 = arith.divf %757, %758 : vector<8x32xf32>
    %760 = arith.mulf %751, %690 : vector<8x32xf32>
    %761 = arith.mulf %745, %753 : vector<8x32xf32>
    %762 = arith.addf %760, %761 : vector<8x32xf32>
    %763 = math.tanh %762 : vector<8x32xf32>
    %764 = arith.mulf %759, %763 : vector<8x32xf32>
    %765 = arith.index_cast %732 : i32 to index
    %c0_259 = arith.constant 0 : index
    %c0_260 = arith.constant 0 : index
    %766 = vector.load %arg30[%765, %c0_259, %c0_260] : memref<8x8x128xf32, #tpu.memory_space<vmem>>, vector<1x8x128xf32>
    %767 = vector.shape_cast %766 : vector<1x8x128xf32> to vector<8x128xf32>
    %768 = vector.extract_strided_slice %734 {offsets = [0, 128], sizes = [8, 128], strides = [1, 1]} : vector<8x256xf32> to vector<8x128xf32>
    %769 = arith.addf %767, %768 : vector<8x128xf32>
    %770 = vector.extract_strided_slice %769 {offsets = [0, 0], sizes = [8, 32], strides = [1, 1]} : vector<8x128xf32> to vector<8x32xf32>
    %771 = arith.negf %770 : vector<8x32xf32>
    %772 = math.exp %771 : vector<8x32xf32>
    %cst_261 = arith.constant 1.000000e+00 : f32
    %773 = vector.broadcast %cst_261 : f32 to vector<8x32xf32>
    %774 = arith.addf %773, %772 : vector<8x32xf32>
    %775 = arith.divf %773, %774 : vector<8x32xf32>
    %776 = vector.extract_strided_slice %769 {offsets = [0, 32], sizes = [8, 32], strides = [1, 1]} : vector<8x128xf32> to vector<8x32xf32>
    %777 = arith.negf %776 : vector<8x32xf32>
    %778 = math.exp %777 : vector<8x32xf32>
    %cst_262 = arith.constant 1.000000e+00 : f32
    %779 = vector.broadcast %cst_262 : f32 to vector<8x32xf32>
    %780 = arith.addf %779, %778 : vector<8x32xf32>
    %781 = arith.divf %779, %780 : vector<8x32xf32>
    %782 = vector.extract_strided_slice %769 {offsets = [0, 64], sizes = [8, 32], strides = [1, 1]} : vector<8x128xf32> to vector<8x32xf32>
    %783 = math.tanh %782 : vector<8x32xf32>
    %784 = vector.extract_strided_slice %769 {offsets = [0, 96], sizes = [8, 32], strides = [1, 1]} : vector<8x128xf32> to vector<8x32xf32>
    %785 = arith.negf %784 : vector<8x32xf32>
    %786 = math.exp %785 : vector<8x32xf32>
    %cst_263 = arith.constant 1.000000e+00 : f32
    %787 = vector.broadcast %cst_263 : f32 to vector<8x32xf32>
    %788 = arith.addf %787, %786 : vector<8x32xf32>
    %789 = arith.divf %787, %788 : vector<8x32xf32>
    %790 = arith.mulf %781, %720 : vector<8x32xf32>
    %791 = arith.mulf %775, %783 : vector<8x32xf32>
    %792 = arith.addf %790, %791 : vector<8x32xf32>
    %793 = math.tanh %792 : vector<8x32xf32>
    %794 = arith.mulf %789, %793 : vector<8x32xf32>
    %795 = arith.index_cast %c1_i32_251 : i32 to index
    %c0_264 = arith.constant 0 : index
    %c0_265 = arith.constant 0 : index
    %796 = vector.load %arg31[%795, %c0_264, %c0_265] : memref<8x8x32xf32, #tpu.memory_space<vmem>>, vector<1x8x32xf32>
    %797 = vector.shape_cast %796 : vector<1x8x32xf32> to vector<8x32xf32>
    %798 = vector.shape_cast %764 : vector<8x32xf32> to vector<1x8x32xf32>
    tpu.vector_store %arg31[%795, %c0_264, %c0_265], %798 {strides = array<i32>} : memref<8x8x32xf32, #tpu.memory_space<vmem>>, vector<1x8x32xf32>,
    %799 = arith.index_cast %732 : i32 to index
    %c0_266 = arith.constant 0 : index
    %c0_267 = arith.constant 0 : index
    %800 = vector.load %arg32[%799, %c0_266, %c0_267] : memref<8x8x32xf32, #tpu.memory_space<vmem>>, vector<1x8x32xf32>
    %801 = vector.shape_cast %800 : vector<1x8x32xf32> to vector<8x32xf32>
    %802 = vector.shape_cast %794 : vector<8x32xf32> to vector<1x8x32xf32>
    tpu.vector_store %arg32[%799, %c0_266, %c0_267], %802 {strides = array<i32>} : memref<8x8x32xf32, #tpu.memory_space<vmem>>, vector<1x8x32xf32>,
    %803 = tpu.concatenate %764, %794 in 1 : vector<8x32xf32>, vector<8x32xf32> -> vector<8x64xf32>
    %c2_i32_268 = arith.constant 2 : i32
    %c7_i32_269 = arith.constant 7 : i32
    %804 = arith.subi %c7_i32_269, %c2_i32_268 : i32
    %805 = arith.truncf %803 : vector<8x64xf32> to vector<8x64xbf16>
    %cst_270 = arith.constant dense<0.000000e+00> : vector<8x256xf32>
    %806 = tpu.matmul %805, %657, %cst_270 {dimension_numbers = #tpu.dot_dimension_numbers<[1], [0], [0], [1], [0, 0, 1, 1], [], []>} : vector<8x64xbf16>, vector<64x256xbf16>, vector<8x256xf32> -> vector<8x256xf32>
    %807 = arith.index_cast %c2_i32_268 : i32 to index
    %c0_271 = arith.constant 0 : index
    %c0_272 = arith.constant 0 : index
    %808 = vector.load %arg29[%807, %c0_271, %c0_272] : memref<8x8x128xf32, #tpu.memory_space<vmem>>, vector<1x8x128xf32>
    %809 = vector.shape_cast %808 : vector<1x8x128xf32> to vector<8x128xf32>
    %810 = vector.extract_strided_slice %806 {offsets = [0, 0], sizes = [8, 128], strides = [1, 1]} : vector<8x256xf32> to vector<8x128xf32>
    %811 = arith.addf %809, %810 : vector<8x128xf32>
    %812 = vector.extract_strided_slice %811 {offsets = [0, 0], sizes = [8, 32], strides = [1, 1]} : vector<8x128xf32> to vector<8x32xf32>
    %813 = arith.negf %812 : vector<8x32xf32>
    %814 = math.exp %813 : vector<8x32xf32>
    %cst_273 = arith.constant 1.000000e+00 : f32
    %815 = vector.broadcast %cst_273 : f32 to vector<8x32xf32>
    %816 = arith.addf %815, %814 : vector<8x32xf32>
    %817 = arith.divf %815, %816 : vector<8x32xf32>
    %818 = vector.extract_strided_slice %811 {offsets = [0, 32], sizes = [8, 32], strides = [1, 1]} : vector<8x128xf32> to vector<8x32xf32>
    %819 = arith.negf %818 : vector<8x32xf32>
    %820 = math.exp %819 : vector<8x32xf32>
    %cst_274 = arith.constant 1.000000e+00 : f32
    %821 = vector.broadcast %cst_274 : f32 to vector<8x32xf32>
    %822 = arith.addf %821, %820 : vector<8x32xf32>
    %823 = arith.divf %821, %822 : vector<8x32xf32>
    %824 = vector.extract_strided_slice %811 {offsets = [0, 64], sizes = [8, 32], strides = [1, 1]} : vector<8x128xf32> to vector<8x32xf32>
    %825 = math.tanh %824 : vector<8x32xf32>
    %826 = vector.extract_strided_slice %811 {offsets = [0, 96], sizes = [8, 32], strides = [1, 1]} : vector<8x128xf32> to vector<8x32xf32>
    %827 = arith.negf %826 : vector<8x32xf32>
    %828 = math.exp %827 : vector<8x32xf32>
    %cst_275 = arith.constant 1.000000e+00 : f32
    %829 = vector.broadcast %cst_275 : f32 to vector<8x32xf32>
    %830 = arith.addf %829, %828 : vector<8x32xf32>
    %831 = arith.divf %829, %830 : vector<8x32xf32>
    %832 = arith.mulf %823, %762 : vector<8x32xf32>
    %833 = arith.mulf %817, %825 : vector<8x32xf32>
    %834 = arith.addf %832, %833 : vector<8x32xf32>
    %835 = math.tanh %834 : vector<8x32xf32>
    %836 = arith.mulf %831, %835 : vector<8x32xf32>
    %837 = arith.index_cast %804 : i32 to index
    %c0_276 = arith.constant 0 : index
    %c0_277 = arith.constant 0 : index
    %838 = vector.load %arg30[%837, %c0_276, %c0_277] : memref<8x8x128xf32, #tpu.memory_space<vmem>>, vector<1x8x128xf32>
    %839 = vector.shape_cast %838 : vector<1x8x128xf32> to vector<8x128xf32>
    %840 = vector.extract_strided_slice %806 {offsets = [0, 128], sizes = [8, 128], strides = [1, 1]} : vector<8x256xf32> to vector<8x128xf32>
    %841 = arith.addf %839, %840 : vector<8x128xf32>
    %842 = vector.extract_strided_slice %841 {offsets = [0, 0], sizes = [8, 32], strides = [1, 1]} : vector<8x128xf32> to vector<8x32xf32>
    %843 = arith.negf %842 : vector<8x32xf32>
    %844 = math.exp %843 : vector<8x32xf32>
    %cst_278 = arith.constant 1.000000e+00 : f32
    %845 = vector.broadcast %cst_278 : f32 to vector<8x32xf32>
    %846 = arith.addf %845, %844 : vector<8x32xf32>
    %847 = arith.divf %845, %846 : vector<8x32xf32>
    %848 = vector.extract_strided_slice %841 {offsets = [0, 32], sizes = [8, 32], strides = [1, 1]} : vector<8x128xf32> to vector<8x32xf32>
    %849 = arith.negf %848 : vector<8x32xf32>
    %850 = math.exp %849 : vector<8x32xf32>
    %cst_279 = arith.constant 1.000000e+00 : f32
    %851 = vector.broadcast %cst_279 : f32 to vector<8x32xf32>
    %852 = arith.addf %851, %850 : vector<8x32xf32>
    %853 = arith.divf %851, %852 : vector<8x32xf32>
    %854 = vector.extract_strided_slice %841 {offsets = [0, 64], sizes = [8, 32], strides = [1, 1]} : vector<8x128xf32> to vector<8x32xf32>
    %855 = math.tanh %854 : vector<8x32xf32>
    %856 = vector.extract_strided_slice %841 {offsets = [0, 96], sizes = [8, 32], strides = [1, 1]} : vector<8x128xf32> to vector<8x32xf32>
    %857 = arith.negf %856 : vector<8x32xf32>
    %858 = math.exp %857 : vector<8x32xf32>
    %cst_280 = arith.constant 1.000000e+00 : f32
    %859 = vector.broadcast %cst_280 : f32 to vector<8x32xf32>
    %860 = arith.addf %859, %858 : vector<8x32xf32>
    %861 = arith.divf %859, %860 : vector<8x32xf32>
    %862 = arith.mulf %853, %792 : vector<8x32xf32>
    %863 = arith.mulf %847, %855 : vector<8x32xf32>
    %864 = arith.addf %862, %863 : vector<8x32xf32>
    %865 = math.tanh %864 : vector<8x32xf32>
    %866 = arith.mulf %861, %865 : vector<8x32xf32>
    %867 = arith.index_cast %c2_i32_268 : i32 to index
    %c0_281 = arith.constant 0 : index
    %c0_282 = arith.constant 0 : index
    %868 = vector.load %arg31[%867, %c0_281, %c0_282] : memref<8x8x32xf32, #tpu.memory_space<vmem>>, vector<1x8x32xf32>
    %869 = vector.shape_cast %868 : vector<1x8x32xf32> to vector<8x32xf32>
    %870 = vector.shape_cast %836 : vector<8x32xf32> to vector<1x8x32xf32>
    tpu.vector_store %arg31[%867, %c0_281, %c0_282], %870 {strides = array<i32>} : memref<8x8x32xf32, #tpu.memory_space<vmem>>, vector<1x8x32xf32>,
    %871 = arith.index_cast %804 : i32 to index
    %c0_283 = arith.constant 0 : index
    %c0_284 = arith.constant 0 : index
    %872 = vector.load %arg32[%871, %c0_283, %c0_284] : memref<8x8x32xf32, #tpu.memory_space<vmem>>, vector<1x8x32xf32>
    %873 = vector.shape_cast %872 : vector<1x8x32xf32> to vector<8x32xf32>
    %874 = vector.shape_cast %866 : vector<8x32xf32> to vector<1x8x32xf32>
    tpu.vector_store %arg32[%871, %c0_283, %c0_284], %874 {strides = array<i32>} : memref<8x8x32xf32, #tpu.memory_space<vmem>>, vector<1x8x32xf32>,
    %875 = tpu.concatenate %836, %866 in 1 : vector<8x32xf32>, vector<8x32xf32> -> vector<8x64xf32>
    %c3_i32_285 = arith.constant 3 : i32
    %c7_i32_286 = arith.constant 7 : i32
    %876 = arith.subi %c7_i32_286, %c3_i32_285 : i32
    %877 = arith.truncf %875 : vector<8x64xf32> to vector<8x64xbf16>
    %cst_287 = arith.constant dense<0.000000e+00> : vector<8x256xf32>
    %878 = tpu.matmul %877, %657, %cst_287 {dimension_numbers = #tpu.dot_dimension_numbers<[1], [0], [0], [1], [0, 0, 1, 1], [], []>} : vector<8x64xbf16>, vector<64x256xbf16>, vector<8x256xf32> -> vector<8x256xf32>
    %879 = arith.index_cast %c3_i32_285 : i32 to index
    %c0_288 = arith.constant 0 : index
    %c0_289 = arith.constant 0 : index
    %880 = vector.load %arg29[%879, %c0_288, %c0_289] : memref<8x8x128xf32, #tpu.memory_space<vmem>>, vector<1x8x128xf32>
    %881 = vector.shape_cast %880 : vector<1x8x128xf32> to vector<8x128xf32>
    %882 = vector.extract_strided_slice %878 {offsets = [0, 0], sizes = [8, 128], strides = [1, 1]} : vector<8x256xf32> to vector<8x128xf32>
    %883 = arith.addf %881, %882 : vector<8x128xf32>
    %884 = vector.extract_strided_slice %883 {offsets = [0, 0], sizes = [8, 32], strides = [1, 1]} : vector<8x128xf32> to vector<8x32xf32>
    %885 = arith.negf %884 : vector<8x32xf32>
    %886 = math.exp %885 : vector<8x32xf32>
    %cst_290 = arith.constant 1.000000e+00 : f32
    %887 = vector.broadcast %cst_290 : f32 to vector<8x32xf32>
    %888 = arith.addf %887, %886 : vector<8x32xf32>
    %889 = arith.divf %887, %888 : vector<8x32xf32>
    %890 = vector.extract_strided_slice %883 {offsets = [0, 32], sizes = [8, 32], strides = [1, 1]} : vector<8x128xf32> to vector<8x32xf32>
    %891 = arith.negf %890 : vector<8x32xf32>
    %892 = math.exp %891 : vector<8x32xf32>
    %cst_291 = arith.constant 1.000000e+00 : f32
    %893 = vector.broadcast %cst_291 : f32 to vector<8x32xf32>
    %894 = arith.addf %893, %892 : vector<8x32xf32>
    %895 = arith.divf %893, %894 : vector<8x32xf32>
    %896 = vector.extract_strided_slice %883 {offsets = [0, 64], sizes = [8, 32], strides = [1, 1]} : vector<8x128xf32> to vector<8x32xf32>
    %897 = math.tanh %896 : vector<8x32xf32>
    %898 = vector.extract_strided_slice %883 {offsets = [0, 96], sizes = [8, 32], strides = [1, 1]} : vector<8x128xf32> to vector<8x32xf32>
    %899 = arith.negf %898 : vector<8x32xf32>
    %900 = math.exp %899 : vector<8x32xf32>
    %cst_292 = arith.constant 1.000000e+00 : f32
    %901 = vector.broadcast %cst_292 : f32 to vector<8x32xf32>
    %902 = arith.addf %901, %900 : vector<8x32xf32>
    %903 = arith.divf %901, %902 : vector<8x32xf32>
    %904 = arith.mulf %895, %834 : vector<8x32xf32>
    %905 = arith.mulf %889, %897 : vector<8x32xf32>
    %906 = arith.addf %904, %905 : vector<8x32xf32>
    %907 = math.tanh %906 : vector<8x32xf32>
    %908 = arith.mulf %903, %907 : vector<8x32xf32>
    %909 = arith.index_cast %876 : i32 to index
    %c0_293 = arith.constant 0 : index
    %c0_294 = arith.constant 0 : index
    %910 = vector.load %arg30[%909, %c0_293, %c0_294] : memref<8x8x128xf32, #tpu.memory_space<vmem>>, vector<1x8x128xf32>
    %911 = vector.shape_cast %910 : vector<1x8x128xf32> to vector<8x128xf32>
    %912 = vector.extract_strided_slice %878 {offsets = [0, 128], sizes = [8, 128], strides = [1, 1]} : vector<8x256xf32> to vector<8x128xf32>
    %913 = arith.addf %911, %912 : vector<8x128xf32>
    %914 = vector.extract_strided_slice %913 {offsets = [0, 0], sizes = [8, 32], strides = [1, 1]} : vector<8x128xf32> to vector<8x32xf32>
    %915 = arith.negf %914 : vector<8x32xf32>
    %916 = math.exp %915 : vector<8x32xf32>
    %cst_295 = arith.constant 1.000000e+00 : f32
    %917 = vector.broadcast %cst_295 : f32 to vector<8x32xf32>
    %918 = arith.addf %917, %916 : vector<8x32xf32>
    %919 = arith.divf %917, %918 : vector<8x32xf32>
    %920 = vector.extract_strided_slice %913 {offsets = [0, 32], sizes = [8, 32], strides = [1, 1]} : vector<8x128xf32> to vector<8x32xf32>
    %921 = arith.negf %920 : vector<8x32xf32>
    %922 = math.exp %921 : vector<8x32xf32>
    %cst_296 = arith.constant 1.000000e+00 : f32
    %923 = vector.broadcast %cst_296 : f32 to vector<8x32xf32>
    %924 = arith.addf %923, %922 : vector<8x32xf32>
    %925 = arith.divf %923, %924 : vector<8x32xf32>
    %926 = vector.extract_strided_slice %913 {offsets = [0, 64], sizes = [8, 32], strides = [1, 1]} : vector<8x128xf32> to vector<8x32xf32>
    %927 = math.tanh %926 : vector<8x32xf32>
    %928 = vector.extract_strided_slice %913 {offsets = [0, 96], sizes = [8, 32], strides = [1, 1]} : vector<8x128xf32> to vector<8x32xf32>
    %929 = arith.negf %928 : vector<8x32xf32>
    %930 = math.exp %929 : vector<8x32xf32>
    %cst_297 = arith.constant 1.000000e+00 : f32
    %931 = vector.broadcast %cst_297 : f32 to vector<8x32xf32>
    %932 = arith.addf %931, %930 : vector<8x32xf32>
    %933 = arith.divf %931, %932 : vector<8x32xf32>
    %934 = arith.mulf %925, %864 : vector<8x32xf32>
    %935 = arith.mulf %919, %927 : vector<8x32xf32>
    %936 = arith.addf %934, %935 : vector<8x32xf32>
    %937 = math.tanh %936 : vector<8x32xf32>
    %938 = arith.mulf %933, %937 : vector<8x32xf32>
    %939 = arith.index_cast %c3_i32_285 : i32 to index
    %c0_298 = arith.constant 0 : index
    %c0_299 = arith.constant 0 : index
    %940 = vector.load %arg31[%939, %c0_298, %c0_299] : memref<8x8x32xf32, #tpu.memory_space<vmem>>, vector<1x8x32xf32>
    %941 = vector.shape_cast %940 : vector<1x8x32xf32> to vector<8x32xf32>
    %942 = vector.shape_cast %908 : vector<8x32xf32> to vector<1x8x32xf32>
    tpu.vector_store %arg31[%939, %c0_298, %c0_299], %942 {strides = array<i32>} : memref<8x8x32xf32, #tpu.memory_space<vmem>>, vector<1x8x32xf32>,
    %943 = arith.index_cast %876 : i32 to index
    %c0_300 = arith.constant 0 : index
    %c0_301 = arith.constant 0 : index
    %944 = vector.load %arg32[%943, %c0_300, %c0_301] : memref<8x8x32xf32, #tpu.memory_space<vmem>>, vector<1x8x32xf32>
    %945 = vector.shape_cast %944 : vector<1x8x32xf32> to vector<8x32xf32>
    %946 = vector.shape_cast %938 : vector<8x32xf32> to vector<1x8x32xf32>
    tpu.vector_store %arg32[%943, %c0_300, %c0_301], %946 {strides = array<i32>} : memref<8x8x32xf32, #tpu.memory_space<vmem>>, vector<1x8x32xf32>,
    %947 = tpu.concatenate %908, %938 in 1 : vector<8x32xf32>, vector<8x32xf32> -> vector<8x64xf32>
    %c4_i32_302 = arith.constant 4 : i32
    %c7_i32_303 = arith.constant 7 : i32
    %948 = arith.subi %c7_i32_303, %c4_i32_302 : i32
    %949 = arith.truncf %947 : vector<8x64xf32> to vector<8x64xbf16>
    %cst_304 = arith.constant dense<0.000000e+00> : vector<8x256xf32>
    %950 = tpu.matmul %949, %657, %cst_304 {dimension_numbers = #tpu.dot_dimension_numbers<[1], [0], [0], [1], [0, 0, 1, 1], [], []>} : vector<8x64xbf16>, vector<64x256xbf16>, vector<8x256xf32> -> vector<8x256xf32>
    %951 = arith.index_cast %c4_i32_302 : i32 to index
    %c0_305 = arith.constant 0 : index
    %c0_306 = arith.constant 0 : index
    %952 = vector.load %arg29[%951, %c0_305, %c0_306] : memref<8x8x128xf32, #tpu.memory_space<vmem>>, vector<1x8x128xf32>
    %953 = vector.shape_cast %952 : vector<1x8x128xf32> to vector<8x128xf32>
    %954 = vector.extract_strided_slice %950 {offsets = [0, 0], sizes = [8, 128], strides = [1, 1]} : vector<8x256xf32> to vector<8x128xf32>
    %955 = arith.addf %953, %954 : vector<8x128xf32>
    %956 = vector.extract_strided_slice %955 {offsets = [0, 0], sizes = [8, 32], strides = [1, 1]} : vector<8x128xf32> to vector<8x32xf32>
    %957 = arith.negf %956 : vector<8x32xf32>
    %958 = math.exp %957 : vector<8x32xf32>
    %cst_307 = arith.constant 1.000000e+00 : f32
    %959 = vector.broadcast %cst_307 : f32 to vector<8x32xf32>
    %960 = arith.addf %959, %958 : vector<8x32xf32>
    %961 = arith.divf %959, %960 : vector<8x32xf32>
    %962 = vector.extract_strided_slice %955 {offsets = [0, 32], sizes = [8, 32], strides = [1, 1]} : vector<8x128xf32> to vector<8x32xf32>
    %963 = arith.negf %962 : vector<8x32xf32>
    %964 = math.exp %963 : vector<8x32xf32>
    %cst_308 = arith.constant 1.000000e+00 : f32
    %965 = vector.broadcast %cst_308 : f32 to vector<8x32xf32>
    %966 = arith.addf %965, %964 : vector<8x32xf32>
    %967 = arith.divf %965, %966 : vector<8x32xf32>
    %968 = vector.extract_strided_slice %955 {offsets = [0, 64], sizes = [8, 32], strides = [1, 1]} : vector<8x128xf32> to vector<8x32xf32>
    %969 = math.tanh %968 : vector<8x32xf32>
    %970 = vector.extract_strided_slice %955 {offsets = [0, 96], sizes = [8, 32], strides = [1, 1]} : vector<8x128xf32> to vector<8x32xf32>
    %971 = arith.negf %970 : vector<8x32xf32>
    %972 = math.exp %971 : vector<8x32xf32>
    %cst_309 = arith.constant 1.000000e+00 : f32
    %973 = vector.broadcast %cst_309 : f32 to vector<8x32xf32>
    %974 = arith.addf %973, %972 : vector<8x32xf32>
    %975 = arith.divf %973, %974 : vector<8x32xf32>
    %976 = arith.mulf %967, %906 : vector<8x32xf32>
    %977 = arith.mulf %961, %969 : vector<8x32xf32>
    %978 = arith.addf %976, %977 : vector<8x32xf32>
    %979 = math.tanh %978 : vector<8x32xf32>
    %980 = arith.mulf %975, %979 : vector<8x32xf32>
    %981 = arith.index_cast %948 : i32 to index
    %c0_310 = arith.constant 0 : index
    %c0_311 = arith.constant 0 : index
    %982 = vector.load %arg30[%981, %c0_310, %c0_311] : memref<8x8x128xf32, #tpu.memory_space<vmem>>, vector<1x8x128xf32>
    %983 = vector.shape_cast %982 : vector<1x8x128xf32> to vector<8x128xf32>
    %984 = vector.extract_strided_slice %950 {offsets = [0, 128], sizes = [8, 128], strides = [1, 1]} : vector<8x256xf32> to vector<8x128xf32>
    %985 = arith.addf %983, %984 : vector<8x128xf32>
    %986 = vector.extract_strided_slice %985 {offsets = [0, 0], sizes = [8, 32], strides = [1, 1]} : vector<8x128xf32> to vector<8x32xf32>
    %987 = arith.negf %986 : vector<8x32xf32>
    %988 = math.exp %987 : vector<8x32xf32>
    %cst_312 = arith.constant 1.000000e+00 : f32
    %989 = vector.broadcast %cst_312 : f32 to vector<8x32xf32>
    %990 = arith.addf %989, %988 : vector<8x32xf32>
    %991 = arith.divf %989, %990 : vector<8x32xf32>
    %992 = vector.extract_strided_slice %985 {offsets = [0, 32], sizes = [8, 32], strides = [1, 1]} : vector<8x128xf32> to vector<8x32xf32>
    %993 = arith.negf %992 : vector<8x32xf32>
    %994 = math.exp %993 : vector<8x32xf32>
    %cst_313 = arith.constant 1.000000e+00 : f32
    %995 = vector.broadcast %cst_313 : f32 to vector<8x32xf32>
    %996 = arith.addf %995, %994 : vector<8x32xf32>
    %997 = arith.divf %995, %996 : vector<8x32xf32>
    %998 = vector.extract_strided_slice %985 {offsets = [0, 64], sizes = [8, 32], strides = [1, 1]} : vector<8x128xf32> to vector<8x32xf32>
    %999 = math.tanh %998 : vector<8x32xf32>
    %1000 = vector.extract_strided_slice %985 {offsets = [0, 96], sizes = [8, 32], strides = [1, 1]} : vector<8x128xf32> to vector<8x32xf32>
    %1001 = arith.negf %1000 : vector<8x32xf32>
    %1002 = math.exp %1001 : vector<8x32xf32>
    %cst_314 = arith.constant 1.000000e+00 : f32
    %1003 = vector.broadcast %cst_314 : f32 to vector<8x32xf32>
    %1004 = arith.addf %1003, %1002 : vector<8x32xf32>
    %1005 = arith.divf %1003, %1004 : vector<8x32xf32>
    %1006 = arith.mulf %997, %936 : vector<8x32xf32>
    %1007 = arith.mulf %991, %999 : vector<8x32xf32>
    %1008 = arith.addf %1006, %1007 : vector<8x32xf32>
    %1009 = math.tanh %1008 : vector<8x32xf32>
    %1010 = arith.mulf %1005, %1009 : vector<8x32xf32>
    %1011 = arith.index_cast %c4_i32_302 : i32 to index
    %c0_315 = arith.constant 0 : index
    %c0_316 = arith.constant 0 : index
    %1012 = vector.load %arg31[%1011, %c0_315, %c0_316] : memref<8x8x32xf32, #tpu.memory_space<vmem>>, vector<1x8x32xf32>
    %1013 = vector.shape_cast %1012 : vector<1x8x32xf32> to vector<8x32xf32>
    %1014 = vector.shape_cast %980 : vector<8x32xf32> to vector<1x8x32xf32>
    tpu.vector_store %arg31[%1011, %c0_315, %c0_316], %1014 {strides = array<i32>} : memref<8x8x32xf32, #tpu.memory_space<vmem>>, vector<1x8x32xf32>,
    %1015 = arith.index_cast %948 : i32 to index
    %c0_317 = arith.constant 0 : index
    %c0_318 = arith.constant 0 : index
    %1016 = vector.load %arg32[%1015, %c0_317, %c0_318] : memref<8x8x32xf32, #tpu.memory_space<vmem>>, vector<1x8x32xf32>
    %1017 = vector.shape_cast %1016 : vector<1x8x32xf32> to vector<8x32xf32>
    %1018 = vector.shape_cast %1010 : vector<8x32xf32> to vector<1x8x32xf32>
    tpu.vector_store %arg32[%1015, %c0_317, %c0_318], %1018 {strides = array<i32>} : memref<8x8x32xf32, #tpu.memory_space<vmem>>, vector<1x8x32xf32>,
    %1019 = tpu.concatenate %980, %1010 in 1 : vector<8x32xf32>, vector<8x32xf32> -> vector<8x64xf32>
    %c5_i32_319 = arith.constant 5 : i32
    %c7_i32_320 = arith.constant 7 : i32
    %1020 = arith.subi %c7_i32_320, %c5_i32_319 : i32
    %1021 = arith.truncf %1019 : vector<8x64xf32> to vector<8x64xbf16>
    %cst_321 = arith.constant dense<0.000000e+00> : vector<8x256xf32>
    %1022 = tpu.matmul %1021, %657, %cst_321 {dimension_numbers = #tpu.dot_dimension_numbers<[1], [0], [0], [1], [0, 0, 1, 1], [], []>} : vector<8x64xbf16>, vector<64x256xbf16>, vector<8x256xf32> -> vector<8x256xf32>
    %1023 = arith.index_cast %c5_i32_319 : i32 to index
    %c0_322 = arith.constant 0 : index
    %c0_323 = arith.constant 0 : index
    %1024 = vector.load %arg29[%1023, %c0_322, %c0_323] : memref<8x8x128xf32, #tpu.memory_space<vmem>>, vector<1x8x128xf32>
    %1025 = vector.shape_cast %1024 : vector<1x8x128xf32> to vector<8x128xf32>
    %1026 = vector.extract_strided_slice %1022 {offsets = [0, 0], sizes = [8, 128], strides = [1, 1]} : vector<8x256xf32> to vector<8x128xf32>
    %1027 = arith.addf %1025, %1026 : vector<8x128xf32>
    %1028 = vector.extract_strided_slice %1027 {offsets = [0, 0], sizes = [8, 32], strides = [1, 1]} : vector<8x128xf32> to vector<8x32xf32>
    %1029 = arith.negf %1028 : vector<8x32xf32>
    %1030 = math.exp %1029 : vector<8x32xf32>
    %cst_324 = arith.constant 1.000000e+00 : f32
    %1031 = vector.broadcast %cst_324 : f32 to vector<8x32xf32>
    %1032 = arith.addf %1031, %1030 : vector<8x32xf32>
    %1033 = arith.divf %1031, %1032 : vector<8x32xf32>
    %1034 = vector.extract_strided_slice %1027 {offsets = [0, 32], sizes = [8, 32], strides = [1, 1]} : vector<8x128xf32> to vector<8x32xf32>
    %1035 = arith.negf %1034 : vector<8x32xf32>
    %1036 = math.exp %1035 : vector<8x32xf32>
    %cst_325 = arith.constant 1.000000e+00 : f32
    %1037 = vector.broadcast %cst_325 : f32 to vector<8x32xf32>
    %1038 = arith.addf %1037, %1036 : vector<8x32xf32>
    %1039 = arith.divf %1037, %1038 : vector<8x32xf32>
    %1040 = vector.extract_strided_slice %1027 {offsets = [0, 64], sizes = [8, 32], strides = [1, 1]} : vector<8x128xf32> to vector<8x32xf32>
    %1041 = math.tanh %1040 : vector<8x32xf32>
    %1042 = vector.extract_strided_slice %1027 {offsets = [0, 96], sizes = [8, 32], strides = [1, 1]} : vector<8x128xf32> to vector<8x32xf32>
    %1043 = arith.negf %1042 : vector<8x32xf32>
    %1044 = math.exp %1043 : vector<8x32xf32>
    %cst_326 = arith.constant 1.000000e+00 : f32
    %1045 = vector.broadcast %cst_326 : f32 to vector<8x32xf32>
    %1046 = arith.addf %1045, %1044 : vector<8x32xf32>
    %1047 = arith.divf %1045, %1046 : vector<8x32xf32>
    %1048 = arith.mulf %1039, %978 : vector<8x32xf32>
    %1049 = arith.mulf %1033, %1041 : vector<8x32xf32>
    %1050 = arith.addf %1048, %1049 : vector<8x32xf32>
    %1051 = math.tanh %1050 : vector<8x32xf32>
    %1052 = arith.mulf %1047, %1051 : vector<8x32xf32>
    %1053 = arith.index_cast %1020 : i32 to index
    %c0_327 = arith.constant 0 : index
    %c0_328 = arith.constant 0 : index
    %1054 = vector.load %arg30[%1053, %c0_327, %c0_328] : memref<8x8x128xf32, #tpu.memory_space<vmem>>, vector<1x8x128xf32>
    %1055 = vector.shape_cast %1054 : vector<1x8x128xf32> to vector<8x128xf32>
    %1056 = vector.extract_strided_slice %1022 {offsets = [0, 128], sizes = [8, 128], strides = [1, 1]} : vector<8x256xf32> to vector<8x128xf32>
    %1057 = arith.addf %1055, %1056 : vector<8x128xf32>
    %1058 = vector.extract_strided_slice %1057 {offsets = [0, 0], sizes = [8, 32], strides = [1, 1]} : vector<8x128xf32> to vector<8x32xf32>
    %1059 = arith.negf %1058 : vector<8x32xf32>
    %1060 = math.exp %1059 : vector<8x32xf32>
    %cst_329 = arith.constant 1.000000e+00 : f32
    %1061 = vector.broadcast %cst_329 : f32 to vector<8x32xf32>
    %1062 = arith.addf %1061, %1060 : vector<8x32xf32>
    %1063 = arith.divf %1061, %1062 : vector<8x32xf32>
    %1064 = vector.extract_strided_slice %1057 {offsets = [0, 32], sizes = [8, 32], strides = [1, 1]} : vector<8x128xf32> to vector<8x32xf32>
    %1065 = arith.negf %1064 : vector<8x32xf32>
    %1066 = math.exp %1065 : vector<8x32xf32>
    %cst_330 = arith.constant 1.000000e+00 : f32
    %1067 = vector.broadcast %cst_330 : f32 to vector<8x32xf32>
    %1068 = arith.addf %1067, %1066 : vector<8x32xf32>
    %1069 = arith.divf %1067, %1068 : vector<8x32xf32>
    %1070 = vector.extract_strided_slice %1057 {offsets = [0, 64], sizes = [8, 32], strides = [1, 1]} : vector<8x128xf32> to vector<8x32xf32>
    %1071 = math.tanh %1070 : vector<8x32xf32>
    %1072 = vector.extract_strided_slice %1057 {offsets = [0, 96], sizes = [8, 32], strides = [1, 1]} : vector<8x128xf32> to vector<8x32xf32>
    %1073 = arith.negf %1072 : vector<8x32xf32>
    %1074 = math.exp %1073 : vector<8x32xf32>
    %cst_331 = arith.constant 1.000000e+00 : f32
    %1075 = vector.broadcast %cst_331 : f32 to vector<8x32xf32>
    %1076 = arith.addf %1075, %1074 : vector<8x32xf32>
    %1077 = arith.divf %1075, %1076 : vector<8x32xf32>
    %1078 = arith.mulf %1069, %1008 : vector<8x32xf32>
    %1079 = arith.mulf %1063, %1071 : vector<8x32xf32>
    %1080 = arith.addf %1078, %1079 : vector<8x32xf32>
    %1081 = math.tanh %1080 : vector<8x32xf32>
    %1082 = arith.mulf %1077, %1081 : vector<8x32xf32>
    %1083 = arith.index_cast %c5_i32_319 : i32 to index
    %c0_332 = arith.constant 0 : index
    %c0_333 = arith.constant 0 : index
    %1084 = vector.load %arg31[%1083, %c0_332, %c0_333] : memref<8x8x32xf32, #tpu.memory_space<vmem>>, vector<1x8x32xf32>
    %1085 = vector.shape_cast %1084 : vector<1x8x32xf32> to vector<8x32xf32>
    %1086 = vector.shape_cast %1052 : vector<8x32xf32> to vector<1x8x32xf32>
    tpu.vector_store %arg31[%1083, %c0_332, %c0_333], %1086 {strides = array<i32>} : memref<8x8x32xf32, #tpu.memory_space<vmem>>, vector<1x8x32xf32>,
    %1087 = arith.index_cast %1020 : i32 to index
    %c0_334 = arith.constant 0 : index
    %c0_335 = arith.constant 0 : index
    %1088 = vector.load %arg32[%1087, %c0_334, %c0_335] : memref<8x8x32xf32, #tpu.memory_space<vmem>>, vector<1x8x32xf32>
    %1089 = vector.shape_cast %1088 : vector<1x8x32xf32> to vector<8x32xf32>
    %1090 = vector.shape_cast %1082 : vector<8x32xf32> to vector<1x8x32xf32>
    tpu.vector_store %arg32[%1087, %c0_334, %c0_335], %1090 {strides = array<i32>} : memref<8x8x32xf32, #tpu.memory_space<vmem>>, vector<1x8x32xf32>,
    %1091 = tpu.concatenate %1052, %1082 in 1 : vector<8x32xf32>, vector<8x32xf32> -> vector<8x64xf32>
    %c6_i32_336 = arith.constant 6 : i32
    %c7_i32_337 = arith.constant 7 : i32
    %1092 = arith.subi %c7_i32_337, %c6_i32_336 : i32
    %1093 = arith.truncf %1091 : vector<8x64xf32> to vector<8x64xbf16>
    %cst_338 = arith.constant dense<0.000000e+00> : vector<8x256xf32>
    %1094 = tpu.matmul %1093, %657, %cst_338 {dimension_numbers = #tpu.dot_dimension_numbers<[1], [0], [0], [1], [0, 0, 1, 1], [], []>} : vector<8x64xbf16>, vector<64x256xbf16>, vector<8x256xf32> -> vector<8x256xf32>
    %1095 = arith.index_cast %c6_i32_336 : i32 to index
    %c0_339 = arith.constant 0 : index
    %c0_340 = arith.constant 0 : index
    %1096 = vector.load %arg29[%1095, %c0_339, %c0_340] : memref<8x8x128xf32, #tpu.memory_space<vmem>>, vector<1x8x128xf32>
    %1097 = vector.shape_cast %1096 : vector<1x8x128xf32> to vector<8x128xf32>
    %1098 = vector.extract_strided_slice %1094 {offsets = [0, 0], sizes = [8, 128], strides = [1, 1]} : vector<8x256xf32> to vector<8x128xf32>
    %1099 = arith.addf %1097, %1098 : vector<8x128xf32>
    %1100 = vector.extract_strided_slice %1099 {offsets = [0, 0], sizes = [8, 32], strides = [1, 1]} : vector<8x128xf32> to vector<8x32xf32>
    %1101 = arith.negf %1100 : vector<8x32xf32>
    %1102 = math.exp %1101 : vector<8x32xf32>
    %cst_341 = arith.constant 1.000000e+00 : f32
    %1103 = vector.broadcast %cst_341 : f32 to vector<8x32xf32>
    %1104 = arith.addf %1103, %1102 : vector<8x32xf32>
    %1105 = arith.divf %1103, %1104 : vector<8x32xf32>
    %1106 = vector.extract_strided_slice %1099 {offsets = [0, 32], sizes = [8, 32], strides = [1, 1]} : vector<8x128xf32> to vector<8x32xf32>
    %1107 = arith.negf %1106 : vector<8x32xf32>
    %1108 = math.exp %1107 : vector<8x32xf32>
    %cst_342 = arith.constant 1.000000e+00 : f32
    %1109 = vector.broadcast %cst_342 : f32 to vector<8x32xf32>
    %1110 = arith.addf %1109, %1108 : vector<8x32xf32>
    %1111 = arith.divf %1109, %1110 : vector<8x32xf32>
    %1112 = vector.extract_strided_slice %1099 {offsets = [0, 64], sizes = [8, 32], strides = [1, 1]} : vector<8x128xf32> to vector<8x32xf32>
    %1113 = math.tanh %1112 : vector<8x32xf32>
    %1114 = vector.extract_strided_slice %1099 {offsets = [0, 96], sizes = [8, 32], strides = [1, 1]} : vector<8x128xf32> to vector<8x32xf32>
    %1115 = arith.negf %1114 : vector<8x32xf32>
    %1116 = math.exp %1115 : vector<8x32xf32>
    %cst_343 = arith.constant 1.000000e+00 : f32
    %1117 = vector.broadcast %cst_343 : f32 to vector<8x32xf32>
    %1118 = arith.addf %1117, %1116 : vector<8x32xf32>
    %1119 = arith.divf %1117, %1118 : vector<8x32xf32>
    %1120 = arith.mulf %1111, %1050 : vector<8x32xf32>
    %1121 = arith.mulf %1105, %1113 : vector<8x32xf32>
    %1122 = arith.addf %1120, %1121 : vector<8x32xf32>
    %1123 = math.tanh %1122 : vector<8x32xf32>
    %1124 = arith.mulf %1119, %1123 : vector<8x32xf32>
    %1125 = arith.index_cast %1092 : i32 to index
    %c0_344 = arith.constant 0 : index
    %c0_345 = arith.constant 0 : index
    %1126 = vector.load %arg30[%1125, %c0_344, %c0_345] : memref<8x8x128xf32, #tpu.memory_space<vmem>>, vector<1x8x128xf32>
    %1127 = vector.shape_cast %1126 : vector<1x8x128xf32> to vector<8x128xf32>
    %1128 = vector.extract_strided_slice %1094 {offsets = [0, 128], sizes = [8, 128], strides = [1, 1]} : vector<8x256xf32> to vector<8x128xf32>
    %1129 = arith.addf %1127, %1128 : vector<8x128xf32>
    %1130 = vector.extract_strided_slice %1129 {offsets = [0, 0], sizes = [8, 32], strides = [1, 1]} : vector<8x128xf32> to vector<8x32xf32>
    %1131 = arith.negf %1130 : vector<8x32xf32>
    %1132 = math.exp %1131 : vector<8x32xf32>
    %cst_346 = arith.constant 1.000000e+00 : f32
    %1133 = vector.broadcast %cst_346 : f32 to vector<8x32xf32>
    %1134 = arith.addf %1133, %1132 : vector<8x32xf32>
    %1135 = arith.divf %1133, %1134 : vector<8x32xf32>
    %1136 = vector.extract_strided_slice %1129 {offsets = [0, 32], sizes = [8, 32], strides = [1, 1]} : vector<8x128xf32> to vector<8x32xf32>
    %1137 = arith.negf %1136 : vector<8x32xf32>
    %1138 = math.exp %1137 : vector<8x32xf32>
    %cst_347 = arith.constant 1.000000e+00 : f32
    %1139 = vector.broadcast %cst_347 : f32 to vector<8x32xf32>
    %1140 = arith.addf %1139, %1138 : vector<8x32xf32>
    %1141 = arith.divf %1139, %1140 : vector<8x32xf32>
    %1142 = vector.extract_strided_slice %1129 {offsets = [0, 64], sizes = [8, 32], strides = [1, 1]} : vector<8x128xf32> to vector<8x32xf32>
    %1143 = math.tanh %1142 : vector<8x32xf32>
    %1144 = vector.extract_strided_slice %1129 {offsets = [0, 96], sizes = [8, 32], strides = [1, 1]} : vector<8x128xf32> to vector<8x32xf32>
    %1145 = arith.negf %1144 : vector<8x32xf32>
    %1146 = math.exp %1145 : vector<8x32xf32>
    %cst_348 = arith.constant 1.000000e+00 : f32
    %1147 = vector.broadcast %cst_348 : f32 to vector<8x32xf32>
    %1148 = arith.addf %1147, %1146 : vector<8x32xf32>
    %1149 = arith.divf %1147, %1148 : vector<8x32xf32>
    %1150 = arith.mulf %1141, %1080 : vector<8x32xf32>
    %1151 = arith.mulf %1135, %1143 : vector<8x32xf32>
    %1152 = arith.addf %1150, %1151 : vector<8x32xf32>
    %1153 = math.tanh %1152 : vector<8x32xf32>
    %1154 = arith.mulf %1149, %1153 : vector<8x32xf32>
    %1155 = arith.index_cast %c6_i32_336 : i32 to index
    %c0_349 = arith.constant 0 : index
    %c0_350 = arith.constant 0 : index
    %1156 = vector.load %arg31[%1155, %c0_349, %c0_350] : memref<8x8x32xf32, #tpu.memory_space<vmem>>, vector<1x8x32xf32>
    %1157 = vector.shape_cast %1156 : vector<1x8x32xf32> to vector<8x32xf32>
    %1158 = vector.shape_cast %1124 : vector<8x32xf32> to vector<1x8x32xf32>
    tpu.vector_store %arg31[%1155, %c0_349, %c0_350], %1158 {strides = array<i32>} : memref<8x8x32xf32, #tpu.memory_space<vmem>>, vector<1x8x32xf32>,
    %1159 = arith.index_cast %1092 : i32 to index
    %c0_351 = arith.constant 0 : index
    %c0_352 = arith.constant 0 : index
    %1160 = vector.load %arg32[%1159, %c0_351, %c0_352] : memref<8x8x32xf32, #tpu.memory_space<vmem>>, vector<1x8x32xf32>
    %1161 = vector.shape_cast %1160 : vector<1x8x32xf32> to vector<8x32xf32>
    %1162 = vector.shape_cast %1154 : vector<8x32xf32> to vector<1x8x32xf32>
    tpu.vector_store %arg32[%1159, %c0_351, %c0_352], %1162 {strides = array<i32>} : memref<8x8x32xf32, #tpu.memory_space<vmem>>, vector<1x8x32xf32>,
    %1163 = tpu.concatenate %1124, %1154 in 1 : vector<8x32xf32>, vector<8x32xf32> -> vector<8x64xf32>
    %c7_i32_353 = arith.constant 7 : i32
    %c7_i32_354 = arith.constant 7 : i32
    %1164 = arith.subi %c7_i32_354, %c7_i32_353 : i32
    %1165 = arith.truncf %1163 : vector<8x64xf32> to vector<8x64xbf16>
    %cst_355 = arith.constant dense<0.000000e+00> : vector<8x256xf32>
    %1166 = tpu.matmul %1165, %657, %cst_355 {dimension_numbers = #tpu.dot_dimension_numbers<[1], [0], [0], [1], [0, 0, 1, 1], [], []>} : vector<8x64xbf16>, vector<64x256xbf16>, vector<8x256xf32> -> vector<8x256xf32>
    %1167 = arith.index_cast %c7_i32_353 : i32 to index
    %c0_356 = arith.constant 0 : index
    %c0_357 = arith.constant 0 : index
    %1168 = vector.load %arg29[%1167, %c0_356, %c0_357] : memref<8x8x128xf32, #tpu.memory_space<vmem>>, vector<1x8x128xf32>
    %1169 = vector.shape_cast %1168 : vector<1x8x128xf32> to vector<8x128xf32>
    %1170 = vector.extract_strided_slice %1166 {offsets = [0, 0], sizes = [8, 128], strides = [1, 1]} : vector<8x256xf32> to vector<8x128xf32>
    %1171 = arith.addf %1169, %1170 : vector<8x128xf32>
    %1172 = vector.extract_strided_slice %1171 {offsets = [0, 0], sizes = [8, 32], strides = [1, 1]} : vector<8x128xf32> to vector<8x32xf32>
    %1173 = arith.negf %1172 : vector<8x32xf32>
    %1174 = math.exp %1173 : vector<8x32xf32>
    %cst_358 = arith.constant 1.000000e+00 : f32
    %1175 = vector.broadcast %cst_358 : f32 to vector<8x32xf32>
    %1176 = arith.addf %1175, %1174 : vector<8x32xf32>
    %1177 = arith.divf %1175, %1176 : vector<8x32xf32>
    %1178 = vector.extract_strided_slice %1171 {offsets = [0, 32], sizes = [8, 32], strides = [1, 1]} : vector<8x128xf32> to vector<8x32xf32>
    %1179 = arith.negf %1178 : vector<8x32xf32>
    %1180 = math.exp %1179 : vector<8x32xf32>
    %cst_359 = arith.constant 1.000000e+00 : f32
    %1181 = vector.broadcast %cst_359 : f32 to vector<8x32xf32>
    %1182 = arith.addf %1181, %1180 : vector<8x32xf32>
    %1183 = arith.divf %1181, %1182 : vector<8x32xf32>
    %1184 = vector.extract_strided_slice %1171 {offsets = [0, 64], sizes = [8, 32], strides = [1, 1]} : vector<8x128xf32> to vector<8x32xf32>
    %1185 = math.tanh %1184 : vector<8x32xf32>
    %1186 = vector.extract_strided_slice %1171 {offsets = [0, 96], sizes = [8, 32], strides = [1, 1]} : vector<8x128xf32> to vector<8x32xf32>
    %1187 = arith.negf %1186 : vector<8x32xf32>
    %1188 = math.exp %1187 : vector<8x32xf32>
    %cst_360 = arith.constant 1.000000e+00 : f32
    %1189 = vector.broadcast %cst_360 : f32 to vector<8x32xf32>
    %1190 = arith.addf %1189, %1188 : vector<8x32xf32>
    %1191 = arith.divf %1189, %1190 : vector<8x32xf32>
    %1192 = arith.mulf %1183, %1122 : vector<8x32xf32>
    %1193 = arith.mulf %1177, %1185 : vector<8x32xf32>
    %1194 = arith.addf %1192, %1193 : vector<8x32xf32>
    %1195 = math.tanh %1194 : vector<8x32xf32>
    %1196 = arith.mulf %1191, %1195 : vector<8x32xf32>
    %1197 = arith.index_cast %1164 : i32 to index
    %c0_361 = arith.constant 0 : index
    %c0_362 = arith.constant 0 : index
    %1198 = vector.load %arg30[%1197, %c0_361, %c0_362] : memref<8x8x128xf32, #tpu.memory_space<vmem>>, vector<1x8x128xf32>
    %1199 = vector.shape_cast %1198 : vector<1x8x128xf32> to vector<8x128xf32>
    %1200 = vector.extract_strided_slice %1166 {offsets = [0, 128], sizes = [8, 128], strides = [1, 1]} : vector<8x256xf32> to vector<8x128xf32>
    %1201 = arith.addf %1199, %1200 : vector<8x128xf32>
    %1202 = vector.extract_strided_slice %1201 {offsets = [0, 0], sizes = [8, 32], strides = [1, 1]} : vector<8x128xf32> to vector<8x32xf32>
    %1203 = arith.negf %1202 : vector<8x32xf32>
    %1204 = math.exp %1203 : vector<8x32xf32>
    %cst_363 = arith.constant 1.000000e+00 : f32
    %1205 = vector.broadcast %cst_363 : f32 to vector<8x32xf32>
    %1206 = arith.addf %1205, %1204 : vector<8x32xf32>
    %1207 = arith.divf %1205, %1206 : vector<8x32xf32>
    %1208 = vector.extract_strided_slice %1201 {offsets = [0, 32], sizes = [8, 32], strides = [1, 1]} : vector<8x128xf32> to vector<8x32xf32>
    %1209 = arith.negf %1208 : vector<8x32xf32>
    %1210 = math.exp %1209 : vector<8x32xf32>
    %cst_364 = arith.constant 1.000000e+00 : f32
    %1211 = vector.broadcast %cst_364 : f32 to vector<8x32xf32>
    %1212 = arith.addf %1211, %1210 : vector<8x32xf32>
    %1213 = arith.divf %1211, %1212 : vector<8x32xf32>
    %1214 = vector.extract_strided_slice %1201 {offsets = [0, 64], sizes = [8, 32], strides = [1, 1]} : vector<8x128xf32> to vector<8x32xf32>
    %1215 = math.tanh %1214 : vector<8x32xf32>
    %1216 = vector.extract_strided_slice %1201 {offsets = [0, 96], sizes = [8, 32], strides = [1, 1]} : vector<8x128xf32> to vector<8x32xf32>
    %1217 = arith.negf %1216 : vector<8x32xf32>
    %1218 = math.exp %1217 : vector<8x32xf32>
    %cst_365 = arith.constant 1.000000e+00 : f32
    %1219 = vector.broadcast %cst_365 : f32 to vector<8x32xf32>
    %1220 = arith.addf %1219, %1218 : vector<8x32xf32>
    %1221 = arith.divf %1219, %1220 : vector<8x32xf32>
    %1222 = arith.mulf %1213, %1152 : vector<8x32xf32>
    %1223 = arith.mulf %1207, %1215 : vector<8x32xf32>
    %1224 = arith.addf %1222, %1223 : vector<8x32xf32>
    %1225 = math.tanh %1224 : vector<8x32xf32>
    %1226 = arith.mulf %1221, %1225 : vector<8x32xf32>
    %1227 = arith.index_cast %c7_i32_353 : i32 to index
    %c0_366 = arith.constant 0 : index
    %c0_367 = arith.constant 0 : index
    %1228 = vector.load %arg31[%1227, %c0_366, %c0_367] : memref<8x8x32xf32, #tpu.memory_space<vmem>>, vector<1x8x32xf32>
    %1229 = vector.shape_cast %1228 : vector<1x8x32xf32> to vector<8x32xf32>
    %1230 = vector.shape_cast %1196 : vector<8x32xf32> to vector<1x8x32xf32>
    tpu.vector_store %arg31[%1227, %c0_366, %c0_367], %1230 {strides = array<i32>} : memref<8x8x32xf32, #tpu.memory_space<vmem>>, vector<1x8x32xf32>,
    %1231 = arith.index_cast %1164 : i32 to index
    %c0_368 = arith.constant 0 : index
    %c0_369 = arith.constant 0 : index
    %1232 = vector.load %arg32[%1231, %c0_368, %c0_369] : memref<8x8x32xf32, #tpu.memory_space<vmem>>, vector<1x8x32xf32>
    %1233 = vector.shape_cast %1232 : vector<1x8x32xf32> to vector<8x32xf32>
    %1234 = vector.shape_cast %1226 : vector<8x32xf32> to vector<1x8x32xf32>
    tpu.vector_store %arg32[%1231, %c0_368, %c0_369], %1234 {strides = array<i32>} : memref<8x8x32xf32, #tpu.memory_space<vmem>>, vector<1x8x32xf32>,
    %1235 = tpu.concatenate %1196, %1226 in 1 : vector<8x32xf32>, vector<8x32xf32> -> vector<8x64xf32>
    %c8_i32_370 = arith.constant 8 : i32
    %c0_371 = arith.constant 0 : index
    %c0_372 = arith.constant 0 : index
    %c0_373 = arith.constant 0 : index
    %1236 = vector.load %arg31[%c0_371, %c0_372, %c0_373] : memref<8x8x32xf32, #tpu.memory_space<vmem>>, vector<8x8x32xf32>
    %c0_374 = arith.constant 0 : index
    %c0_375 = arith.constant 0 : index
    %c0_376 = arith.constant 0 : index
    %1237 = vector.load %arg32[%c0_374, %c0_375, %c0_376] : memref<8x8x32xf32, #tpu.memory_space<vmem>>, vector<8x8x32xf32>
    %1238 = tpu.concatenate %1236, %1237 in 2 : vector<8x8x32xf32>, vector<8x8x32xf32> -> vector<8x8x64xf32>
    %1239 = arith.truncf %1238 : vector<8x8x64xf32> to vector<8x8x64xbf16>
    %c0_377 = arith.constant 0 : index
    %c0_378 = arith.constant 0 : index
    %1240 = vector.load %arg20[%c0_377, %c0_378] : memref<64x1xbf16, #tpu.memory_space<vmem>>, vector<64x1xbf16>
    "tpu.trace_start"() <{level = 10 : i32, message = "lbh,hk->lbk"}> : () -> ()
    %cst_379 = arith.constant dense<0.000000e+00> : vector<8x8x1xf32>
    %1241 = tpu.matmul %1239, %1240, %cst_379 {dimension_numbers = #tpu.dot_dimension_numbers<[2], [0], [0, 1], [1], [0, 0, 0, 1, 1, 1], [], []>} : vector<8x8x64xbf16>, vector<64x1xbf16>, vector<8x8x1xf32> -> vector<8x8x1xf32>
    "tpu.trace_stop"() : () -> ()
    %c0_380 = arith.constant 0 : index
    %c0_381 = arith.constant 0 : index
    %1242 = vector.load %arg21[%c0_380, %c0_381] : memref<1x1xf32, #tpu.memory_space<vmem>>, vector<1x1xf32>
    %1243 = vector.extract %1242[0, 0] : f32 from vector<1x1xf32>
    %1244 = vector.broadcast %1243 : f32 to vector<8x8x1xf32>
    %1245 = arith.addf %1241, %1244 : vector<8x8x1xf32>
    %cst_382 = arith.constant dense<0xFF800000> : vector<8x1xf32>
    %1246 = vector.multi_reduction <maximumf>, %1245, %cst_382 [0] : vector<8x8x1xf32> to vector<8x1xf32>
    %1247 = vector.shape_cast %1246 : vector<8x1xf32> to vector<1x8x1xf32>
    %1248 = vector.broadcast %1247 : vector<1x8x1xf32> to vector<8x8x1xf32>
    %1249 = arith.subf %1245, %1248 : vector<8x8x1xf32>
    %1250 = math.exp %1249 : vector<8x8x1xf32>
    %cst_383 = arith.constant dense<0.000000e+00> : vector<8x1xf32>
    %1251 = vector.multi_reduction <add>, %1250, %cst_383 [0] : vector<8x8x1xf32> to vector<8x1xf32>
    %1252 = vector.shape_cast %1251 : vector<8x1xf32> to vector<1x8x1xf32>
    %1253 = tpu.reciprocal %1252 {approx = true} : vector<1x8x1xf32> -> vector<1x8x1xf32>
    %1254 = vector.broadcast %1253 : vector<1x8x1xf32> to vector<8x8x1xf32>
    %1255 = arith.mulf %1250, %1254 : vector<8x8x1xf32>
    %1256 = vector.broadcast %1255 : vector<8x8x1xf32> to vector<8x8x64xf32>
    %1257 = arith.mulf %1238, %1256 : vector<8x8x64xf32>
    %cst_384 = arith.constant dense<0.000000e+00> : vector<8x64xf32>
    %1258 = vector.multi_reduction <add>, %1257, %cst_384 [0] : vector<8x8x64xf32> to vector<8x64xf32>
    %1259 = arith.truncf %1258 : vector<8x64xf32> to vector<8x64xbf16>
    %c0_385 = arith.constant 0 : index
    %c0_386 = arith.constant 0 : index
    %1260 = vector.load %arg22[%c0_385, %c0_386] : memref<64x32xbf16, #tpu.memory_space<vmem>>, vector<64x32xbf16>
    %cst_387 = arith.constant dense<0.000000e+00> : vector<8x32xf32>
    %1261 = tpu.matmul %1259, %1260, %cst_387 {dimension_numbers = #tpu.dot_dimension_numbers<[1], [0], [0], [1], [0, 0, 1, 1], [], []>} : vector<8x64xbf16>, vector<64x32xbf16>, vector<8x32xf32> -> vector<8x32xf32>
    %c0_388 = arith.constant 0 : index
    %c0_389 = arith.constant 0 : index
    %1262 = vector.load %arg23[%c0_388, %c0_389] : memref<1x32xf32, #tpu.memory_space<vmem>>, vector<1x32xf32>
    %1263 = vector.broadcast %1262 : vector<1x32xf32> to vector<8x32xf32>
    %1264 = arith.addf %1261, %1263 : vector<8x32xf32>
    %cst_390 = arith.constant 5.000000e-01 : f32
    %1265 = vector.broadcast %cst_390 : f32 to vector<8x32xf32>
    %1266 = arith.mulf %1265, %1264 : vector<8x32xf32>
    %cst_391 = arith.constant 0.707106769 : f32
    %1267 = vector.broadcast %cst_391 : f32 to vector<8x32xf32>
    %1268 = arith.mulf %1264, %1267 : vector<8x32xf32>
    %1269 = math.erf %1268 : vector<8x32xf32>
    %cst_392 = arith.constant 1.000000e+00 : f32
    %1270 = vector.broadcast %cst_392 : f32 to vector<8x32xf32>
    %1271 = arith.addf %1270, %1269 : vector<8x32xf32>
    %1272 = arith.mulf %1266, %1271 : vector<8x32xf32>
    %1273 = arith.truncf %1272 : vector<8x32xf32> to vector<8x32xbf16>
    %c0_393 = arith.constant 0 : index
    %c0_394 = arith.constant 0 : index
    %1274 = vector.load %arg24[%c0_393, %c0_394] : memref<32x128xbf16, #tpu.memory_space<vmem>>, vector<32x128xbf16>
    %cst_395 = arith.constant dense<0.000000e+00> : vector<8x128xf32>
    %1275 = tpu.matmul %1273, %1274, %cst_395 {dimension_numbers = #tpu.dot_dimension_numbers<[1], [0], [0], [1], [0, 0, 1, 1], [], []>} : vector<8x32xbf16>, vector<32x128xbf16>, vector<8x128xf32> -> vector<8x128xf32>
    %c0_396 = arith.constant 0 : index
    %c0_397 = arith.constant 0 : index
    %1276 = vector.load %arg25[%c0_396, %c0_397] : memref<1x128xf32, #tpu.memory_space<vmem>>, vector<1x128xf32>
    %1277 = vector.broadcast %1276 : vector<1x128xf32> to vector<8x128xf32>
    %1278 = arith.addf %1275, %1277 : vector<8x128xf32>
    %c0_398 = arith.constant 0 : index
    %c0_399 = arith.constant 0 : index
    %1279 = vector.load %arg26[%c0_398, %c0_399] : memref<8x128xf32, #tpu.memory_space<vmem>>, vector<8x128xf32>
    tpu.vector_store %arg26[%c0_398, %c0_399], %1278 {strides = array<i32>} : memref<8x128xf32, #tpu.memory_space<vmem>>, vector<8x128xf32>,
    return
  }
  func.func @transform_0(%arg0: i32) -> (i32, i32, i32) {
    %c0_i32 = arith.constant 0 : i32
    %c0_i32_0 = arith.constant 0 : i32
    %c0_i32_1 = arith.constant 0 : i32
    return %c0_i32, %arg0, %c0_i32_0 : i32, i32, i32
  }
  func.func @transform_1(%arg0: i32) -> (i32, i32) {
    %c0_i32 = arith.constant 0 : i32
    %c0_i32_0 = arith.constant 0 : i32
    %c0_i32_1 = arith.constant 0 : i32
    return %c0_i32, %c0_i32_0 : i32, i32
  }
  func.func @transform_2(%arg0: i32) -> (i32, i32) {
    %c0_i32 = arith.constant 0 : i32
    %c0_i32_0 = arith.constant 0 : i32
    %c0_i32_1 = arith.constant 0 : i32
    return %c0_i32, %c0_i32_0 : i32, i32
  }
  func.func @transform_3(%arg0: i32) -> (i32, i32) {
    %c0_i32 = arith.constant 0 : i32
    %c0_i32_0 = arith.constant 0 : i32
    %c0_i32_1 = arith.constant 0 : i32
    return %c0_i32, %c0_i32_0 : i32, i32
  }
  func.func @transform_4(%arg0: i32) -> (i32, i32) {
    %c0_i32 = arith.constant 0 : i32
    %c0_i32_0 = arith.constant 0 : i32
    %c0_i32_1 = arith.constant 0 : i32
    return %c0_i32, %c0_i32_0 : i32, i32
  }
  func.func @transform_5(%arg0: i32) -> (i32, i32) {
    %c0_i32 = arith.constant 0 : i32
    %c0_i32_0 = arith.constant 0 : i32
    %c0_i32_1 = arith.constant 0 : i32
    return %c0_i32, %c0_i32_0 : i32, i32
  }
  func.func @transform_6(%arg0: i32) -> (i32, i32) {
    %c0_i32 = arith.constant 0 : i32
    %c0_i32_0 = arith.constant 0 : i32
    %c0_i32_1 = arith.constant 0 : i32
    return %c0_i32, %c0_i32_0 : i32, i32
  }
  func.func @transform_7(%arg0: i32) -> (i32, i32) {
    %c0_i32 = arith.constant 0 : i32
    %c0_i32_0 = arith.constant 0 : i32
    %c0_i32_1 = arith.constant 0 : i32
    return %c0_i32, %c0_i32_0 : i32, i32
  }
  func.func @transform_8(%arg0: i32) -> (i32, i32) {
    %c0_i32 = arith.constant 0 : i32
    %c0_i32_0 = arith.constant 0 : i32
    %c0_i32_1 = arith.constant 0 : i32
    return %c0_i32, %c0_i32_0 : i32, i32
  }
  func.func @transform_9(%arg0: i32) -> (i32, i32) {
    %c0_i32 = arith.constant 0 : i32
    %c0_i32_0 = arith.constant 0 : i32
    %c0_i32_1 = arith.constant 0 : i32
    return %c0_i32, %c0_i32_0 : i32, i32
  }
  func.func @transform_10(%arg0: i32) -> (i32, i32) {
    %c0_i32 = arith.constant 0 : i32
    %c0_i32_0 = arith.constant 0 : i32
    %c0_i32_1 = arith.constant 0 : i32
    return %c0_i32, %c0_i32_0 : i32, i32
  }
  func.func @transform_11(%arg0: i32) -> (i32, i32) {
    %c0_i32 = arith.constant 0 : i32
    %c0_i32_0 = arith.constant 0 : i32
    %c0_i32_1 = arith.constant 0 : i32
    return %c0_i32, %c0_i32_0 : i32, i32
  }
  func.func @transform_12(%arg0: i32) -> (i32, i32) {
    %c0_i32 = arith.constant 0 : i32
    %c0_i32_0 = arith.constant 0 : i32
    %c0_i32_1 = arith.constant 0 : i32
    return %c0_i32, %c0_i32_0 : i32, i32
  }
  func.func @transform_13(%arg0: i32) -> (i32, i32) {
    %c0_i32 = arith.constant 0 : i32
    %c0_i32_0 = arith.constant 0 : i32
    %c0_i32_1 = arith.constant 0 : i32
    return %c0_i32, %c0_i32_0 : i32, i32
  }
  func.func @transform_14(%arg0: i32) -> (i32, i32) {
    %c0_i32 = arith.constant 0 : i32
    %c0_i32_0 = arith.constant 0 : i32
    %c0_i32_1 = arith.constant 0 : i32
    return %c0_i32, %c0_i32_0 : i32, i32
  }
  func.func @transform_15(%arg0: i32) -> (i32, i32) {
    %c0_i32 = arith.constant 0 : i32
    %c0_i32_0 = arith.constant 0 : i32
    %c0_i32_1 = arith.constant 0 : i32
    return %c0_i32, %c0_i32_0 : i32, i32
  }
  func.func @transform_16(%arg0: i32) -> (i32, i32) {
    %c0_i32 = arith.constant 0 : i32
    %c0_i32_0 = arith.constant 0 : i32
    %c0_i32_1 = arith.constant 0 : i32
    return %c0_i32, %c0_i32_0 : i32, i32
  }
  func.func @transform_17(%arg0: i32) -> (i32, i32) {
    %c0_i32 = arith.constant 0 : i32
    %c0_i32_0 = arith.constant 0 : i32
    %c0_i32_1 = arith.constant 0 : i32
    return %c0_i32, %c0_i32_0 : i32, i32
  }
  func.func @transform_18(%arg0: i32) -> (i32, i32) {
    %c0_i32 = arith.constant 0 : i32
    %c0_i32_0 = arith.constant 0 : i32
    %c0_i32_1 = arith.constant 0 : i32
    return %c0_i32, %c0_i32_0 : i32, i32
  }
  func.func @transform_19(%arg0: i32) -> (i32, i32) {
    %c0_i32 = arith.constant 0 : i32
    %c0_i32_0 = arith.constant 0 : i32
    %c0_i32_1 = arith.constant 0 : i32
    return %c0_i32, %c0_i32_0 : i32, i32
  }
  func.func @transform_20(%arg0: i32) -> (i32, i32) {
    %c0_i32 = arith.constant 0 : i32
    %c0_i32_0 = arith.constant 0 : i32
    %c0_i32_1 = arith.constant 0 : i32
    return %c0_i32, %c0_i32_0 : i32, i32
  }
  func.func @transform_21(%arg0: i32) -> (i32, i32) {
    %c0_i32 = arith.constant 0 : i32
    %c0_i32_0 = arith.constant 0 : i32
    %c0_i32_1 = arith.constant 0 : i32
    return %c0_i32, %c0_i32_0 : i32, i32
  }
  func.func @transform_22(%arg0: i32) -> (i32, i32) {
    %c0_i32 = arith.constant 0 : i32
    %c0_i32_0 = arith.constant 0 : i32
    %c0_i32_1 = arith.constant 0 : i32
    return %c0_i32, %c0_i32_0 : i32, i32
  }
  func.func @transform_23(%arg0: i32) -> (i32, i32) {
    %c0_i32 = arith.constant 0 : i32
    %c0_i32_0 = arith.constant 0 : i32
    %c0_i32_1 = arith.constant 0 : i32
    return %c0_i32, %c0_i32_0 : i32, i32
  }
  func.func @transform_24(%arg0: i32) -> (i32, i32) {
    %c0_i32 = arith.constant 0 : i32
    %c0_i32_0 = arith.constant 0 : i32
    %c0_i32_1 = arith.constant 0 : i32
    return %c0_i32, %c0_i32_0 : i32, i32
  }
  func.func @transform_25(%arg0: i32) -> (i32, i32) {
    %c0_i32 = arith.constant 0 : i32
    %c0_i32_0 = arith.constant 0 : i32
    return %arg0, %c0_i32 : i32, i32
  }
}

</mosaic_0001>

<bundles_post_ra>
// kernel: forward.1
= control target key start
LH: loop header
LB: loop body
LE: loop exit
PB: predicated region body
PF: predicated region fallthrough
CT: control target
= control target key end

     0   :  { %s5857_s0 = inlined_call_operand.vmem [shape: f32[8,8,4], index: 0, kind: input, shape index: {}]   ;;  %s5858_s1 = inlined_call_operand.vmem [shape: bf16[4,16], index: 1, kind: input, shape index: {}]   ;;  %s5859_s2 = inlined_call_operand.vmem [shape: bf16[4,16], index: 2, kind: input, shape index: {}]   ;;  %s5860_s3 = inlined_call_operand.vmem [shape: bf16[4,16], index: 3, kind: input, shape index: {}]   ;;  %s5861_s4 = inlined_call_operand.vmem [shape: f32[1,16], index: 4, kind: input, shape index: {}]   ;;  %s5862_s5 = inlined_call_operand.vmem [shape: bf16[16,16], index: 5, kind: input, shape index: {}]   ;;  %s5863_s6 = inlined_call_operand.hbm [shape: bf16[16,16], index: 6, kind: input, shape index: {}]   ;;  %s5864_s7 = inlined_call_operand.hbm [shape: bf16[16,16], index: 7, kind: input, shape index: {}]   ;;  %s5865_s8 = inlined_call_operand.vmem [shape: f32[1,16], index: 8, kind: input, shape index: {}]   ;;  %s5866_s9 = inlined_call_operand.hbm [shape: bf16[16,128], index: 9, kind: input, shape index: {}]   ;;  %s5867_s10 = inlined_call_operand.hbm [shape: bf16[16,128], index: 10, kind: input, shape index: {}]   ;;  %s5868_s11 = inlined_call_operand.vmem [shape: f32[1,128], index: 11, kind: input, shape index: {}]   ;;  %s5869_s12 = inlined_call_operand.vmem [shape: f32[1,128], index: 12, kind: input, shape index: {}]   ;;  %s5870_s13 = inlined_call_operand.vmem [shape: bf16[64,256], index: 13, kind: input, shape index: {}]   ;;  %s5871_s14 = inlined_call_operand.vmem [shape: bf16[64,128], index: 14, kind: input, shape index: {}]   ;;  %s5872_s15 = inlined_call_operand.vmem [shape: bf16[64,128], index: 15, kind: input, shape index: {}]   ;;  %s5873_s16 = inlined_call_operand.vmem [shape: f32[1,128], index: 16, kind: input, shape index: {}]   ;;  %s5874_s17 = inlined_call_operand.vmem [shape: f32[1,128], index: 17, kind: input, shape index: {}]   ;;  %s5875_s18 = inlined_call_operand.vmem [shape: bf16[64,256], index: 18, kind: input, shape index: {}]   ;;  %s5876_s19 = inlined_call_operand.vmem [shape: bf16[64,1], index: 19, kind: input, shape index: {}]   ;;  %s5877_s20 = inlined_call_operand.<no memory space> [shape: f32[1,1], index: 20, kind: input, shape index: {}]   ;;  %s5878_s21 = inlined_call_operand.vmem [shape: bf16[64,32], index: 21, kind: input, shape index: {}]   ;;  %s5879_s22 = inlined_call_operand.vmem [shape: f32[1,32], index: 22, kind: input, shape index: {}]   ;;  %s5880_s23 = inlined_call_operand.hbm [shape: bf16[32,128], index: 23, kind: input, shape index: {}]   ;;  %s5881_s24 = inlined_call_operand.vmem [shape: f32[1,128], index: 24, kind: input, shape index: {}]   ;;  %s5882_s25 = inlined_call_operand.vmem [shape: f32[8,128], index: 25, kind: output, shape index: {}]  }
   0x1   :  { %5887 = sst [smem:[#allocation20_spill]] %s5857_s0  ;;  %v30_v0 = vstv %s5877_s20 }
   0x2   :  { %5888 = sst [smem:[#allocation21_spill]] %s5858_s1  ;;  %31 = vst [vmem:[#allocation8] sm:$0x1] %v30_v0 }
   0x3   :  { %5889 = sst [smem:[#allocation22_spill]] %s5859_s2 }
   0x4   :  { %5890 = sst [smem:[#allocation23_spill]] %s5860_s3 }
   0x5   :  { %5891 = sst [smem:[#allocation24_spill]] %s5861_s4 }
   0x6   :  { %5892 = sst [smem:[#allocation25_spill]] %s5862_s5 }
   0x7   :  { %5893 = sst [smem:[#allocation26_spill]] %s5863_s6 }
   0x8   :  { %5894 = sst [smem:[#allocation27_spill]] %s5864_s7 }
   0x9   :  { %5895 = sst [smem:[#allocation28_spill]] %s5865_s8 }
   0xa   :  { %5896 = sst [smem:[#allocation29_spill]] %s5866_s9 }
   0xb   :  { %5897 = sst [smem:[#allocation30_spill]] %s5882_s25 }
   0xc   :  { %32 = vsyncpa [#allocation10], 0 }
   0xd   :  { %33 = vsyncpa [#allocation12], 0 }
   0xe   :  { %34 = vsyncpa [#allocation15], 0  ;;  %s4785_s6 = smov [#allocation11]   ;;  %s4786_s7 = smov [#allocation14]  }
   0xf   :  { %s64_s30 = sshll.u32 %s4785_s6, 4  ;;  %s90_s3 = sshll.u32 %s4786_s7, 4  ;;  %s65_s30 = int_to_ptr.vmem [resolvable:$true] %s64_s30  ;;  %s4929_s3 = int_to_ptr.vmem [resolvable:$true] %s90_s3 }
  0x10   :  { %s5898_s8 = sld [smem:[#allocation27_spill]] }
  0x16   :  { %s4669_s27 = scalar_lea.hbm %s5898_s8, 128 }
  0x17   :  { %p4670_p0 = scmp.ne.s32.totalorder %s5898_s8, %s4669_s27  ;;  %p4673_p1 = scmp.lt.u32.totalorder %s4669_s27, %s5898_s8 }
  0x19   :  { %p4675_p2 = pnand %p4673_p1, %p4670_p0 }
  0x1b   :  { %4678 = shalt.err (!%p4675_p2)
}
  0x1c   :  { %s4679_s5 = scalar_lea.vmem %s65_s30, 128  ;;  %p4684_p4 = scmp.lt.s32.totalorder %s65_s30, %s65_s30 }
  0x1d   :  { %p4680_p3 = scmp.ne.s32.totalorder %s65_s30, %s4679_s5  ;;  %p4685_p5 = scmp.lt.s32.totalorder %s4679_s5, %s4679_s5 }
  0x1f   :  { %p4686_p6 = por %p4685_p5, %p4684_p4 }
  0x21   :  { %p4687_p7 = pnand %p4686_p6, %p4680_p3 }
  0x23   :  { %4690 = shalt.err (!%p4687_p7)
}
  0x24   :  { %s4787_s0 = smov 64   ;;  %s4788_s29 = smov 4  }
  0x25   :  { %70 = dma.hbm_to_vmem [thread:$0]  %s5898_s8, 128, %s65_s30, [#allocation12], %s4787_s0, %s4787_s0, %s4788_s29  }
  0x26   :  { %s4691_s1 = scalar_lea.hbm %s5867_s10, 128 }
  0x27   :  { %p4692_p8 = scmp.ne.s32.totalorder %s5867_s10, %s4691_s1  ;;  %p4695_p9 = scmp.lt.u32.totalorder %s4691_s1, %s5867_s10 }
  0x29   :  { %p4697_p10 = pnand %p4695_p9, %p4692_p8 }
  0x2b   :  { %4700 = shalt.err (!%p4697_p10)
}
  0x2c   :  { %s4701_s9 = scalar_lea.vmem %s4929_s3, 128  ;;  %p4706_p12 = scmp.lt.s32.totalorder %s4929_s3, %s4929_s3 }
  0x2d   :  { %p4702_p11 = scmp.ne.s32.totalorder %s4929_s3, %s4701_s9  ;;  %p4707_p13 = scmp.lt.s32.totalorder %s4701_s9, %s4701_s9 }
  0x2f   :  { %p4708_p0 = por %p4707_p13, %p4706_p12 }
  0x31   :  { %p4709_p1 = pnand %p4708_p0, %p4702_p11 }
  0x33   :  { %4712 = shalt.err (!%p4709_p1)
}
  0x34   :  { %96 = dma.hbm_to_vmem [thread:$0]  %s5867_s10, 128, %s4929_s3, [#allocation15], %s4787_s0, %s4787_s0, %s4788_s29  }
  0x35   :  { %s4789_s5 = smov [#allocation9]   ;;  %s4790_s6 = smov [#allocation13]  }
  0x36   :  { %s52_s2 = sshll.u32 %s4789_s5, 4  ;;  %s78_s7 = sshll.u32 %s4790_s6, 4  ;;  %s53_s2 = int_to_ptr.vmem [resolvable:$true] %s52_s2  ;;  %s4966_s7 = int_to_ptr.vmem [resolvable:$true] %s78_s7 }
  0x37   :  { %s5899_s27 = sld [smem:[#allocation26_spill]] }
  0x3d   :  { %s4713_s4 = scalar_lea.hbm %s5899_s27, 128 }
  0x3e   :  { %p4714_p2 = scmp.ne.s32.totalorder %s5899_s27, %s4713_s4  ;;  %p4717_p3 = scmp.lt.u32.totalorder %s4713_s4, %s5899_s27 }
  0x40   :  { %p4719_p4 = pnand %p4717_p3, %p4714_p2 }
  0x42   :  { %4722 = shalt.err (!%p4719_p4)
}
  0x43   :  { %s4723_s10 = scalar_lea.vmem %s53_s2, 128  ;;  %p4728_p6 = scmp.lt.s32.totalorder %s53_s2, %s53_s2 }
  0x44   :  { %p4724_p5 = scmp.ne.s32.totalorder %s53_s2, %s4723_s10  ;;  %p4729_p7 = scmp.lt.s32.totalorder %s4723_s10, %s4723_s10 }
  0x46   :  { %p4730_p8 = por %p4729_p7, %p4728_p6 }
  0x48   :  { %p4731_p9 = pnand %p4730_p8, %p4724_p5 }
  0x4a   :  { %4734 = shalt.err (!%p4731_p9)
}
  0x4b   :  { %58 = dma.hbm_to_vmem [thread:$0]  %s5899_s27, 128, %s53_s2, [#allocation10], %s4787_s0, %s4787_s0, %s4788_s29  }
  0x4c   :  { %s5900_s25 = sld [smem:[#allocation29_spill]] }
  0x52   :  { %s4735_s6 = scalar_lea.hbm %s5900_s25, 128 }
  0x53   :  { %p4736_p10 = scmp.ne.s32.totalorder %s5900_s25, %s4735_s6  ;;  %p4739_p11 = scmp.lt.u32.totalorder %s4735_s6, %s5900_s25 }
  0x55   :  { %p4741_p12 = pnand %p4739_p11, %p4736_p10 }
  0x57   :  { %4744 = shalt.err (!%p4741_p12)
}
  0x58   :  { %s4745_s20 = scalar_lea.vmem %s4966_s7, 128  ;;  %p4750_p0 = scmp.lt.s32.totalorder %s4966_s7, %s4966_s7 }
  0x59   :  { %p4746_p13 = scmp.ne.s32.totalorder %s4966_s7, %s4745_s20  ;;  %p4751_p1 = scmp.lt.s32.totalorder %s4745_s20, %s4745_s20 }
  0x5b   :  { %p4752_p2 = por %p4751_p1, %p4750_p0 }
  0x5d   :  { %p4753_p3 = pnand %p4752_p2, %p4746_p13 }
  0x5f   :  { %4756 = shalt.err (!%p4753_p3)
}
  0x60   :  { %84 = dma.hbm_to_vmem [thread:$0]  %s5900_s25, 128, %s4966_s7, [#allocation12], %s4787_s0, %s4787_s0, %s4788_s29  }
  0x61   :  { %s4791_s9 = smov [#allocation16]   ;;  %s4757_s8 = scalar_lea.hbm %s5880_s23, 256 }
  0x62   :  { %s126_s10 = sshll.u32 %s4791_s9, 4  ;;  %p4758_p4 = scmp.ne.s32.totalorder %s5880_s23, %s4757_s8  ;;  %s127_s10 = int_to_ptr.vmem [resolvable:$true] %s126_s10 }
  0x63   :  { %p4761_p5 = scmp.lt.u32.totalorder %s4757_s8, %s5880_s23 }
  0x65   :  { %p4763_p6 = pnand %p4761_p5, %p4758_p4 }
  0x67   :  { %4766 = shalt.err (!%p4763_p6)
}
  0x68   :  { %s4767_s4 = scalar_lea.vmem %s127_s10, 256  ;;  %p4772_p8 = scmp.lt.s32.totalorder %s127_s10, %s127_s10 }
  0x69   :  { %p4768_p7 = scmp.ne.s32.totalorder %s127_s10, %s4767_s4  ;;  %p4773_p9 = scmp.lt.s32.totalorder %s4767_s4, %s4767_s4 }
  0x6b   :  { %p4774_p10 = por %p4773_p9, %p4772_p8 }
  0x6d   :  { %p4775_p11 = pnand %p4774_p10, %p4768_p7 }
  0x6f   :  { %4778 = shalt.err (!%p4775_p11)
}
  0x70   :  { %132 = dma.hbm_to_vmem [thread:$0]  %s5880_s23, 256, %s127_s10, [#allocation15], %s4787_s0, %s4787_s0, %s4788_s29  }
  0x71   :  { %4779 = dma.done.wait [#allocation10], 128  }
  0x72   :  { %4780 = vsyncadd [#allocation10], 4294967168 }
  0x73   :  { %4781 = dma.done.wait [#allocation12], 256  }
  0x74   :  { %4782 = vsyncadd [#allocation12], 4294967040 }
  0x75   :  { %4783 = dma.done.wait [#allocation15], 384  }
  0x76   :  { %4784 = vsyncadd [#allocation15], 4294966912  ;;  %vm171_vm0 = vcmask 27648   ;;  %v4792_v1 = vmov 0   ;;  %vm233_vm1 = vcmask 1041408   ;;  %s5901_s28 = sld [smem:[#allocation22_spill]] }
  0x77   :  { %172 = vst.msk [vmem:[#allocation2] sm:$0xf] %vm171_vm0, %v4792_v1  ;;  %174 = vst.msk [vmem:[#allocation2 + $0x24] sm:$0xf] %vm171_vm0, %v4792_v1  ;;  %4321 = vset.pattern.permute.xlu1 %v4792_v1  ;;  %4320 = vset.pattern.permute.xlu0 %v4792_v1  ;;  %s5902_s27 = sld [smem:[#allocation20_spill]]  ;;  %s5903_s8 = sld [smem:[#allocation21_spill]] }
  0x78   :  { %vm220_vm2 = vcmask 31744   ;;  %s5904_s3 = sld [smem:[#allocation23_spill]]  ;;  %vm556_vm3 = vcmask 125952   ;;  %v4334_v36 = vld [vmem:[#allocation9] sm:$0xff]   ;;  %v4349_v38 = vld [vmem:[#allocation13] sm:$0xff]   ;;  %s5906_s26 = sld [smem:[#allocation24_spill]] }
  0x79   :  { %557 = vst.msk [vmem:[#allocation3] sm:$0xf] %vm556_vm3, %v4792_v1  ;;  %559 = vst.msk [vmem:[#allocation3 + $0x24] sm:$0xf] %vm556_vm3, %v4792_v1  ;;  %4134 = vmatprep.subr.bf16.mxu1 %v4334_v36  ;;  %vm611_vm4 = vcmask 130048   ;;  %s5907_s23 = sld [smem:[#allocation28_spill]] }
  0x7a   :  { %4135 = vmatpush3.bf16.msra.mxu1 %v4334_v36  ;;  %vm1300_vm5 = vcmask 261120   ;;  %vm1198_vm6 = vcmask 523264   ;;  %vm3555_vm7 = vcmask 7168   ;;  %vm4795_vm8 = vmmov 0   ;;  %s5908_s10 = sld [smem:[#allocation30_spill]] }
  0x7c   :  { %v168_v2 = vld [vmem:[%s5901_s28] sm:$0x3] }
  0x7d   :  { %v151_v3 = vld [vmem:[%s5902_s27] sm:$0xff]  ;;  %v152_v4 = vld [vmem:[%s5902_s27 + $0x8] sm:$0xff]  ;;  %4284 = vmatprep.subr.msk.bf16.mxu0 %vm233_vm1, %v168_v2  ;;  %v235_v5 = vsel %vm233_vm1, %v168_v2, 0  ;;  %v153_v9 = vld [vmem:[%s5902_s27 + $0x10] sm:$0xff] }
  0x7e   :  { %v159_v6 = vpack.c.bf16 %v151_v3, %v151_v3  ;;  %v160_v7 = vpack.c.bf16 %v152_v4, %v152_v4  ;;  %v167_v8 = vld [vmem:[%s5903_s8] sm:$0x3]  ;;  %v154_v10 = vld [vmem:[%s5902_s27 + $0x18] sm:$0xff]  ;;  %4105 = vmatpush3.bf16.msra.mxu0 %v235_v5  ;;  %v161_v11 = vpack.c.bf16 %v153_v9, %v153_v9  ;;  %v156_v14 = vld [vmem:[%s5902_s27 + $0x28] sm:$0xff]  ;;  %s5905_s8 = sld [smem:[#allocation25_spill]] }
  0x7f   :  { %v162_v12 = vpack.c.bf16 %v154_v10, %v154_v10  ;;  %v155_v13 = vld [vmem:[%s5902_s27 + $0x20] sm:$0xff]  ;;  %v157_v15 = vld [vmem:[%s5902_s27 + $0x30] sm:$0xff]  ;;  %4285 = vmatprep.subr.msk.bf16.mxu0 %vm233_vm1, %v167_v8  ;;  %v164_v17 = vpack.c.bf16 %v156_v14, %v156_v14  ;;  %v158_v18 = vld [vmem:[%s5902_s27 + $0x38] sm:$0xff]  ;;  %v335_v24 = vsel %vm233_vm1, %v167_v8, 0 }
  0x80   :  { %176 = vst.msk [vmem:[#allocation2 + $0x4] sm:$0xf] %vm171_vm0, %v159_v6  ;;  %177 = vst.msk [vmem:[#allocation2 + $0x8] sm:$0xf] %vm171_vm0, %v160_v7  ;;  %v163_v16 = vpack.c.bf16 %v155_v13, %v155_v13  ;;  %v165_v19 = vpack.c.bf16 %v157_v15, %v157_v15  ;;  %v166_v20 = vpack.c.bf16 %v158_v18, %v158_v18  ;;  %v169_v22 = vld [vmem:[%s5904_s3] sm:$0x3] }
  0x81   :  { %178 = vst.msk [vmem:[#allocation2 + $0xc] sm:$0xf] %vm171_vm0, %v161_v11  ;;  %179 = vst.msk [vmem:[#allocation2 + $0x10] sm:$0xf] %vm171_vm0, %v162_v12  ;;  %v444_v30 = vsel %vm233_vm1, %v169_v22, 0  ;;  %v4341_v9 = vld [vmem:[#allocation11] sm:$0xff]  }
  0x82   :  { %180 = vst.msk [vmem:[#allocation2 + $0x14] sm:$0xf] %vm171_vm0, %v163_v16  ;;  %181 = vst.msk [vmem:[#allocation2 + $0x18] sm:$0xf] %vm171_vm0, %v164_v17  ;;  %v3869_v39 = vld [vmem:[%s5906_s26] ss:$0 sm:$0xff] }
  0x83   :  { %182 = vst.msk [vmem:[#allocation2 + $0x1c] sm:$0xf] %vm171_vm0, %v165_v19  ;;  %183 = vst.msk [vmem:[#allocation2 + $0x20] sm:$0xf] %vm171_vm0, %v166_v20 }
  0x84   :  { %v4336_v37 = vld [vmem:[%s5905_s8] sm:$0xff]  }
  0x85   :  { %4144 = vmatprep.subr.bf16.mxu1 %v4336_v37 }
  0x87   :  { %v4322_v21 = vld [vmem:[#allocation2 + $0x4] sm:$0xff]  }
  0x88   :  { %v4323_v23 = vld [vmem:[#allocation2 + $0xc] sm:$0xff]   ;;  %4106 = vmatprep.mubr.msk.bf16.mxu0 %vm220_vm2, %v4322_v21  ;;  %v4326_v27 = vld [vmem:[#allocation2] sm:$0xff]  }
  0x89   :  { %v4324_v25 = vld [vmem:[#allocation2 + $0x14] sm:$0xff]   ;;  %4107 = vmatmul.mubr.msk.bf16.vlgmr.msra.gmra.mrb[0].mxu0 %vm220_vm2, %v4323_v23  ;;  %v4327_v28 = vld [vmem:[#allocation2 + $0x8] sm:$0xff]  }
  0x8a   :  { %4115 = vmatpush3.bf16.msra.mxu0 %v335_v24  ;;  %4110 = vmatprep.mubr.msk.bf16.mxu0 %vm220_vm2, %v4324_v25  ;;  %v4325_v26 = vld [vmem:[#allocation2 + $0x1c] sm:$0xff]   ;;  %v4328_v29 = vld [vmem:[#allocation2 + $0x10] sm:$0xff]   ;;  %v4330_v32 = vld [vmem:[#allocation2 + $0x8] sm:$0xff]  }
  0x8b   :  { %4286 = vmatprep.subr.msk.bf16.mxu0 %vm233_vm1, %v169_v22  ;;  %v4329_v31 = vld [vmem:[#allocation2 + $0x18] sm:$0xff]   ;;  %v4331_v33 = vld [vmem:[#allocation2 + $0x10] sm:$0xff]   ;;  %v4333_v35 = vld [vmem:[#allocation2 + $0x20] sm:$0xff]  }
  0x8c   :  { %v4332_v34 = vld [vmem:[#allocation2 + $0x18] sm:$0xff]   ;;  %v4350_v22 = vld [vmem:[#allocation14] sm:$0xff]   ;;  %v3897_v24 = vld [vmem:[%s5907_s23] ss:$0 sm:$0xff] }
  0x8d   :  { %v5116_v23 = vld [vmem:[%s5870_s13 + $0x4] ss:$8 sps:$4 sm:$0xff]  }
  0x91   :  { %4111 = vmatmul.mubr.msk.bf16.gmra.mrb[4].mxu0 %vm220_vm2, %v4325_v26 }
  0x92   :  { %4116 = vmatprep.mubr.msk.bf16.mxu0 %vm220_vm2, %v4326_v27 }
  0x99   :  { %4117 = vmatmul.mubr.msk.bf16.vlgmr.msra.gmra.mrb[0].mxu0 %vm220_vm2, %v4327_v28 }
  0x9a   :  { %4125 = vmatpush3.bf16.msra.mxu0 %v444_v30  ;;  %4120 = vmatprep.mubr.msk.bf16.mxu0 %vm220_vm2, %v4328_v29 }
  0x9b   :  { %4164 = vmatprep.subr.bf16.mxu0 %v4349_v38 }
  0xa1   :  { %4121 = vmatmul.mubr.msk.bf16.gmra.mrb[4].mxu0 %vm220_vm2, %v4329_v31 }
  0xa2   :  { %4126 = vmatprep.mubr.msk.bf16.mxu0 %vm220_vm2, %v4330_v32 }
  0xa9   :  { %4127 = vmatmul.mubr.msk.bf16.vlgmr.msra.gmra.mrb[0].mxu0 %vm220_vm2, %v4331_v33 }
  0xaa   :  { %4130 = vmatprep.mubr.msk.bf16.mxu0 %vm220_vm2, %v4332_v34  ;;  %4165 = vmatpush3.bf16.msra.mxu0 %v4349_v38 }
  0xab   :  { %1202 = vmatprep.subr.bf16.mxu0 %v5116_v23 }
  0xb1   :  { %4131 = vmatmul.mubr.msk.bf16.gmra.mrb[4].mxu0 %vm220_vm2, %v4333_v35 }
 0x17c   :  { %v4128_v40 = vpop.f32.mrb[0].mxu0 }
 0x17d   :  { %v527_v41 = vadd.f32 %v4128_v40, %v3869_v39  ;;  %v480_v42 = vpop.f32.mrb[1].mxu0  ;;  %v5126_v40 = vld [vmem:[%s5870_s13] ss:$8 sps:$4 sm:$0xff]  }
 0x17e   :  { %v525_v43 = vadd.f32 %v3869_v39, %v480_v42  ;;  %v4129_v44 = vpop.f32.mrb[2].mxu0 }
 0x17f   :  { %v535_v45 = vmax.f32 %v527_v41, 0.0  ;;  %v528_v46 = vadd.f32 %v4129_v44, %v3869_v39  ;;  %v483_v47 = vpop.f32.mrb[3].mxu0 }
 0x180   :  { %v533_v48 = vmax.f32 %v525_v43, 0.0  ;;  %v526_v49 = vadd.f32 %v3869_v39, %v483_v47  ;;  %v5131_v43 = vld [vmem:[%s5870_s13 + $0x14] ss:$8 sps:$4 sm:$0xff]  }
 0x181   :  { %v543_v50 = vpack.c.bf16 %v535_v45, %v535_v45  ;;  %v536_v51 = vmax.f32 %v528_v46, 0.0 }
 0x182   :  { %v541_v52 = vpack.c.bf16 %v533_v48, %v533_v48  ;;  %v534_v53 = vmax.f32 %v526_v49, 0.0  ;;  %v5141_v49 = vld [vmem:[%s5870_s13 + $0x10] ss:$8 sps:$4 sm:$0xff]  }
 0x183   :  { %563 = vst.msk [vmem:[#allocation3 + $0xc] sm:$0xf] %vm556_vm3, %v543_v50  ;;  %v544_v54 = vpack.c.bf16 %v536_v51, %v536_v51 }
 0x184   :  { %561 = vst.msk [vmem:[#allocation3 + $0x4] sm:$0xf] %vm556_vm3, %v541_v52  ;;  %v542_v55 = vpack.c.bf16 %v534_v53, %v534_v53  ;;  %v4132_v56 = vpop.f32.mrb[4].mxu0  ;;  %v5148_v52 = vld [vmem:[%s5870_s13 + $0x24] ss:$8 sps:$4 sm:$0xff]  }
 0x185   :  { %564 = vst.msk [vmem:[#allocation3 + $0x10] sm:$0xf] %vm556_vm3, %v544_v54  ;;  %v531_v57 = vadd.f32 %v4132_v56, %v3869_v39  ;;  %v496_v58 = vpop.f32.mrb[5].mxu0 }
 0x186   :  { %562 = vst.msk [vmem:[#allocation3 + $0x8] sm:$0xf] %vm556_vm3, %v542_v55  ;;  %v529_v59 = vadd.f32 %v3869_v39, %v496_v58  ;;  %v4133_v60 = vpop.f32.mrb[6].mxu0  ;;  %v5162_v58 = vld [vmem:[%s5870_s13 + $0x34] ss:$8 sps:$4 sm:$0xff]  }
 0x187   :  { %v539_v61 = vmax.f32 %v531_v57, 0.0  ;;  %v532_v62 = vadd.f32 %v4133_v60, %v3869_v39  ;;  %v499_v63 = vpop.f32.mrb[7].mxu0  ;;  %v5155_v57 = vld [vmem:[%s5870_s13 + $0x20] ss:$8 sps:$4 sm:$0xff]  }
 0x188   :  { %v537_v0 = vmax.f32 %v529_v59, 0.0  ;;  %v530_v2 = vadd.f32 %v3869_v39, %v499_v63  ;;  %v5173_v59 = vld [vmem:[%s5870_s13 + $0x30] ss:$8 sps:$4 sm:$0xff]   ;;  %v3898_v60 = vld [vmem:[%s5868_s11] ss:$0 sm:$0xff]  ;;  %s4793_s11 = smov 32  }
 0x189   :  { %v547_v3 = vpack.c.bf16 %v539_v61, %v539_v61  ;;  %v540_v4 = vmax.f32 %v532_v62, 0.0  ;;  %v3908_v61 = vld [vmem:[%s5869_s12] ss:$0 sm:$0xff] }
 0x18a   :  { %v545_v5 = vpack.c.bf16 %v537_v0, %v537_v0  ;;  %v538_v6 = vmax.f32 %v530_v2, 0.0 }
 0x18b   :  { %567 = vst.msk [vmem:[#allocation3 + $0x1c] sm:$0xf] %vm556_vm3, %v547_v3  ;;  %v548_v7 = vpack.c.bf16 %v540_v4, %v540_v4  ;;  %v4340_v14 = vld [vmem:[#allocation3] sm:$0xff]  }
 0x18c   :  { %565 = vst.msk [vmem:[#allocation3 + $0x14] sm:$0xf] %vm556_vm3, %v545_v5  ;;  %v546_v8 = vpack.c.bf16 %v538_v6, %v538_v6  ;;  %v4337_v11 = vld [vmem:[#allocation3 + $0xc] sm:$0xff]  }
 0x18d   :  { %568 = vst.msk [vmem:[#allocation3 + $0x20] sm:$0xf] %vm556_vm3, %v548_v7  ;;  %v4335_v10 = vld [vmem:[#allocation3 + $0x4] sm:$0xff]  }
 0x18e   :  { %566 = vst.msk [vmem:[#allocation3 + $0x18] sm:$0xf] %vm556_vm3, %v546_v8  ;;  %4136 = vmatprep.mubr.msk.bf16.mxu1 %vm611_vm4, %v4335_v10  ;;  %v4342_v15 = vld [vmem:[#allocation3 + $0x8] sm:$0xff]  }
 0x18f   :  { %4137 = vmatmul.mubr.msk.bf16.vlgmr.msra.gmra.mrb[0].mxu1 %vm611_vm4, %v4337_v11  ;;  %v4345_v18 = vld [vmem:[#allocation3 + $0x8] sm:$0xff]  }
 0x190   :  { %4145 = vmatpush3.bf16.msra.mxu1 %v4336_v37 }
 0x191   :  { %4154 = vmatprep.subr.bf16.mxu1 %v4341_v9 }
 0x193   :  { %v4343_v16 = vld [vmem:[#allocation3 + $0x10] sm:$0xff]  }
 0x194   :  { %v4339_v13 = vld [vmem:[#allocation3 + $0x1c] sm:$0xff]   ;;  %v4346_v19 = vld [vmem:[#allocation3 + $0x10] sm:$0xff]  }
 0x195   :  { %v4338_v12 = vld [vmem:[#allocation3 + $0x14] sm:$0xff]   ;;  %v4348_v21 = vld [vmem:[#allocation3 + $0x20] sm:$0xff]  }
 0x196   :  { %4140 = vmatprep.mubr.msk.bf16.mxu1 %vm611_vm4, %v4338_v12  ;;  %v4344_v17 = vld [vmem:[#allocation3 + $0x18] sm:$0xff]  }
 0x197   :  { %4141 = vmatmul.mubr.msk.bf16.gmra.mrb[4].mxu1 %vm611_vm4, %v4339_v13  ;;  %v4347_v20 = vld [vmem:[#allocation3 + $0x18] sm:$0xff]  }
 0x198   :  { %4146 = vmatprep.mubr.msk.bf16.mxu1 %vm611_vm4, %v4340_v14 }
 0x19f   :  { %4147 = vmatmul.mubr.msk.bf16.vlgmr.msra.gmra.mrb[0].mxu1 %vm611_vm4, %v4342_v15 }
 0x1a0   :  { %4155 = vmatpush3.bf16.msra.mxu1 %v4341_v9  ;;  %4150 = vmatprep.mubr.msk.bf16.mxu1 %vm611_vm4, %v4343_v16 }
 0x1a1   :  { %4174 = vmatprep.subr.bf16.mxu1 %v4350_v22 }
 0x1a7   :  { %4151 = vmatmul.mubr.msk.bf16.gmra.mrb[4].mxu1 %vm611_vm4, %v4344_v17 }
 0x1a8   :  { %4156 = vmatprep.mubr.msk.bf16.mxu1 %vm611_vm4, %v4345_v18 }
 0x1af   :  { %4157 = vmatmul.mubr.msk.bf16.vlgmr.msra.gmra.mrb[0].mxu1 %vm611_vm4, %v4346_v19 }
 0x1b0   :  { %4160 = vmatprep.mubr.msk.bf16.mxu1 %vm611_vm4, %v4347_v20  ;;  %4175 = vmatpush3.bf16.msra.mxu1 %v4350_v22 }
 0x1b1   :  { %1316 = vmatprep.subr.bf16.mxu1 %v5116_v23 }
 0x1b7   :  { %4161 = vmatmul.mubr.msk.bf16.gmra.mrb[4].mxu1 %vm611_vm4, %v4348_v21 }
 0x282   :  { %v4158_v25 = vpop.f32.mrb[0].mxu1 }
 0x283   :  { %v920_v26 = vadd.f32 %v4158_v25, %v3897_v24  ;;  %v873_v27 = vpop.f32.mrb[1].mxu1 }
 0x284   :  { %v918_v28 = vadd.f32 %v3897_v24, %v873_v27  ;;  %v4159_v29 = vpop.f32.mrb[2].mxu1 }
 0x285   :  { %v921_v30 = vadd.f32 %v4159_v29, %v3897_v24  ;;  %v876_v31 = vpop.f32.mrb[3].mxu1  ;;  %v928_v33 = vmax.f32 %v920_v26, 0.0 }
 0x286   :  { %v919_v32 = vadd.f32 %v3897_v24, %v876_v31  ;;  %v926_v35 = vmax.f32 %v918_v28, 0.0 }
 0x287   :  { %v929_v34 = vmax.f32 %v921_v30, 0.0 }
 0x288   :  { %v927_v36 = vmax.f32 %v919_v32, 0.0 }
 0x289   :  { %v4021_v37 = vpack.c.bf16 %v929_v34, %v928_v33 }
 0x28a   :  { %v4020_v38 = vpack.c.bf16 %v927_v36, %v926_v35  ;;  %v4162_v39 = vpop.f32.mrb[4].mxu1 }
 0x28b   :  { %v924_v41 = vadd.f32 %v4162_v39, %v3897_v24  ;;  %v889_v42 = vpop.f32.mrb[5].mxu1 }
 0x28c   :  { %v922_v44 = vadd.f32 %v3897_v24, %v889_v42  ;;  %v4163_v45 = vpop.f32.mrb[6].mxu1  ;;  %4166 = vmatprep.mubr.msk.bf16.mxu0 %vm611_vm4, %v4020_v38  ;;  %4176 = vmatprep.mubr.msk.bf16.mxu1 %vm611_vm4, %v4020_v38 }
 0x28d   :  { %v925_v46 = vadd.f32 %v4163_v45, %v3897_v24  ;;  %v892_v47 = vpop.f32.mrb[7].mxu1  ;;  %4167 = vmatmul.mubr.msk.bf16.vlgmr.msra.gmra.mrb[8].mxu0 %vm611_vm4, %v4021_v37  ;;  %4177 = vmatmul.mubr.msk.bf16.vlgmr.msra.gmra.mrb[8].mxu1 %vm611_vm4, %v4021_v37  ;;  %v932_v50 = vmax.f32 %v924_v41, 0.0 }
 0x28e   :  { %v923_v48 = vadd.f32 %v3897_v24, %v892_v47  ;;  %1203 = vmatpush1.bf16.msra.mxu0 %v5126_v40  ;;  %1317 = vmatpush1.bf16.msra.mxu1 %v5126_v40  ;;  %v930_v53 = vmax.f32 %v922_v44, 0.0 }
 0x28f   :  { %v933_v51 = vmax.f32 %v925_v46, 0.0  ;;  %1204 = vmatprep.subr.bf16.mxu0 %v5131_v43  ;;  %1318 = vmatprep.subr.bf16.mxu1 %v5131_v43 }
 0x290   :  { %v931_v54 = vmax.f32 %v923_v48, 0.0 }
 0x291   :  { %v4023_v55 = vpack.c.bf16 %v933_v51, %v932_v50 }
 0x292   :  { %v4022_v56 = vpack.c.bf16 %v931_v54, %v930_v53  ;;  %1205 = vmatpush1.bf16.msra.mxu0 %v5141_v49  ;;  %1319 = vmatpush1.bf16.msra.mxu1 %v5141_v49 }
 0x293   :  { %1206 = vmatprep.subr.bf16.mxu0 %v5148_v52  ;;  %1320 = vmatprep.subr.bf16.mxu1 %v5148_v52 }
 0x294   :  { %4170 = vmatprep.mubr.msk.bf16.mxu0 %vm611_vm4, %v4022_v56  ;;  %4180 = vmatprep.mubr.msk.bf16.mxu1 %vm611_vm4, %v4022_v56 }
 0x295   :  { %4171 = vmatmul.mubr.msk.bf16.gmra.mrb[12].mxu0 %vm611_vm4, %v4023_v55  ;;  %4181 = vmatmul.mubr.msk.bf16.gmra.mrb[12].mxu1 %vm611_vm4, %v4023_v55 }
 0x296   :  { %1207 = vmatpush1.bf16.msra.mxu0 %v5155_v57  ;;  %1234 = vmatprep.mubr.bf16.mxu0 %v4792_v1 }
 0x297   :  { %1208 = vmatprep.subr.bf16.mxu0 %v5162_v58  ;;  %1321 = vmatpush1.bf16.msra.mxu1 %v5155_v57 }
 0x298   :  { %1322 = vmatprep.subr.bf16.mxu1 %v5162_v58  ;;  %1348 = vmatprep.mubr.bf16.mxu1 %v4792_v1 }
 0x29a   :  { %1209 = vmatpush1.bf16.msra.mxu0 %v5173_v59 }
 0x29b   :  { %1323 = vmatpush1.bf16.msra.mxu1 %v5173_v59  ;;  %1431 = vmatprep.subr.bf16.mxu0 %v5116_v23 }
 0x29c   :  { %1546 = vmatprep.subr.bf16.mxu1 %v5116_v23 }
 0x29d   :  { %1235 = vmatmul.mubr.bf16.vlgmr.msra.gmra.mrb[16].mxu0 %v4792_v1 }
 0x29e   :  { %1432 = vmatpush1.bf16.msra.mxu0 %v5126_v40  ;;  %1463 = vmatprep.mubr.bf16.mxu0 %v4792_v1 }
 0x29f   :  { %1433 = vmatprep.subr.bf16.mxu0 %v5131_v43 }
 0x2a2   :  { %1434 = vmatpush1.bf16.msra.mxu0 %v5141_v49 }
 0x2a3   :  { %1435 = vmatprep.subr.bf16.mxu0 %v5148_v52 }
 0x2a6   :  { %1436 = vmatpush1.bf16.msra.mxu0 %v5155_v57 }
 0x2a7   :  { %1437 = vmatprep.subr.bf16.mxu0 %v5162_v58 }
 0x2aa   :  { %1438 = vmatpush1.bf16.msra.mxu0 %v5173_v59 }
 0x2ab   :  { %1661 = vmatprep.subr.bf16.mxu0 %v5116_v23 }
 0x360   :  { %v4168_v62 = vpop.f32.mrb[8].mxu0  ;;  %v4178_v63 = vpop.f32.mrb[8].mxu1 }
 0x361   :  { %v5200_v0 = vadd.f32 %v4168_v62, %v3898_v60  ;;  %v5202_v2 = vadd.f32 %v4178_v63, %v3908_v61  ;;  %v1023_v3 = vpop.f32.mrb[9].mxu0  ;;  %v1111_v4 = vpop.f32.mrb[9].mxu1 }
 0x362   :  { %v5204_v5 = vadd.f32 %v3908_v61, %v1111_v4  ;;  %v4169_v6 = vpop.f32.mrb[10].mxu0  ;;  %v4179_v7 = vpop.f32.mrb[10].mxu1  ;;  %v1024_v30 = vadd.f32 %v3898_v60, %v1023_v3 }
 0x363   :  { %v5206_v8 = vadd.f32 %v4169_v6, %v3898_v60  ;;  %v5208_v9 = vadd.f32 %v4179_v7, %v3908_v61  ;;  %v1026_v10 = vpop.f32.mrb[11].mxu0  ;;  %v1114_v11 = vpop.f32.mrb[11].mxu1 }
 0x364   :  { %v5210_v12 = vadd.f32 %v3898_v60, %v1026_v10  ;;  %v5212_v13 = vadd.f32 %v3908_v61, %v1114_v11 }
 0x368   :  { %v4172_v14 = vpop.f32.mrb[12].mxu0  ;;  %v4182_v15 = vpop.f32.mrb[12].mxu1 }
 0x369   :  { %v5214_v16 = vadd.f32 %v4172_v14, %v3898_v60  ;;  %v5216_v17 = vadd.f32 %v4182_v15, %v3908_v61  ;;  %v1039_v18 = vpop.f32.mrb[13].mxu0  ;;  %v1127_v19 = vpop.f32.mrb[13].mxu1 }
 0x36a   :  { %v5218_v20 = vadd.f32 %v3898_v60, %v1039_v18  ;;  %v5220_v21 = vadd.f32 %v3908_v61, %v1127_v19  ;;  %v4173_v22 = vpop.f32.mrb[14].mxu0  ;;  %v4183_v24 = vpop.f32.mrb[14].mxu1 }
 0x36b   :  { %v5222_v25 = vadd.f32 %v4173_v22, %v3898_v60  ;;  %v1042_v26 = vpop.f32.mrb[15].mxu0  ;;  %v1130_v27 = vpop.f32.mrb[15].mxu1  ;;  %v1139_v31 = vadd.f32 %v4183_v24, %v3908_v61 }
 0x36c   :  { %v5224_v28 = vadd.f32 %v3898_v60, %v1042_v26  ;;  %v5226_v29 = vadd.f32 %v3908_v61, %v1130_v27 }
 0x370   :  { %v1236_v32 = vpop.f32.mrb[16].mxu0 }
 0x371   :  { %v1244_v33 = vadd.f32 %v1236_v32, %v1024_v30  ;;  %v1238_v34 = vpop.f32.mrb[17].mxu0 }
 0x372   :  { %v1271_v35 = vadd.f32 %v1238_v34, %v1139_v31  ;;  %v1240_v36 = vpop.f32.mrb[18].mxu0 }
 0x373   :  { %v1241_v37 = vpop.f32.mrb[19].mxu0  ;;  %4393 = vtanh.f32 %v1244_v33  ;;  %v3922_v41 = vmul.f32 -1.442695, %v1244_v33 }
 0x374   :  { %4395 = vtanh.f32 %v1271_v35  ;;  %v3923_v42 = vmul.f32 -1.442695, %v1271_v35 }
 0x375   :  { %4397 = vpow2.f32 %v3922_v41 }
 0x376   :  { %4399 = vpow2.f32 %v3923_v42 }
 0x37d   :  { %v4394_v38 = vpop.eup %4393 }
 0x37e   :  { %1254 = vrot.lane.b32.xlu0 %v4394_v38, %s4787_s0  ;;  %v4396_v39 = vpop.eup %4395 }
 0x37f   :  { %v4398_v44 = vpop.eup %4397 }
 0x380   :  { %v1248_v45 = vadd.f32 1.0, %v4398_v44  ;;  %v4400_v46 = vpop.eup %4399 }
 0x381   :  { %v1275_v47 = vadd.f32 1.0, %v4400_v46 }
 0x382   :  { %1281 = vrot.lane.b32.xlu0 %v4396_v39, %s4787_s0  ;;  %4401 = vrcp.f32 %v1248_v45 }
 0x383   :  { %4403 = vrcp.f32 %v1275_v47 }
 0x38c   :  { %v4402_v48 = vpop.eup %4401 }
 0x38d   :  { %v4404_v53 = vpop.eup %4403  ;;  %v1252_v56 = vmul.f32 0.0, %v4402_v48 }
 0x38e   :  { %v1279_v62 = vmul.f32 0.0, %v4404_v53 }
 0x3f0   :  { %v1255_v50 = vpop.permute.xlu0 %1254 }
 0x3f1   :  { %v1257_v51 = vmul.f32 %v4402_v48, %v1255_v50 }
 0x3f3   :  { %1259 = vrot.lane.b32.xlu1 %v1257_v51, %s4793_s11 }
 0x3f4   :  { %v1282_v54 = vpop.permute.xlu0 %1281 }
 0x3f5   :  { %v1284_v55 = vmul.f32 %v4404_v53, %v1282_v54 }
 0x3f7   :  { %1286 = vrot.lane.b32.xlu1 %v1284_v55, %s4793_s11 }
 0x465   :  { %v1260_v60 = vpop.permute.xlu1 %1259 }
 0x466   :  { %v5232_v61 = vadd.f32 %v1260_v60, %v1252_v56 }
 0x468   :  { %4405 = vtanh.f32 %v5232_v61 }
 0x469   :  { %v1287_v63 = vpop.permute.xlu1 %1286 }
 0x46a   :  { %v1289_v3 = vadd.f32 %v1287_v63, %v1279_v62 }
 0x46c   :  { %4407 = vtanh.f32 %v1289_v3 }
 0x472   :  { %v4406_v4 = vpop.eup %4405 }
 0x473   :  { %1265 = vrot.lane.b32.xlu0 %v4406_v4, %s4787_s0 }
 0x476   :  { %v4408_v6 = vpop.eup %4407 }
 0x477   :  { %1292 = vrot.lane.b32.xlu1 %v4408_v6, %s4787_s0 }
 0x4e5   :  { %v1266_v7 = vpop.permute.xlu0 %1265 }
 0x4e6   :  { %v1268_v10 = vmul.f32 %v4402_v48, %v1266_v7 }
 0x4e8   :  { %1297 = vrot.lane.b32.xlu0 %v1268_v10, %s4793_s11 }
 0x4e9   :  { %v1293_v11 = vpop.permute.xlu1 %1292 }
 0x4ea   :  { %v5238_v14 = vmul.f32 %v4404_v53, %v1293_v11 }
 0x4ec   :  { %1308 = vrot.lane.b32.xlu1 %v5238_v14, %s4787_s0 }
 0x55a   :  { %v1298_v15 = vpop.permute.xlu0 %1297 }
 0x55b   :  { %1301 = vst.msk [vmem:[#allocation6] sm:$0xff] %vm1300_vm5, %v1298_v15 }
 0x55e   :  { %v1309_v18 = vpop.permute.xlu1 %1308 }
 0x55f   :  { %v1311_v19 = vsel %vm1300_vm5, %v1298_v15, %v1309_v18 }
 0x560   :  { %v1312_v22 = vpack.c.bf16 %v1311_v19, %v1311_v19 }
 0x562   :  { %3924 = vmatmul.mubr.msk.bf16.vlgmr.msra.gmra.mrb[16].mxu1 %vm1198_vm6, %v1312_v22 }
 0x563   :  { %1547 = vmatpush1.bf16.msra.mxu1 %v5126_v40  ;;  %1578 = vmatprep.mubr.bf16.mxu1 %v4792_v1 }
 0x564   :  { %1548 = vmatprep.subr.bf16.mxu1 %v5131_v43 }
 0x567   :  { %1549 = vmatpush1.bf16.msra.mxu1 %v5141_v49 }
 0x568   :  { %1550 = vmatprep.subr.bf16.mxu1 %v5148_v52 }
 0x56b   :  { %1551 = vmatpush1.bf16.msra.mxu1 %v5155_v57 }
 0x56c   :  { %1552 = vmatprep.subr.bf16.mxu1 %v5162_v58 }
 0x56f   :  { %1553 = vmatpush1.bf16.msra.mxu1 %v5173_v59 }
 0x570   :  { %1776 = vmatprep.subr.bf16.mxu1 %v5116_v23 }
 0x635   :  { %v1350_v24 = vpop.f32.mrb[16].mxu1 }
 0x636   :  { %v1359_v26 = vadd.f32 %v1350_v24, %v5210_v12  ;;  %v1352_v27 = vpop.f32.mrb[17].mxu1 }
 0x637   :  { %v1386_v30 = vadd.f32 %v1352_v27, %v5216_v17  ;;  %v1354_v31 = vpop.f32.mrb[18].mxu1 }
 0x638   :  { %4409 = vtanh.f32 %v1359_v26  ;;  %v1355_v32 = vpop.f32.mrb[19].mxu1  ;;  %v3925_v35 = vmul.f32 -1.442695, %v1359_v26 }
 0x639   :  { %4411 = vtanh.f32 %v1386_v30  ;;  %v3926_v36 = vmul.f32 -1.442695, %v1386_v30 }
 0x63a   :  { %4413 = vpow2.f32 %v3925_v35 }
 0x63b   :  { %4415 = vpow2.f32 %v3926_v36 }
 0x642   :  { %v4410_v33 = vpop.eup %4409 }
 0x643   :  { %v4412_v34 = vpop.eup %4411  ;;  %1369 = vrot.lane.b32.xlu0 %v4410_v33, %s4787_s0 }
 0x644   :  { %1396 = vrot.lane.b32.xlu1 %v4412_v34, %s4787_s0  ;;  %v4414_v37 = vpop.eup %4413 }
 0x645   :  { %v4416_v38 = vpop.eup %4415  ;;  %v1363_v12 = vadd.f32 1.0, %v4414_v37 }
 0x646   :  { %v1390_v39 = vadd.f32 1.0, %v4416_v38 }
 0x647   :  { %4417 = vrcp.f32 %v1363_v12 }
 0x648   :  { %4419 = vrcp.f32 %v1390_v39 }
 0x651   :  { %v4418_v17 = vpop.eup %4417 }
 0x652   :  { %v4420_v42 = vpop.eup %4419  ;;  %v1367_v47 = vmul.f32 %v4418_v17, %v5232_v61 }
 0x653   :  { %v1394_v50 = vmul.f32 %v4420_v42, %v1289_v3 }
 0x6b5   :  { %v1370_v41 = vpop.permute.xlu0 %1369 }
 0x6b6   :  { %v1372_v44 = vmul.f32 %v4418_v17, %v1370_v41  ;;  %v1397_v45 = vpop.permute.xlu1 %1396 }
 0x6b7   :  { %v1399_v46 = vmul.f32 %v4420_v42, %v1397_v45 }
 0x6b8   :  { %1374 = vrot.lane.b32.xlu0 %v1372_v44, %s4793_s11 }
 0x6b9   :  { %1401 = vrot.lane.b32.xlu1 %v1399_v46, %s4793_s11 }
 0x72a   :  { %v1375_v48 = vpop.permute.xlu0 %1374 }
 0x72b   :  { %v1377_v51 = vadd.f32 %v1375_v48, %v1367_v47  ;;  %v1402_v53 = vpop.permute.xlu1 %1401 }
 0x72c   :  { %v1404_v54 = vadd.f32 %v1402_v53, %v1394_v50 }
 0x72d   :  { %4421 = vtanh.f32 %v1377_v51 }
 0x72e   :  { %4423 = vtanh.f32 %v1404_v54 }
 0x737   :  { %v4422_v55 = vpop.eup %4421 }
 0x738   :  { %v4424_v56 = vpop.eup %4423  ;;  %1380 = vrot.lane.b32.xlu0 %v4422_v55, %s4787_s0 }
 0x739   :  { %1407 = vrot.lane.b32.xlu1 %v4424_v56, %s4787_s0 }
 0x7aa   :  { %v1381_v60 = vpop.permute.xlu0 %1380 }
 0x7ab   :  { %v1383_v62 = vmul.f32 %v4418_v17, %v1381_v60  ;;  %v1408_v63 = vpop.permute.xlu1 %1407 }
 0x7ac   :  { %v5263_v4 = vmul.f32 %v4420_v42, %v1408_v63 }
 0x7ad   :  { %1412 = vrot.lane.b32.xlu0 %v1383_v62, %s4793_s11 }
 0x7ae   :  { %1423 = vrot.lane.b32.xlu1 %v5263_v4, %s4787_s0 }
 0x81f   :  { %v1413_v61 = vpop.permute.xlu0 %1412 }
 0x820   :  { %1416 = vst.msk [vmem:[#allocation6 + $0x8] sm:$0xff] %vm1300_vm5, %v1413_v61  ;;  %v1424_v3 = vpop.permute.xlu1 %1423 }
 0x821   :  { %v1426_v6 = vsel %vm1300_vm5, %v1413_v61, %v1424_v3 }
 0x822   :  { %v1427_v7 = vpack.c.bf16 %v1426_v6, %v1426_v6 }
 0x824   :  { %3927 = vmatmul.mubr.msk.bf16.vlgmr.msra.gmra.mrb[20].mxu0 %vm1198_vm6, %v1427_v7 }
 0x825   :  { %1662 = vmatpush1.bf16.msra.mxu0 %v5126_v40  ;;  %1693 = vmatprep.mubr.bf16.mxu0 %v4792_v1 }
 0x826   :  { %1663 = vmatprep.subr.bf16.mxu0 %v5131_v43 }
 0x829   :  { %1664 = vmatpush1.bf16.msra.mxu0 %v5141_v49 }
 0x82a   :  { %1665 = vmatprep.subr.bf16.mxu0 %v5148_v52 }
 0x82d   :  { %1666 = vmatpush1.bf16.msra.mxu0 %v5155_v57 }
 0x82e   :  { %1667 = vmatprep.subr.bf16.mxu0 %v5162_v58 }
 0x831   :  { %1668 = vmatpush1.bf16.msra.mxu0 %v5173_v59 }
 0x832   :  { %1891 = vmatprep.subr.bf16.mxu0 %v5116_v23 }
 0x8f7   :  { %v1465_v10 = vpop.f32.mrb[20].mxu0 }
 0x8f8   :  { %v1474_v11 = vadd.f32 %v1465_v10, %v5200_v0  ;;  %v1467_v15 = vpop.f32.mrb[21].mxu0 }
 0x8f9   :  { %v1501_v18 = vadd.f32 %v1467_v15, %v5226_v29  ;;  %v1469_v19 = vpop.f32.mrb[22].mxu0 }
 0x8fa   :  { %4425 = vtanh.f32 %v1474_v11  ;;  %v1470_v22 = vpop.f32.mrb[23].mxu0  ;;  %v3928_v27 = vmul.f32 -1.442695, %v1474_v11 }
 0x8fb   :  { %4427 = vtanh.f32 %v1501_v18  ;;  %v3929_v30 = vmul.f32 -1.442695, %v1501_v18 }
 0x8fc   :  { %4429 = vpow2.f32 %v3928_v27 }
 0x8fd   :  { %4431 = vpow2.f32 %v3929_v30 }
 0x904   :  { %v4426_v24 = vpop.eup %4425 }
 0x905   :  { %v4428_v26 = vpop.eup %4427  ;;  %1484 = vrot.lane.b32.xlu0 %v4426_v24, %s4787_s0 }
 0x906   :  { %1511 = vrot.lane.b32.xlu1 %v4428_v26, %s4787_s0  ;;  %v4430_v31 = vpop.eup %4429 }
 0x907   :  { %v4432_v32 = vpop.eup %4431  ;;  %v1478_v0 = vadd.f32 1.0, %v4430_v31 }
 0x908   :  { %v1505_v33 = vadd.f32 1.0, %v4432_v32 }
 0x909   :  { %4433 = vrcp.f32 %v1478_v0 }
 0x90a   :  { %4435 = vrcp.f32 %v1505_v33 }
 0x913   :  { %v4434_v29 = vpop.eup %4433 }
 0x914   :  { %v4436_v35 = vpop.eup %4435  ;;  %v1482_v12 = vmul.f32 %v4434_v29, %v1377_v51 }
 0x915   :  { %v1509_v17 = vmul.f32 %v4436_v35, %v1404_v54 }
 0x977   :  { %v1485_v34 = vpop.permute.xlu0 %1484 }
 0x978   :  { %v1487_v36 = vmul.f32 %v4434_v29, %v1485_v34  ;;  %v1512_v37 = vpop.permute.xlu1 %1511 }
 0x979   :  { %v1514_v38 = vmul.f32 %v4436_v35, %v1512_v37 }
 0x97a   :  { %1489 = vrot.lane.b32.xlu0 %v1487_v36, %s4793_s11 }
 0x97b   :  { %1516 = vrot.lane.b32.xlu1 %v1514_v38, %s4793_s11 }
 0x9ec   :  { %v1490_v39 = vpop.permute.xlu0 %1489 }
 0x9ed   :  { %v1492_v41 = vadd.f32 %v1490_v39, %v1482_v12  ;;  %v1517_v42 = vpop.permute.xlu1 %1516 }
 0x9ee   :  { %v1519_v44 = vadd.f32 %v1517_v42, %v1509_v17 }
 0x9ef   :  { %4437 = vtanh.f32 %v1492_v41 }
 0x9f0   :  { %4439 = vtanh.f32 %v1519_v44 }
 0x9f9   :  { %v4438_v45 = vpop.eup %4437 }
 0x9fa   :  { %v4440_v46 = vpop.eup %4439  ;;  %1495 = vrot.lane.b32.xlu0 %v4438_v45, %s4787_s0 }
 0x9fb   :  { %1522 = vrot.lane.b32.xlu1 %v4440_v46, %s4787_s0 }
 0xa6c   :  { %v1496_v47 = vpop.permute.xlu0 %1495 }
 0xa6d   :  { %v1498_v48 = vmul.f32 %v4434_v29, %v1496_v47  ;;  %v1523_v50 = vpop.permute.xlu1 %1522 }
 0xa6e   :  { %v5288_v53 = vmul.f32 %v4436_v35, %v1523_v50 }
 0xa6f   :  { %1527 = vrot.lane.b32.xlu0 %v1498_v48, %s4793_s11 }
 0xa70   :  { %1538 = vrot.lane.b32.xlu1 %v5288_v53, %s4787_s0 }
 0xae1   :  { %v1528_v51 = vpop.permute.xlu0 %1527 }
 0xae2   :  { %1531 = vst.msk [vmem:[#allocation6 + $0x10] sm:$0xff] %vm1300_vm5, %v1528_v51  ;;  %v1539_v54 = vpop.permute.xlu1 %1538 }
 0xae3   :  { %v1541_v55 = vsel %vm1300_vm5, %v1528_v51, %v1539_v54 }
 0xae4   :  { %v1542_v56 = vpack.c.bf16 %v1541_v55, %v1541_v55 }
 0xae6   :  { %3930 = vmatmul.mubr.msk.bf16.vlgmr.msra.gmra.mrb[20].mxu1 %vm1198_vm6, %v1542_v56 }
 0xae7   :  { %1777 = vmatpush1.bf16.msra.mxu1 %v5126_v40  ;;  %1808 = vmatprep.mubr.bf16.mxu1 %v4792_v1 }
 0xae8   :  { %1778 = vmatprep.subr.bf16.mxu1 %v5131_v43 }
 0xaeb   :  { %1779 = vmatpush1.bf16.msra.mxu1 %v5141_v49 }
 0xaec   :  { %1780 = vmatprep.subr.bf16.mxu1 %v5148_v52 }
 0xaef   :  { %1781 = vmatpush1.bf16.msra.mxu1 %v5155_v57 }
 0xaf0   :  { %1782 = vmatprep.subr.bf16.mxu1 %v5162_v58 }
 0xaf3   :  { %1783 = vmatpush1.bf16.msra.mxu1 %v5173_v59 }
 0xaf4   :  { %2006 = vmatprep.subr.bf16.mxu1 %v5116_v23 }
 0xbb9   :  { %v1580_v60 = vpop.f32.mrb[20].mxu1 }
 0xbba   :  { %v1589_v62 = vadd.f32 %v1580_v60, %v5206_v8  ;;  %v1582_v63 = vpop.f32.mrb[21].mxu1 }
 0xbbb   :  { %v1616_v61 = vadd.f32 %v1582_v63, %v5220_v21  ;;  %v1584_v3 = vpop.f32.mrb[22].mxu1 }
 0xbbc   :  { %4441 = vtanh.f32 %v1589_v62  ;;  %v1585_v6 = vpop.f32.mrb[23].mxu1  ;;  %v3931_v11 = vmul.f32 -1.442695, %v1589_v62 }
 0xbbd   :  { %4443 = vtanh.f32 %v1616_v61  ;;  %v3932_v15 = vmul.f32 -1.442695, %v1616_v61 }
 0xbbe   :  { %4445 = vpow2.f32 %v3931_v11 }
 0xbbf   :  { %4447 = vpow2.f32 %v3932_v15 }
 0xbc6   :  { %v4442_v7 = vpop.eup %4441 }
 0xbc7   :  { %v4444_v10 = vpop.eup %4443  ;;  %1599 = vrot.lane.b32.xlu0 %v4442_v7, %s4787_s0 }
 0xbc8   :  { %1626 = vrot.lane.b32.xlu1 %v4444_v10, %s4787_s0  ;;  %v4446_v23 = vpop.eup %4445 }
 0xbc9   :  { %v4448_v18 = vpop.eup %4447  ;;  %v1593_v8 = vadd.f32 1.0, %v4446_v23 }
 0xbca   :  { %v1620_v19 = vadd.f32 1.0, %v4448_v18 }
 0xbcb   :  { %4449 = vrcp.f32 %v1593_v8 }
 0xbcc   :  { %4451 = vrcp.f32 %v1620_v19 }
 0xbd5   :  { %v4450_v21 = vpop.eup %4449 }
 0xbd6   :  { %v4452_v24 = vpop.eup %4451  ;;  %v1597_v31 = vmul.f32 %v4450_v21, %v1492_v41 }
 0xbd7   :  { %v1624_v0 = vmul.f32 %v4452_v24, %v1519_v44 }
 0xc39   :  { %v1600_v22 = vpop.permute.xlu0 %1599 }
 0xc3a   :  { %v1602_v26 = vmul.f32 %v4450_v21, %v1600_v22  ;;  %v1627_v27 = vpop.permute.xlu1 %1626 }
 0xc3b   :  { %v1629_v30 = vmul.f32 %v4452_v24, %v1627_v27 }
 0xc3c   :  { %1604 = vrot.lane.b32.xlu0 %v1602_v26, %s4793_s11 }
 0xc3d   :  { %1631 = vrot.lane.b32.xlu1 %v1629_v30, %s4793_s11 }
 0xcae   :  { %v1605_v32 = vpop.permute.xlu0 %1604 }
 0xcaf   :  { %v1607_v33 = vadd.f32 %v1605_v32, %v1597_v31  ;;  %v1632_v29 = vpop.permute.xlu1 %1631 }
 0xcb0   :  { %v1634_v34 = vadd.f32 %v1632_v29, %v1624_v0 }
 0xcb1   :  { %4453 = vtanh.f32 %v1607_v33 }
 0xcb2   :  { %4455 = vtanh.f32 %v1634_v34 }
 0xcbb   :  { %v4454_v35 = vpop.eup %4453 }
 0xcbc   :  { %v4456_v36 = vpop.eup %4455  ;;  %1610 = vrot.lane.b32.xlu0 %v4454_v35, %s4787_s0 }
 0xcbd   :  { %1637 = vrot.lane.b32.xlu1 %v4456_v36, %s4787_s0 }
 0xd2e   :  { %v1611_v37 = vpop.permute.xlu0 %1610 }
 0xd2f   :  { %v1613_v38 = vmul.f32 %v4450_v21, %v1611_v37  ;;  %v1638_v12 = vpop.permute.xlu1 %1637 }
 0xd30   :  { %v5313_v39 = vmul.f32 %v4452_v24, %v1638_v12 }
 0xd31   :  { %1642 = vrot.lane.b32.xlu0 %v1613_v38, %s4793_s11 }
 0xd32   :  { %1653 = vrot.lane.b32.xlu1 %v5313_v39, %s4787_s0 }
 0xda3   :  { %v1643_v17 = vpop.permute.xlu0 %1642 }
 0xda4   :  { %1646 = vst.msk [vmem:[#allocation6 + $0x18] sm:$0xff] %vm1300_vm5, %v1643_v17  ;;  %v1654_v41 = vpop.permute.xlu1 %1653 }
 0xda5   :  { %v1656_v42 = vsel %vm1300_vm5, %v1643_v17, %v1654_v41 }
 0xda6   :  { %v1657_v44 = vpack.c.bf16 %v1656_v42, %v1656_v42 }
 0xda8   :  { %3933 = vmatmul.mubr.msk.bf16.vlgmr.msra.gmra.mrb[24].mxu0 %vm1198_vm6, %v1657_v44 }
 0xda9   :  { %1892 = vmatpush1.bf16.msra.mxu0 %v5126_v40  ;;  %1923 = vmatprep.mubr.bf16.mxu0 %v4792_v1 }
 0xdaa   :  { %1893 = vmatprep.subr.bf16.mxu0 %v5131_v43 }
 0xdad   :  { %1894 = vmatpush1.bf16.msra.mxu0 %v5141_v49 }
 0xdae   :  { %1895 = vmatprep.subr.bf16.mxu0 %v5148_v52 }
 0xdb1   :  { %1896 = vmatpush1.bf16.msra.mxu0 %v5155_v57 }
 0xdb2   :  { %1897 = vmatprep.subr.bf16.mxu0 %v5162_v58 }
 0xdb5   :  { %1898 = vmatpush1.bf16.msra.mxu0 %v5173_v59 }
 0xe7b   :  { %v1695_v45 = vpop.f32.mrb[24].mxu0 }
 0xe7c   :  { %v1704_v46 = vadd.f32 %v1695_v45, %v5218_v20  ;;  %v1697_v47 = vpop.f32.mrb[25].mxu0 }
 0xe7d   :  { %v1731_v48 = vadd.f32 %v1697_v47, %v5208_v9  ;;  %v1699_v50 = vpop.f32.mrb[26].mxu0 }
 0xe7e   :  { %4457 = vtanh.f32 %v1704_v46  ;;  %v1700_v51 = vpop.f32.mrb[27].mxu0  ;;  %v3934_v56 = vmul.f32 -1.442695, %v1704_v46 }
 0xe7f   :  { %4459 = vtanh.f32 %v1731_v48  ;;  %v3935_v60 = vmul.f32 -1.442695, %v1731_v48 }
 0xe80   :  { %4461 = vpow2.f32 %v3934_v56 }
 0xe81   :  { %4463 = vpow2.f32 %v3935_v60 }
 0xe88   :  { %v4458_v54 = vpop.eup %4457 }
 0xe89   :  { %v4460_v55 = vpop.eup %4459  ;;  %1714 = vrot.lane.b32.xlu0 %v4458_v54, %s4787_s0 }
 0xe8a   :  { %1741 = vrot.lane.b32.xlu1 %v4460_v55, %s4787_s0  ;;  %v4462_v62 = vpop.eup %4461 }
 0xe8b   :  { %v4464_v63 = vpop.eup %4463  ;;  %v1708_v20 = vadd.f32 1.0, %v4462_v62 }
 0xe8c   :  { %v1735_v61 = vadd.f32 1.0, %v4464_v63 }
 0xe8d   :  { %4465 = vrcp.f32 %v1708_v20 }
 0xe8e   :  { %4467 = vrcp.f32 %v1735_v61 }
 0xe97   :  { %v4466_v9 = vpop.eup %4465 }
 0xe98   :  { %v4468_v6 = vpop.eup %4467  ;;  %v1712_v15 = vmul.f32 %v4466_v9, %v1607_v33 }
 0xe99   :  { %v1739_v18 = vmul.f32 %v4468_v6, %v1634_v34 }
 0xefb   :  { %v1715_v3 = vpop.permute.xlu0 %1714 }
 0xefc   :  { %v1717_v7 = vmul.f32 %v4466_v9, %v1715_v3  ;;  %v1742_v10 = vpop.permute.xlu1 %1741 }
 0xefd   :  { %v1744_v11 = vmul.f32 %v4468_v6, %v1742_v10 }
 0xefe   :  { %1719 = vrot.lane.b32.xlu0 %v1717_v7, %s4793_s11 }
 0xeff   :  { %1746 = vrot.lane.b32.xlu1 %v1744_v11, %s4793_s11 }
 0xf70   :  { %v1720_v23 = vpop.permute.xlu0 %1719 }
 0xf71   :  { %v1722_v8 = vadd.f32 %v1720_v23, %v1712_v15  ;;  %v1747_v19 = vpop.permute.xlu1 %1746 }
 0xf72   :  { %v1749_v21 = vadd.f32 %v1747_v19, %v1739_v18 }
 0xf73   :  { %4469 = vtanh.f32 %v1722_v8 }
 0xf74   :  { %4471 = vtanh.f32 %v1749_v21 }
 0xf7d   :  { %v4470_v22 = vpop.eup %4469 }
 0xf7e   :  { %v4472_v24 = vpop.eup %4471  ;;  %1725 = vrot.lane.b32.xlu0 %v4470_v22, %s4787_s0 }
 0xf7f   :  { %1752 = vrot.lane.b32.xlu1 %v4472_v24, %s4787_s0 }
 0xff0   :  { %v1726_v26 = vpop.permute.xlu0 %1725 }
 0xff1   :  { %v1728_v27 = vmul.f32 %v4466_v9, %v1726_v26  ;;  %v1753_v30 = vpop.permute.xlu1 %1752 }
 0xff2   :  { %v5337_v31 = vmul.f32 %v4468_v6, %v1753_v30 }
 0xff3   :  { %1757 = vrot.lane.b32.xlu0 %v1728_v27, %s4793_s11 }
 0xff4   :  { %1768 = vrot.lane.b32.xlu1 %v5337_v31, %s4787_s0 }
0x1065   :  { %v1758_v32 = vpop.permute.xlu0 %1757 }
0x1066   :  { %1761 = vst.msk [vmem:[#allocation6 + $0x20] sm:$0xff] %vm1300_vm5, %v1758_v32  ;;  %v1769_v0 = vpop.permute.xlu1 %1768 }
0x1067   :  { %v1771_v33 = vsel %vm1300_vm5, %v1758_v32, %v1769_v0 }
0x1068   :  { %v1772_v29 = vpack.c.bf16 %v1771_v33, %v1771_v33 }
0x106a   :  { %3936 = vmatmul.mubr.msk.bf16.vlgmr.msra.gmra.mrb[24].mxu1 %vm1198_vm6, %v1772_v29 }
0x106b   :  { %2007 = vmatpush1.bf16.msra.mxu1 %v5126_v40  ;;  %2038 = vmatprep.mubr.bf16.mxu1 %v4792_v1 }
0x106c   :  { %2008 = vmatprep.subr.bf16.mxu1 %v5131_v43 }
0x106f   :  { %2009 = vmatpush1.bf16.msra.mxu1 %v5141_v49 }
0x1070   :  { %2010 = vmatprep.subr.bf16.mxu1 %v5148_v52 }
0x1073   :  { %2011 = vmatpush1.bf16.msra.mxu1 %v5155_v57 }
0x1074   :  { %2012 = vmatprep.subr.bf16.mxu1 %v5162_v58 }
0x1077   :  { %2013 = vmatpush1.bf16.msra.mxu1 %v5173_v59 }
0x113d   :  { %v1810_v34 = vpop.f32.mrb[24].mxu1 }
0x113e   :  { %v1819_v35 = vadd.f32 %v1810_v34, %v5224_v28  ;;  %v1812_v36 = vpop.f32.mrb[25].mxu1 }
0x113f   :  { %v1846_v40 = vadd.f32 %v1812_v36, %v5202_v2  ;;  %v1814_v37 = vpop.f32.mrb[26].mxu1 }
0x1140   :  { %4473 = vtanh.f32 %v1819_v35  ;;  %v1815_v38 = vpop.f32.mrb[27].mxu1  ;;  %v3937_v52 = vmul.f32 -1.442695, %v1819_v35 }
0x1141   :  { %4475 = vtanh.f32 %v1846_v40  ;;  %v3938_v57 = vmul.f32 -1.442695, %v1846_v40 }
0x1142   :  { %4477 = vpow2.f32 %v3937_v52 }
0x1143   :  { %4479 = vpow2.f32 %v3938_v57 }
0x114a   :  { %v4474_v43 = vpop.eup %4473 }
0x114b   :  { %v4476_v49 = vpop.eup %4475  ;;  %1829 = vrot.lane.b32.xlu0 %v4474_v43, %s4787_s0 }
0x114c   :  { %1856 = vrot.lane.b32.xlu1 %v4476_v49, %s4787_s0  ;;  %v4478_v58 = vpop.eup %4477 }
0x114d   :  { %v4480_v59 = vpop.eup %4479  ;;  %v1823_v28 = vadd.f32 1.0, %v4478_v58 }
0x114e   :  { %v1850_v12 = vadd.f32 1.0, %v4480_v59 }
0x114f   :  { %4481 = vrcp.f32 %v1823_v28 }
0x1150   :  { %4483 = vrcp.f32 %v1850_v12 }
0x1159   :  { %v4482_v2 = vpop.eup %4481 }
0x115a   :  { %v4484_v41 = vpop.eup %4483  ;;  %v1827_v46 = vmul.f32 %v4482_v2, %v1722_v8 }
0x115b   :  { %v1854_v48 = vmul.f32 %v4484_v41, %v1749_v21 }
0x11bd   :  { %v1830_v17 = vpop.permute.xlu0 %1829 }
0x11be   :  { %v1832_v42 = vmul.f32 %v4482_v2, %v1830_v17  ;;  %v1857_v44 = vpop.permute.xlu1 %1856 }
0x11bf   :  { %v1859_v45 = vmul.f32 %v4484_v41, %v1857_v44 }
0x11c0   :  { %1834 = vrot.lane.b32.xlu0 %v1832_v42, %s4793_s11 }
0x11c1   :  { %1861 = vrot.lane.b32.xlu1 %v1859_v45, %s4793_s11 }
0x1232   :  { %v1835_v47 = vpop.permute.xlu0 %1834 }
0x1233   :  { %v1837_v50 = vadd.f32 %v1835_v47, %v1827_v46  ;;  %v1862_v51 = vpop.permute.xlu1 %1861 }
0x1234   :  { %v1864_v54 = vadd.f32 %v1862_v51, %v1854_v48 }
0x1235   :  { %4485 = vtanh.f32 %v1837_v50 }
0x1236   :  { %4487 = vtanh.f32 %v1864_v54 }
0x123f   :  { %v4486_v55 = vpop.eup %4485 }
0x1240   :  { %v4488_v56 = vpop.eup %4487  ;;  %1840 = vrot.lane.b32.xlu0 %v4486_v55, %s4787_s0 }
0x1241   :  { %1867 = vrot.lane.b32.xlu1 %v4488_v56, %s4787_s0 }
0x12b2   :  { %v1841_v60 = vpop.permute.xlu0 %1840 }
0x12b3   :  { %v1843_v62 = vmul.f32 %v4482_v2, %v1841_v60  ;;  %v1868_v63 = vpop.permute.xlu1 %1867 }
0x12b4   :  { %v5361_v20 = vmul.f32 %v4484_v41, %v1868_v63 }
0x12b5   :  { %1872 = vrot.lane.b32.xlu0 %v1843_v62, %s4793_s11 }
0x12b6   :  { %1883 = vrot.lane.b32.xlu1 %v5361_v20, %s4787_s0 }
0x1327   :  { %v1873_v61 = vpop.permute.xlu0 %1872 }
0x1328   :  { %1876 = vst.msk [vmem:[#allocation6 + $0x28] sm:$0xff] %vm1300_vm5, %v1873_v61  ;;  %v1884_v9 = vpop.permute.xlu1 %1883 }
0x1329   :  { %v1886_v3 = vsel %vm1300_vm5, %v1873_v61, %v1884_v9 }
0x132a   :  { %v1887_v6 = vpack.c.bf16 %v1886_v3, %v1886_v3 }
0x132c   :  { %3939 = vmatmul.mubr.msk.bf16.vlgmr.msra.gmra.mrb[28].mxu0 %vm1198_vm6, %v1887_v6 }
0x13ff   :  { %v1925_v7 = vpop.f32.mrb[28].mxu0 }
0x1400   :  { %v1934_v10 = vadd.f32 %v1925_v7, %v5214_v16  ;;  %v1927_v11 = vpop.f32.mrb[29].mxu0 }
0x1401   :  { %v1961_v15 = vadd.f32 %v1927_v11, %v5212_v13  ;;  %v1929_v23 = vpop.f32.mrb[30].mxu0 }
0x1402   :  { %4489 = vtanh.f32 %v1934_v10  ;;  %v1930_v18 = vpop.f32.mrb[31].mxu0  ;;  %v3940_v21 = vmul.f32 -1.442695, %v1934_v10 }
0x1403   :  { %4491 = vtanh.f32 %v1961_v15  ;;  %v3941_v22 = vmul.f32 -1.442695, %v1961_v15 }
0x1404   :  { %4493 = vpow2.f32 %v3940_v21 }
0x1405   :  { %4495 = vpow2.f32 %v3941_v22 }
0x140c   :  { %v4490_v8 = vpop.eup %4489 }
0x140d   :  { %v4492_v19 = vpop.eup %4491  ;;  %1944 = vrot.lane.b32.xlu0 %v4490_v8, %s4787_s0 }
0x140e   :  { %1971 = vrot.lane.b32.xlu1 %v4492_v19, %s4787_s0  ;;  %v4494_v24 = vpop.eup %4493 }
0x140f   :  { %v4496_v26 = vpop.eup %4495  ;;  %v1938_v16 = vadd.f32 1.0, %v4494_v24 }
0x1410   :  { %v1965_v27 = vadd.f32 1.0, %v4496_v26 }
0x1411   :  { %4497 = vrcp.f32 %v1938_v16 }
0x1412   :  { %4499 = vrcp.f32 %v1965_v27  ;;  %v4364_v27 = vld [vmem:[%s5872_s15] sm:$0xff]  }
0x1413   :  { %4200 = vmatprep.subr.bf16.mxu1 %v4364_v27 }
0x141b   :  { %v4498_v13 = vpop.eup %4497 }
0x141c   :  { %v4500_v32 = vpop.eup %4499  ;;  %v1942_v34 = vmul.f32 %v4498_v13, %v1837_v50 }
0x141d   :  { %v1969_v36 = vmul.f32 %v4500_v32, %v1864_v54 }
0x147f   :  { %v1945_v30 = vpop.permute.xlu0 %1944 }
0x1480   :  { %v1947_v0 = vmul.f32 %v4498_v13, %v1945_v30  ;;  %v1972_v33 = vpop.permute.xlu1 %1971  ;;  %v4367_v30 = vld [vmem:[%s5871_s14 + $0x10] sm:$0xff]  }
0x1481   :  { %v1974_v29 = vmul.f32 %v4500_v32, %v1972_v33  ;;  %v4369_v33 = vld [vmem:[%s5871_s14 + $0x18] sm:$0xff]  }
0x1482   :  { %1949 = vrot.lane.b32.xlu0 %v1947_v0, %s4793_s11 }
0x1483   :  { %1976 = vrot.lane.b32.xlu1 %v1974_v29, %s4793_s11  ;;  %v4370_v29 = vld [vmem:[%s5872_s15 + $0x18] sm:$0xff]  }
0x14f4   :  { %v1950_v35 = vpop.permute.xlu0 %1949 }
0x14f5   :  { %v1952_v40 = vadd.f32 %v1950_v35, %v1942_v34  ;;  %v1977_v37 = vpop.permute.xlu1 %1976 }
0x14f6   :  { %v1979_v38 = vadd.f32 %v1977_v37, %v1969_v36  ;;  %v5440_v37 = vld [vmem:[%s5875_s18 + $0x4] ss:$8 sps:$4 sm:$0xff]  }
0x14f7   :  { %4501 = vtanh.f32 %v1952_v40 }
0x14f8   :  { %4503 = vtanh.f32 %v1979_v38 }
0x1501   :  { %v4502_v43 = vpop.eup %4501 }
0x1502   :  { %v4504_v49 = vpop.eup %4503  ;;  %1955 = vrot.lane.b32.xlu0 %v4502_v43, %s4787_s0 }
0x1503   :  { %1982 = vrot.lane.b32.xlu1 %v4504_v49, %s4787_s0 }
0x1574   :  { %v1956_v52 = vpop.permute.xlu0 %1955 }
0x1575   :  { %v1958_v57 = vmul.f32 %v4498_v13, %v1956_v52  ;;  %v1983_v58 = vpop.permute.xlu1 %1982  ;;  %v4365_v13 = vld [vmem:[%s5871_s14 + $0x8] sm:$0xff]  }
0x1576   :  { %v1985_v59 = vmul.f32 %v4500_v32, %v1983_v58  ;;  %v4368_v32 = vld [vmem:[%s5872_s15 + $0x10] sm:$0xff]  }
0x1577   :  { %1987 = vrot.lane.b32.xlu0 %v1958_v57, %s4793_s11 }
0x1578   :  { %1998 = vrot.lane.b32.xlu1 %v1985_v59, %s4787_s0 }
0x15e9   :  { %v1988_v28 = vpop.permute.xlu0 %1987 }
0x15ea   :  { %1991 = vst.msk [vmem:[#allocation6 + $0x30] sm:$0xff] %vm1300_vm5, %v1988_v28  ;;  %v1999_v12 = vpop.permute.xlu1 %1998 }
0x15eb   :  { %v2001_v2 = vsel %vm1300_vm5, %v1988_v28, %v1999_v12 }
0x15ec   :  { %v2002_v17 = vpack.c.bf16 %v2001_v2, %v2001_v2 }
0x15ee   :  { %3942 = vmatmul.mubr.msk.bf16.vlgmr.msra.gmra.mrb[28].mxu1 %vm1198_vm6, %v2002_v17 }
0x15ef   :  { %4201 = vmatpush3.bf16.msra.mxu1 %v4364_v27  ;;  %v5507_v27 = vld [vmem:[%s5875_s18 + $0x30] ss:$8 sps:$4 sm:$0xff]  }
0x16c1   :  { %v2040_v41 = vpop.f32.mrb[28].mxu1 }
0x16c2   :  { %v2049_v42 = vadd.f32 %v2040_v41, %v5222_v25  ;;  %v2042_v44 = vpop.f32.mrb[29].mxu1 }
0x16c3   :  { %v2075_v45 = vadd.f32 %v2042_v44, %v5204_v5  ;;  %v2044_v46 = vpop.f32.mrb[30].mxu1  ;;  %v2111_v44 = vld [vmem:[#allocation6] sm:$0xff] }
0x16c4   :  { %v2045_v47 = vpop.f32.mrb[31].mxu1  ;;  %v3943_v54 = vmul.f32 -1.442695, %v2049_v42 }
0x16c5   :  { %4505 = vtanh.f32 %v2075_v45  ;;  %v3944_v51 = vmul.f32 -1.442695, %v2075_v45  ;;  %v2112_v45 = vld [vmem:[#allocation6 + $0x8] sm:$0xff] }
0x16c6   :  { %4507 = vtanh.f32 %v2049_v42 }
0x16c7   :  { %4509 = vpow2.f32 %v3944_v51 }
0x16c8   :  { %4511 = vpow2.f32 %v3943_v54 }
0x16cf   :  { %v4506_v48 = vpop.eup %4505 }
0x16d0   :  { %2085 = vrot.lane.b32.xlu0 %v4506_v48, %s4787_s0  ;;  %v4508_v50 = vpop.eup %4507 }
0x16d1   :  { %v4510_v55 = vpop.eup %4509 }
0x16d2   :  { %v2079_v56 = vadd.f32 1.0, %v4510_v55  ;;  %v4512_v25 = vpop.eup %4511  ;;  %v2113_v55 = vld [vmem:[#allocation6 + $0x10] sm:$0xff] }
0x16d3   :  { %v2053_v60 = vadd.f32 1.0, %v4512_v25 }
0x16d4   :  { %2059 = vrot.lane.b32.xlu0 %v4508_v50, %s4787_s0  ;;  %4513 = vrcp.f32 %v2079_v56  ;;  %v2114_v56 = vld [vmem:[#allocation6 + $0x18] sm:$0xff] }
0x16d5   :  { %4515 = vrcp.f32 %v2053_v60 }
0x16de   :  { %v4514_v5 = vpop.eup %4513 }
0x16df   :  { %v4516_v61 = vpop.eup %4515  ;;  %v2083_v6 = vmul.f32 %v4514_v5, %v1979_v38 }
0x16e0   :  { %v2057_v11 = vmul.f32 %v4516_v61, %v1952_v40 }
0x1742   :  { %v2086_v62 = vpop.permute.xlu0 %2085 }
0x1743   :  { %v2088_v63 = vmul.f32 %v4514_v5, %v2086_v62 }
0x1745   :  { %2090 = vrot.lane.b32.xlu1 %v2088_v63, %s4793_s11 }
0x1746   :  { %v2060_v9 = vpop.permute.xlu0 %2059 }
0x1747   :  { %v2062_v3 = vmul.f32 %v4516_v61, %v2060_v9 }
0x1749   :  { %2064 = vrot.lane.b32.xlu1 %v2062_v3, %s4793_s11 }
0x174d   :  { %1993 = vrot.lane.b32.xlu1 %v1985_v59, %s4793_s11 }
0x1751   :  { %1763 = vrot.lane.b32.xlu1 %v5337_v31, %s4793_s11 }
0x17b7   :  { %v2091_v7 = vpop.permute.xlu1 %2090 }
0x17b8   :  { %v2093_v10 = vadd.f32 %v2091_v7, %v2083_v6  ;;  %v2116_v6 = vld [vmem:[#allocation6 + $0x28] sm:$0xff]  ;;  %v2115_v7 = vld [vmem:[#allocation6 + $0x20] sm:$0xff] }
0x17ba   :  { %4517 = vtanh.f32 %v2093_v10 }
0x17bb   :  { %v2065_v15 = vpop.permute.xlu1 %2064 }
0x17bc   :  { %v2067_v23 = vadd.f32 %v2065_v15, %v2057_v11  ;;  %v5473_v15 = vld [vmem:[%s5875_s18 + $0x10] ss:$8 sps:$4 sm:$0xff]  }
0x17be   :  { %4519 = vtanh.f32 %v2067_v23 }
0x17bf   :  { %v1994_v18 = vpop.permute.xlu1 %1993 }
0x17c0   :  { %1997 = vst.msk [vmem:[#allocation7 + $0x8] sm:$0xff] %vm1300_vm5, %v1994_v18 }
0x17c3   :  { %v1764_v8 = vpop.permute.xlu1 %1763 }
0x17c4   :  { %v4518_v19 = vpop.eup %4517  ;;  %1767 = vst.msk [vmem:[#allocation7 + $0x18] sm:$0xff] %vm1300_vm5, %v1764_v8  ;;  %v5480_v8 = vld [vmem:[%s5875_s18 + $0x24] ss:$8 sps:$4 sm:$0xff]  }
0x17c5   :  { %2096 = vrot.lane.b32.xlu0 %v4518_v19, %s4787_s0 }
0x17c7   :  { %v2120_v36 = vld [vmem:[#allocation7 + $0x8] sm:$0xff] }
0x17c8   :  { %v4520_v21 = vpop.eup %4519 }
0x17c9   :  { %2070 = vrot.lane.b32.xlu1 %v4520_v21, %s4787_s0 }
0x17cb   :  { %v2122_v49 = vld [vmem:[#allocation7 + $0x18] sm:$0xff] }
0x17cd   :  { %1648 = vrot.lane.b32.xlu1 %v5313_v39, %s4793_s11 }
0x17d1   :  { %1418 = vrot.lane.b32.xlu1 %v5263_v4, %s4793_s11  ;;  %v4363_v4 = vld [vmem:[%s5871_s14] sm:$0xff]  }
0x17d2   :  { %4184 = vmatprep.subr.bf16.mxu0 %v4363_v4 }
0x17d3   :  { %4185 = vmatpush3.bf16.msra.mxu0 %v4363_v4  ;;  %v5498_v4 = vld [vmem:[%s5875_s18 + $0x34] ss:$8 sps:$4 sm:$0xff]  }
0x17d4   :  { %4186 = vmatprep.subr.bf16.mxu0 %v4365_v13 }
0x17d7   :  { %4187 = vmatpush3.bf16.msra.mxu0 %v4365_v13  ;;  %v3945_v13 = vld [vmem:[%s5873_s16] ss:$0 sm:$0xff] }
0x17d8   :  { %4188 = vmatprep.subr.bf16.mxu0 %v4367_v30 }
0x17db   :  { %4189 = vmatpush3.bf16.msra.mxu0 %v4367_v30 }
0x17dc   :  { %4190 = vmatprep.subr.bf16.mxu0 %v4369_v33 }
0x17df   :  { %4191 = vmatpush3.bf16.msra.mxu0 %v4369_v33 }
0x17e0   :  { %2479 = vmatprep.subr.bf16.mxu0 %v5440_v37 }
0x1837   :  { %v2097_v31 = vpop.permute.xlu0 %2096 }
0x1838   :  { %v2099_v22 = vmul.f32 %v4514_v5, %v2097_v31  ;;  %v5458_v5 = vld [vmem:[%s5875_s18] ss:$8 sps:$4 sm:$0xff]  }
0x1839   :  { %v2117_v31 = vld [vmem:[#allocation6 + $0x30] sm:$0xff] }
0x183a   :  { %2107 = vrot.lane.b32.xlu0 %v2099_v22, %s4793_s11 }
0x183b   :  { %v2071_v24 = vpop.permute.xlu1 %2070 }
0x183c   :  { %v2073_v26 = vmul.f32 %v4516_v61, %v2071_v24  ;;  %v5463_v61 = vld [vmem:[%s5875_s18 + $0x14] ss:$8 sps:$4 sm:$0xff]  }
0x183e   :  { %2101 = vrot.lane.b32.xlu1 %v2073_v26, %s4793_s11  ;;  %1878 = vrot.lane.b32.xlu0 %v5361_v20, %s4793_s11  ;;  %v4366_v20 = vld [vmem:[%s5872_s15 + $0x8] sm:$0xff]  }
0x183f   :  { %v1649_v16 = vpop.permute.xlu1 %1648  ;;  %4202 = vmatprep.subr.bf16.mxu1 %v4366_v20 }
0x1840   :  { %1652 = vst.msk [vmem:[#allocation7 + $0x20] sm:$0xff] %vm1300_vm5, %v1649_v16  ;;  %4203 = vmatpush3.bf16.msra.mxu1 %v4366_v20  ;;  %v5491_v16 = vld [vmem:[%s5875_s18 + $0x20] ss:$8 sps:$4 sm:$0xff]  }
0x1841   :  { %4204 = vmatprep.subr.bf16.mxu1 %v4368_v32  ;;  %v3958_v20 = vld [vmem:[%s5874_s17] ss:$0 sm:$0xff] }
0x1842   :  { %1533 = vrot.lane.b32.xlu0 %v5288_v53, %s4793_s11 }
0x1843   :  { %v1419_v39 = vpop.permute.xlu1 %1418 }
0x1844   :  { %1422 = vst.msk [vmem:[#allocation7 + $0x30] sm:$0xff] %vm1300_vm5, %v1419_v39  ;;  %4205 = vmatpush3.bf16.msra.mxu1 %v4368_v32 }
0x1845   :  { %4206 = vmatprep.subr.bf16.mxu1 %v4370_v29 }
0x1846   :  { %1303 = vrot.lane.b32.xlu0 %v5238_v14, %s4793_s11 }
0x1847   :  { %v2123_v57 = vld [vmem:[#allocation7 + $0x20] sm:$0xff] }
0x1848   :  { %4207 = vmatpush3.bf16.msra.mxu1 %v4370_v29 }
0x1849   :  { %2590 = vmatprep.subr.bf16.mxu1 %v5440_v37 }
0x184b   :  { %v2125_v28 = vld [vmem:[#allocation7 + $0x30] sm:$0xff] }
0x18ac   :  { %v2108_v53 = vpop.permute.xlu0 %2107 }
0x18ad   :  { %2110 = vst.msk [vmem:[#allocation7] sm:$0xff] %vm1300_vm5, %v2108_v53 }
0x18b0   :  { %v2102_v14 = vpop.permute.xlu1 %2101  ;;  %v1879_v0 = vpop.permute.xlu0 %1878 }
0x18b1   :  { %2105 = vst.msk [vmem:[#allocation6 + $0x38] sm:$0xff] %vm1300_vm5, %v2102_v14  ;;  %1882 = vst.msk [vmem:[#allocation7 + $0x10] sm:$0xff] %vm1300_vm5, %v1879_v0 }
0x18b4   :  { %v1534_v34 = vpop.permute.xlu0 %1533  ;;  %v2119_v35 = vld [vmem:[#allocation7] sm:$0xff] }
0x18b5   :  { %1537 = vst.msk [vmem:[#allocation7 + $0x28] sm:$0xff] %vm1300_vm5, %v1534_v34  ;;  %v4300_v40 = vpack.i.bf16 %v2120_v36, %v2119_v35 }
0x18b7   :  { %4301 = vrot.lane.b32.xlu0 %v4300_v40, %s4793_s11 }
0x18b8   :  { %v1304_v38 = vpop.permute.xlu0 %1303  ;;  %v2121_v43 = vld [vmem:[#allocation7 + $0x10] sm:$0xff]  ;;  %v2118_v22 = vld [vmem:[#allocation6 + $0x38] sm:$0xff] }
0x18b9   :  { %1307 = vst.msk [vmem:[#allocation7 + $0x38] sm:$0xff] %vm1300_vm5, %v1304_v38  ;;  %v4305_v52 = vpack.i.bf16 %v2122_v49, %v2121_v43 }
0x18bb   :  { %4306 = vrot.lane.b32.xlu0 %v4305_v52, %s4793_s11 }
0x18bc   :  { %v2124_v58 = vld [vmem:[#allocation7 + $0x28] sm:$0xff] }
0x18bd   :  { %v4310_v59 = vpack.i.bf16 %v2124_v58, %v2123_v57 }
0x18bf   :  { %4311 = vrot.lane.b32.xlu1 %v4310_v59, %s4793_s11 }
0x18c0   :  { %v2126_v12 = vld [vmem:[#allocation7 + $0x38] sm:$0xff] }
0x18c1   :  { %v4315_v2 = vpack.i.bf16 %v2126_v12, %v2125_v28 }
0x18c3   :  { %4316 = vrot.lane.b32.xlu0 %v4315_v2, %s4793_s11 }
0x1929   :  { %v4302_v17 = vpop.permute.xlu0 %4301 }
0x192a   :  { %v4304_v41 = vunpack.i.h.bf16 %v4302_v17  ;;  %v4303_v42 = vunpack.i.l.bf16 %v4302_v17 }
0x192c   :  { %v2160_v46 = vsel %vm1300_vm5, %v2112_v45, %v4304_v41  ;;  %v2159_v47 = vsel %vm1300_vm5, %v2111_v44, %v4303_v42 }
0x192d   :  { %v4024_v48 = vpack.c.bf16 %v2160_v46, %v2159_v47  ;;  %v4307_v50 = vpop.permute.xlu0 %4306 }
0x192e   :  { %v4309_v51 = vunpack.i.h.bf16 %v4307_v50  ;;  %v4308_v54 = vunpack.i.l.bf16 %v4307_v50 }
0x192f   :  { %4192 = vmatprep.mubr.msk.bf16.mxu0 %vm1198_vm6, %v4024_v48  ;;  %4208 = vmatprep.mubr.msk.bf16.mxu1 %vm1198_vm6, %v4024_v48 }
0x1930   :  { %v2162_v25 = vsel %vm1300_vm5, %v2114_v56, %v4309_v51  ;;  %v2161_v60 = vsel %vm1300_vm5, %v2113_v55, %v4308_v54 }
0x1931   :  { %v4025_v62 = vpack.c.bf16 %v2162_v25, %v2161_v60  ;;  %v4312_v63 = vpop.permute.xlu1 %4311 }
0x1932   :  { %v4314_v9 = vunpack.i.h.bf16 %v4312_v63  ;;  %v4313_v3 = vunpack.i.l.bf16 %v4312_v63 }
0x1933   :  { %4193 = vmatmul.mubr.msk.bf16.vlgmr.msra.gmra.mrb[32].mxu0 %vm1198_vm6, %v4025_v62  ;;  %4209 = vmatmul.mubr.msk.bf16.vlgmr.msra.gmra.mrb[32].mxu1 %vm1198_vm6, %v4025_v62 }
0x1934   :  { %v2164_v10 = vsel %vm1300_vm5, %v2116_v6, %v4314_v9  ;;  %v2163_v11 = vsel %vm1300_vm5, %v2115_v7, %v4313_v3  ;;  %2480 = vmatpush1.bf16.msra.mxu0 %v5458_v5  ;;  %2591 = vmatpush1.bf16.msra.mxu1 %v5458_v5 }
0x1935   :  { %v4026_v23 = vpack.c.bf16 %v2164_v10, %v2163_v11  ;;  %v4317_v18 = vpop.permute.xlu0 %4316  ;;  %2481 = vmatprep.subr.bf16.mxu0 %v5463_v61  ;;  %2592 = vmatprep.subr.bf16.mxu1 %v5463_v61 }
0x1936   :  { %v4319_v19 = vunpack.i.h.bf16 %v4317_v18  ;;  %v4318_v21 = vunpack.i.l.bf16 %v4317_v18 }
0x1937   :  { %4196 = vmatprep.mubr.msk.bf16.mxu0 %vm1198_vm6, %v4026_v23  ;;  %4212 = vmatprep.mubr.msk.bf16.mxu1 %vm1198_vm6, %v4026_v23 }
0x1938   :  { %v2166_v24 = vsel %vm1300_vm5, %v2118_v22, %v4319_v19  ;;  %v2165_v26 = vsel %vm1300_vm5, %v2117_v31, %v4318_v21  ;;  %2482 = vmatpush1.bf16.msra.mxu0 %v5473_v15  ;;  %2593 = vmatpush1.bf16.msra.mxu1 %v5473_v15 }
0x1939   :  { %v4027_v39 = vpack.c.bf16 %v2166_v24, %v2165_v26  ;;  %2483 = vmatprep.subr.bf16.mxu0 %v5480_v8  ;;  %2594 = vmatprep.subr.bf16.mxu1 %v5480_v8 }
0x193b   :  { %4197 = vmatmul.mubr.msk.bf16.gmra.mrb[36].mxu0 %vm1198_vm6, %v4027_v39  ;;  %4213 = vmatmul.mubr.msk.bf16.gmra.mrb[36].mxu1 %vm1198_vm6, %v4027_v39 }
0x193c   :  { %2484 = vmatpush1.bf16.msra.mxu0 %v5491_v16  ;;  %2511 = vmatprep.mubr.bf16.mxu0 %v4792_v1 }
0x193d   :  { %2485 = vmatprep.subr.bf16.mxu0 %v5498_v4  ;;  %2595 = vmatpush1.bf16.msra.mxu1 %v5491_v16 }
0x193e   :  { %2596 = vmatprep.subr.bf16.mxu1 %v5498_v4  ;;  %2622 = vmatprep.mubr.bf16.mxu1 %v4792_v1 }
0x1940   :  { %2486 = vmatpush1.bf16.msra.mxu0 %v5507_v27 }
0x1941   :  { %2597 = vmatpush1.bf16.msra.mxu1 %v5507_v27  ;;  %2701 = vmatprep.subr.bf16.mxu0 %v5440_v37 }
0x1942   :  { %2812 = vmatprep.subr.bf16.mxu1 %v5440_v37 }
0x1943   :  { %2512 = vmatmul.mubr.bf16.vlgmr.msra.gmra.mrb[40].mxu0 %v4792_v1 }
0x1944   :  { %2702 = vmatpush1.bf16.msra.mxu0 %v5458_v5  ;;  %2733 = vmatprep.mubr.bf16.mxu0 %v4792_v1 }
0x1945   :  { %2703 = vmatprep.subr.bf16.mxu0 %v5463_v61 }
0x1948   :  { %2704 = vmatpush1.bf16.msra.mxu0 %v5473_v15 }
0x1949   :  { %2705 = vmatprep.subr.bf16.mxu0 %v5480_v8 }
0x194c   :  { %2706 = vmatpush1.bf16.msra.mxu0 %v5491_v16 }
0x194d   :  { %2707 = vmatprep.subr.bf16.mxu0 %v5498_v4 }
0x1950   :  { %2708 = vmatpush1.bf16.msra.mxu0 %v5507_v27 }
0x1951   :  { %2923 = vmatprep.subr.bf16.mxu0 %v5440_v37 }
0x1a06   :  { %v4194_v53 = vpop.f32.mrb[32].mxu0  ;;  %v4210_v30 = vpop.f32.mrb[32].mxu1 }
0x1a07   :  { %v5534_v32 = vadd.f32 %v4194_v53, %v3945_v13  ;;  %v5536_v14 = vadd.f32 %v4210_v30, %v3958_v20  ;;  %v2280_v0 = vpop.f32.mrb[33].mxu0  ;;  %v2392_v33 = vpop.f32.mrb[33].mxu1 }
0x1a08   :  { %v5538_v29 = vadd.f32 %v3958_v20, %v2392_v33  ;;  %v4195_v34 = vpop.f32.mrb[34].mxu0  ;;  %v4211_v35 = vpop.f32.mrb[34].mxu1  ;;  %v2281_v51 = vadd.f32 %v3945_v13, %v2280_v0 }
0x1a09   :  { %v5540_v36 = vadd.f32 %v4195_v34, %v3945_v13  ;;  %v5542_v40 = vadd.f32 %v4211_v35, %v3958_v20  ;;  %v2283_v38 = vpop.f32.mrb[35].mxu0  ;;  %v2395_v43 = vpop.f32.mrb[35].mxu1 }
0x1a0a   :  { %v5544_v49 = vadd.f32 %v3945_v13, %v2283_v38  ;;  %v5546_v52 = vadd.f32 %v3958_v20, %v2395_v43 }
0x1a0e   :  { %v4198_v57 = vpop.f32.mrb[36].mxu0  ;;  %v4214_v58 = vpop.f32.mrb[36].mxu1 }
0x1a0f   :  { %v5548_v59 = vadd.f32 %v4198_v57, %v3945_v13  ;;  %v5550_v28 = vadd.f32 %v4214_v58, %v3958_v20  ;;  %v2296_v12 = vpop.f32.mrb[37].mxu0  ;;  %v2408_v2 = vpop.f32.mrb[37].mxu1 }
0x1a10   :  { %v5552_v17 = vadd.f32 %v3945_v13, %v2296_v12  ;;  %v5554_v41 = vadd.f32 %v3958_v20, %v2408_v2  ;;  %v4199_v42 = vpop.f32.mrb[38].mxu0  ;;  %v4215_v44 = vpop.f32.mrb[38].mxu1 }
0x1a11   :  { %v5556_v45 = vadd.f32 %v4199_v42, %v3945_v13  ;;  %v2299_v46 = vpop.f32.mrb[39].mxu0  ;;  %v2411_v47 = vpop.f32.mrb[39].mxu1  ;;  %v2420_v54 = vadd.f32 %v4215_v44, %v3958_v20 }
0x1a12   :  { %v5558_v48 = vadd.f32 %v3945_v13, %v2299_v46  ;;  %v5560_v50 = vadd.f32 %v3958_v20, %v2411_v47 }
0x1a16   :  { %v2513_v55 = vpop.f32.mrb[40].mxu0 }
0x1a17   :  { %v2521_v56 = vadd.f32 %v2513_v55, %v2281_v51  ;;  %v2515_v25 = vpop.f32.mrb[41].mxu0 }
0x1a18   :  { %v2547_v60 = vadd.f32 %v2515_v25, %v2420_v54  ;;  %v2517_v62 = vpop.f32.mrb[42].mxu0 }
0x1a19   :  { %4521 = vtanh.f32 %v2521_v56  ;;  %v2518_v63 = vpop.f32.mrb[43].mxu0  ;;  %v3975_v6 = vmul.f32 -1.442695, %v2521_v56 }
0x1a1a   :  { %4523 = vtanh.f32 %v2547_v60  ;;  %v3976_v7 = vmul.f32 -1.442695, %v2547_v60 }
0x1a1b   :  { %4525 = vpow2.f32 %v3975_v6 }
0x1a1c   :  { %4527 = vpow2.f32 %v3976_v7 }
0x1a23   :  { %v4522_v9 = vpop.eup %4521 }
0x1a24   :  { %v4524_v3 = vpop.eup %4523  ;;  %2531 = vrot.lane.b32.xlu1 %v4522_v9, %s4787_s0 }
0x1a25   :  { %2557 = vrot.lane.b32.xlu0 %v4524_v3, %s4787_s0  ;;  %v4526_v10 = vpop.eup %4525 }
0x1a26   :  { %v4528_v11 = vpop.eup %4527  ;;  %v2525_v23 = vadd.f32 1.0, %v4526_v10 }
0x1a27   :  { %v2551_v18 = vadd.f32 1.0, %v4528_v11 }
0x1a28   :  { %4529 = vrcp.f32 %v2525_v23 }
0x1a29   :  { %4531 = vrcp.f32 %v2551_v18 }
0x1a32   :  { %v4530_v19 = vpop.eup %4529 }
0x1a33   :  { %v4532_v31 = vpop.eup %4531  ;;  %v2529_v39 = vmul.f32 0.0, %v4530_v19 }
0x1a34   :  { %v2555_v20 = vmul.f32 0.0, %v4532_v31 }
0x1a96   :  { %v2532_v21 = vpop.permute.xlu1 %2531 }
0x1a97   :  { %v2534_v22 = vmul.f32 %v4530_v19, %v2532_v21  ;;  %v2558_v24 = vpop.permute.xlu0 %2557 }
0x1a98   :  { %v2560_v26 = vmul.f32 %v4532_v31, %v2558_v24 }
0x1a99   :  { %2536 = vrot.lane.b32.xlu1 %v2534_v22, %s4793_s11 }
0x1a9a   :  { %2562 = vrot.lane.b32.xlu0 %v2560_v26, %s4793_s11 }
0x1b0b   :  { %v2537_v13 = vpop.permute.xlu1 %2536 }
0x1b0c   :  { %v2539_v53 = vadd.f32 %v2537_v13, %v2529_v39  ;;  %v2563_v30 = vpop.permute.xlu0 %2562 }
0x1b0d   :  { %v2565_v0 = vadd.f32 %v2563_v30, %v2555_v20 }
0x1b0e   :  { %4533 = vtanh.f32 %v2539_v53 }
0x1b0f   :  { %4535 = vtanh.f32 %v2565_v0 }
0x1b18   :  { %v4534_v33 = vpop.eup %4533 }
0x1b19   :  { %v4536_v34 = vpop.eup %4535  ;;  %2542 = vrot.lane.b32.xlu1 %v4534_v33, %s4787_s0 }
0x1b1a   :  { %2568 = vrot.lane.b32.xlu0 %v4536_v34, %s4787_s0 }
0x1b8b   :  { %v2543_v35 = vpop.permute.xlu1 %2542 }
0x1b8c   :  { %v2545_v38 = vmul.f32 %v4530_v19, %v2543_v35  ;;  %v2569_v43 = vpop.permute.xlu0 %2568 }
0x1b8d   :  { %v5568_v57 = vmul.f32 %v4532_v31, %v2569_v43 }
0x1b8e   :  { %2573 = vrot.lane.b32.xlu1 %v2545_v38, %s4793_s11 }
0x1b8f   :  { %2582 = vrot.lane.b32.xlu0 %v5568_v57, %s4787_s0 }
0x1c00   :  { %v2574_v58 = vpop.permute.xlu1 %2573 }
0x1c01   :  { %2576 = vst.msk [vmem:[#allocation6] sm:$0xff] %vm1300_vm5, %v2574_v58  ;;  %v2583_v12 = vpop.permute.xlu0 %2582 }
0x1c02   :  { %v2585_v2 = vsel %vm1300_vm5, %v2574_v58, %v2583_v12 }
0x1c03   :  { %v2586_v42 = vpack.c.bf16 %v2585_v2, %v2585_v2 }
0x1c05   :  { %3977 = vmatmul.mubr.msk.bf16.vlgmr.msra.gmra.mrb[40].mxu1 %vm1198_vm6, %v2586_v42 }
0x1c06   :  { %2813 = vmatpush1.bf16.msra.mxu1 %v5458_v5  ;;  %2844 = vmatprep.mubr.bf16.mxu1 %v4792_v1 }
0x1c07   :  { %2814 = vmatprep.subr.bf16.mxu1 %v5463_v61 }
0x1c0a   :  { %2815 = vmatpush1.bf16.msra.mxu1 %v5473_v15 }
0x1c0b   :  { %2816 = vmatprep.subr.bf16.mxu1 %v5480_v8 }
0x1c0e   :  { %2817 = vmatpush1.bf16.msra.mxu1 %v5491_v16 }
0x1c0f   :  { %2818 = vmatprep.subr.bf16.mxu1 %v5498_v4 }
0x1c12   :  { %2819 = vmatpush1.bf16.msra.mxu1 %v5507_v27 }
0x1c13   :  { %3034 = vmatprep.subr.bf16.mxu1 %v5440_v37 }
0x1cd8   :  { %v2624_v44 = vpop.f32.mrb[40].mxu1 }
0x1cd9   :  { %v2632_v46 = vadd.f32 %v2624_v44, %v5544_v49  ;;  %v2626_v47 = vpop.f32.mrb[41].mxu1 }
0x1cda   :  { %v2658_v51 = vadd.f32 %v2626_v47, %v5550_v28  ;;  %v2628_v54 = vpop.f32.mrb[42].mxu1 }
0x1cdb   :  { %4537 = vtanh.f32 %v2632_v46  ;;  %v2629_v55 = vpop.f32.mrb[43].mxu1  ;;  %v3978_v60 = vmul.f32 -1.442695, %v2632_v46 }
0x1cdc   :  { %4539 = vtanh.f32 %v2658_v51  ;;  %v3979_v62 = vmul.f32 -1.442695, %v2658_v51 }
0x1cdd   :  { %4541 = vpow2.f32 %v3978_v60 }
0x1cde   :  { %4543 = vpow2.f32 %v3979_v62 }
0x1ce5   :  { %v4538_v56 = vpop.eup %4537 }
0x1ce6   :  { %v4540_v25 = vpop.eup %4539  ;;  %2642 = vrot.lane.b32.xlu1 %v4538_v56, %s4787_s0 }
0x1ce7   :  { %2668 = vrot.lane.b32.xlu0 %v4540_v25, %s4787_s0  ;;  %v4542_v63 = vpop.eup %4541 }
0x1ce8   :  { %v4544_v9 = vpop.eup %4543  ;;  %v2636_v49 = vadd.f32 1.0, %v4542_v63 }
0x1ce9   :  { %v2662_v3 = vadd.f32 1.0, %v4544_v9 }
0x1cea   :  { %4545 = vrcp.f32 %v2636_v49 }
0x1ceb   :  { %4547 = vrcp.f32 %v2662_v3 }
0x1cf4   :  { %v4546_v28 = vpop.eup %4545 }
0x1cf5   :  { %v4548_v7 = vpop.eup %4547  ;;  %v2640_v18 = vmul.f32 %v4546_v28, %v2539_v53 }
0x1cf6   :  { %v2666_v21 = vmul.f32 %v4548_v7, %v2565_v0 }
0x1d58   :  { %v2643_v6 = vpop.permute.xlu1 %2642 }
0x1d59   :  { %v2645_v10 = vmul.f32 %v4546_v28, %v2643_v6  ;;  %v2669_v11 = vpop.permute.xlu0 %2668 }
0x1d5a   :  { %v2671_v23 = vmul.f32 %v4548_v7, %v2669_v11 }
0x1d5b   :  { %2647 = vrot.lane.b32.xlu1 %v2645_v10, %s4793_s11 }
0x1d5c   :  { %2673 = vrot.lane.b32.xlu0 %v2671_v23, %s4793_s11 }
0x1dcd   :  { %v2648_v19 = vpop.permute.xlu1 %2647 }
0x1dce   :  { %v2650_v31 = vadd.f32 %v2648_v19, %v2640_v18  ;;  %v2674_v22 = vpop.permute.xlu0 %2673 }
0x1dcf   :  { %v2676_v24 = vadd.f32 %v2674_v22, %v2666_v21 }
0x1dd0   :  { %4549 = vtanh.f32 %v2650_v31 }
0x1dd1   :  { %4551 = vtanh.f32 %v2676_v24 }
0x1dda   :  { %v4550_v26 = vpop.eup %4549 }
0x1ddb   :  { %v4552_v39 = vpop.eup %4551  ;;  %2653 = vrot.lane.b32.xlu1 %v4550_v26, %s4787_s0 }
0x1ddc   :  { %2679 = vrot.lane.b32.xlu0 %v4552_v39, %s4787_s0 }
0x1e4d   :  { %v2654_v13 = vpop.permute.xlu1 %2653 }
0x1e4e   :  { %v2656_v20 = vmul.f32 %v4546_v28, %v2654_v13  ;;  %v2680_v30 = vpop.permute.xlu0 %2679 }
0x1e4f   :  { %v5593_v33 = vmul.f32 %v4548_v7, %v2680_v30 }
0x1e50   :  { %2684 = vrot.lane.b32.xlu1 %v2656_v20, %s4793_s11 }
0x1e51   :  { %2693 = vrot.lane.b32.xlu0 %v5593_v33, %s4787_s0 }
0x1ec2   :  { %v2685_v53 = vpop.permute.xlu1 %2684 }
0x1ec3   :  { %2687 = vst.msk [vmem:[#allocation6 + $0x8] sm:$0xff] %vm1300_vm5, %v2685_v53  ;;  %v2694_v0 = vpop.permute.xlu0 %2693 }
0x1ec4   :  { %v2696_v34 = vsel %vm1300_vm5, %v2685_v53, %v2694_v0 }
0x1ec5   :  { %v2697_v35 = vpack.c.bf16 %v2696_v34, %v2696_v34 }
0x1ec7   :  { %3980 = vmatmul.mubr.msk.bf16.vlgmr.msra.gmra.mrb[44].mxu0 %vm1198_vm6, %v2697_v35 }
0x1ec8   :  { %2924 = vmatpush1.bf16.msra.mxu0 %v5458_v5  ;;  %2955 = vmatprep.mubr.bf16.mxu0 %v4792_v1 }
0x1ec9   :  { %2925 = vmatprep.subr.bf16.mxu0 %v5463_v61 }
0x1ecc   :  { %2926 = vmatpush1.bf16.msra.mxu0 %v5473_v15 }
0x1ecd   :  { %2927 = vmatprep.subr.bf16.mxu0 %v5480_v8 }
0x1ed0   :  { %2928 = vmatpush1.bf16.msra.mxu0 %v5491_v16 }
0x1ed1   :  { %2929 = vmatprep.subr.bf16.mxu0 %v5498_v4 }
0x1ed4   :  { %2930 = vmatpush1.bf16.msra.mxu0 %v5507_v27 }
0x1ed5   :  { %3145 = vmatprep.subr.bf16.mxu0 %v5440_v37 }
0x1f9a   :  { %v2735_v38 = vpop.f32.mrb[44].mxu0 }
0x1f9b   :  { %v2743_v43 = vadd.f32 %v2735_v38, %v5534_v32  ;;  %v2737_v58 = vpop.f32.mrb[45].mxu0 }
0x1f9c   :  { %v2769_v12 = vadd.f32 %v2737_v58, %v5560_v50  ;;  %v2739_v2 = vpop.f32.mrb[46].mxu0 }
0x1f9d   :  { %4553 = vtanh.f32 %v2743_v43  ;;  %v2740_v42 = vpop.f32.mrb[47].mxu0  ;;  %v3981_v47 = vmul.f32 -1.442695, %v2743_v43 }
0x1f9e   :  { %4555 = vtanh.f32 %v2769_v12  ;;  %v3982_v51 = vmul.f32 -1.442695, %v2769_v12 }
0x1f9f   :  { %4557 = vpow2.f32 %v3981_v47 }
0x1fa0   :  { %4559 = vpow2.f32 %v3982_v51 }
0x1fa7   :  { %v4554_v44 = vpop.eup %4553 }
0x1fa8   :  { %v4556_v46 = vpop.eup %4555  ;;  %2753 = vrot.lane.b32.xlu1 %v4554_v44, %s4787_s0 }
0x1fa9   :  { %2779 = vrot.lane.b32.xlu0 %v4556_v46, %s4787_s0  ;;  %v4558_v54 = vpop.eup %4557 }
0x1faa   :  { %v4560_v55 = vpop.eup %4559  ;;  %v2747_v32 = vadd.f32 1.0, %v4558_v54 }
0x1fab   :  { %v2773_v56 = vadd.f32 1.0, %v4560_v55 }
0x1fac   :  { %4561 = vrcp.f32 %v2747_v32 }
0x1fad   :  { %4563 = vrcp.f32 %v2773_v56 }
0x1fb6   :  { %v4562_v50 = vpop.eup %4561 }
0x1fb7   :  { %v4564_v60 = vpop.eup %4563  ;;  %v2751_v49 = vmul.f32 %v4562_v50, %v2650_v31 }
0x1fb8   :  { %v2777_v28 = vmul.f32 %v4564_v60, %v2676_v24 }
0x201a   :  { %v2754_v25 = vpop.permute.xlu1 %2753 }
0x201b   :  { %v2756_v62 = vmul.f32 %v4562_v50, %v2754_v25  ;;  %v2780_v63 = vpop.permute.xlu0 %2779 }
0x201c   :  { %v2782_v9 = vmul.f32 %v4564_v60, %v2780_v63 }
0x201d   :  { %2758 = vrot.lane.b32.xlu1 %v2756_v62, %s4793_s11 }
0x201e   :  { %2784 = vrot.lane.b32.xlu0 %v2782_v9, %s4793_s11 }
0x208f   :  { %v2759_v3 = vpop.permute.xlu1 %2758 }
0x2090   :  { %v2761_v6 = vadd.f32 %v2759_v3, %v2751_v49  ;;  %v2785_v7 = vpop.permute.xlu0 %2784 }
0x2091   :  { %v2787_v10 = vadd.f32 %v2785_v7, %v2777_v28 }
0x2092   :  { %4565 = vtanh.f32 %v2761_v6 }
0x2093   :  { %4567 = vtanh.f32 %v2787_v10 }
0x209c   :  { %v4566_v11 = vpop.eup %4565 }
0x209d   :  { %v4568_v23 = vpop.eup %4567  ;;  %2764 = vrot.lane.b32.xlu1 %v4566_v11, %s4787_s0 }
0x209e   :  { %2790 = vrot.lane.b32.xlu0 %v4568_v23, %s4787_s0 }
0x210f   :  { %v2765_v18 = vpop.permute.xlu1 %2764 }
0x2110   :  { %v2767_v19 = vmul.f32 %v4562_v50, %v2765_v18  ;;  %v2791_v21 = vpop.permute.xlu0 %2790 }
0x2111   :  { %v5618_v22 = vmul.f32 %v4564_v60, %v2791_v21 }
0x2112   :  { %2795 = vrot.lane.b32.xlu1 %v2767_v19, %s4793_s11 }
0x2113   :  { %2804 = vrot.lane.b32.xlu0 %v5618_v22, %s4787_s0 }
0x2184   :  { %v2796_v31 = vpop.permute.xlu1 %2795 }
0x2185   :  { %2798 = vst.msk [vmem:[#allocation6 + $0x10] sm:$0xff] %vm1300_vm5, %v2796_v31  ;;  %v2805_v24 = vpop.permute.xlu0 %2804 }
0x2186   :  { %v2807_v26 = vsel %vm1300_vm5, %v2796_v31, %v2805_v24 }
0x2187   :  { %v2808_v39 = vpack.c.bf16 %v2807_v26, %v2807_v26 }
0x2189   :  { %3983 = vmatmul.mubr.msk.bf16.vlgmr.msra.gmra.mrb[44].mxu1 %vm1198_vm6, %v2808_v39 }
0x218a   :  { %3035 = vmatpush1.bf16.msra.mxu1 %v5458_v5  ;;  %3066 = vmatprep.mubr.bf16.mxu1 %v4792_v1 }
0x218b   :  { %3036 = vmatprep.subr.bf16.mxu1 %v5463_v61 }
0x218e   :  { %3037 = vmatpush1.bf16.msra.mxu1 %v5473_v15 }
0x218f   :  { %3038 = vmatprep.subr.bf16.mxu1 %v5480_v8 }
0x2192   :  { %3039 = vmatpush1.bf16.msra.mxu1 %v5491_v16 }
0x2193   :  { %3040 = vmatprep.subr.bf16.mxu1 %v5498_v4 }
0x2196   :  { %3041 = vmatpush1.bf16.msra.mxu1 %v5507_v27 }
0x2197   :  { %3256 = vmatprep.subr.bf16.mxu1 %v5440_v37 }
0x225c   :  { %v2846_v13 = vpop.f32.mrb[44].mxu1 }
0x225d   :  { %v2854_v20 = vadd.f32 %v2846_v13, %v5540_v36  ;;  %v2848_v30 = vpop.f32.mrb[45].mxu1 }
0x225e   :  { %v2880_v53 = vadd.f32 %v2848_v30, %v5554_v41  ;;  %v2850_v0 = vpop.f32.mrb[46].mxu1 }
0x225f   :  { %4569 = vtanh.f32 %v2854_v20  ;;  %v2851_v34 = vpop.f32.mrb[47].mxu1  ;;  %v3984_v43 = vmul.f32 -1.442695, %v2854_v20 }
0x2260   :  { %4571 = vtanh.f32 %v2880_v53  ;;  %v3985_v58 = vmul.f32 -1.442695, %v2880_v53 }
0x2261   :  { %4573 = vpow2.f32 %v3984_v43 }
0x2262   :  { %4575 = vpow2.f32 %v3985_v58 }
0x2269   :  { %v4570_v35 = vpop.eup %4569 }
0x226a   :  { %v4572_v38 = vpop.eup %4571  ;;  %2864 = vrot.lane.b32.xlu1 %v4570_v35, %s4787_s0 }
0x226b   :  { %2890 = vrot.lane.b32.xlu0 %v4572_v38, %s4787_s0  ;;  %v4574_v37 = vpop.eup %4573 }
0x226c   :  { %v4576_v12 = vpop.eup %4575  ;;  %v2858_v36 = vadd.f32 1.0, %v4574_v37 }
0x226d   :  { %v2884_v2 = vadd.f32 1.0, %v4576_v12 }
0x226e   :  { %4577 = vrcp.f32 %v2858_v36 }
0x226f   :  { %4579 = vrcp.f32 %v2884_v2 }
0x2278   :  { %v4578_v41 = vpop.eup %4577 }
0x2279   :  { %v4580_v44 = vpop.eup %4579  ;;  %v2862_v54 = vmul.f32 %v4578_v41, %v2761_v6 }
0x227a   :  { %v2888_v32 = vmul.f32 %v4580_v44, %v2787_v10 }
0x22dc   :  { %v2865_v42 = vpop.permute.xlu1 %2864 }
0x22dd   :  { %v2867_v46 = vmul.f32 %v4578_v41, %v2865_v42  ;;  %v2891_v47 = vpop.permute.xlu0 %2890 }
0x22de   :  { %v2893_v51 = vmul.f32 %v4580_v44, %v2891_v47 }
0x22df   :  { %2869 = vrot.lane.b32.xlu1 %v2867_v46, %s4793_s11 }
0x22e0   :  { %2895 = vrot.lane.b32.xlu0 %v2893_v51, %s4793_s11 }
0x2351   :  { %v2870_v55 = vpop.permute.xlu1 %2869 }
0x2352   :  { %v2872_v56 = vadd.f32 %v2870_v55, %v2862_v54  ;;  %v2896_v50 = vpop.permute.xlu0 %2895 }
0x2353   :  { %v2898_v25 = vadd.f32 %v2896_v50, %v2888_v32 }
0x2354   :  { %4581 = vtanh.f32 %v2872_v56 }
0x2355   :  { %4583 = vtanh.f32 %v2898_v25 }
0x235e   :  { %v4582_v60 = vpop.eup %4581 }
0x235f   :  { %v4584_v62 = vpop.eup %4583  ;;  %2875 = vrot.lane.b32.xlu1 %v4582_v60, %s4787_s0 }
0x2360   :  { %2901 = vrot.lane.b32.xlu0 %v4584_v62, %s4787_s0 }
0x23d1   :  { %v2876_v63 = vpop.permute.xlu1 %2875 }
0x23d2   :  { %v2878_v9 = vmul.f32 %v4578_v41, %v2876_v63  ;;  %v2902_v49 = vpop.permute.xlu0 %2901 }
0x23d3   :  { %v5643_v3 = vmul.f32 %v4580_v44, %v2902_v49 }
0x23d4   :  { %2906 = vrot.lane.b32.xlu1 %v2878_v9, %s4793_s11 }
0x23d5   :  { %2915 = vrot.lane.b32.xlu0 %v5643_v3, %s4787_s0 }
0x2446   :  { %v2907_v28 = vpop.permute.xlu1 %2906 }
0x2447   :  { %2909 = vst.msk [vmem:[#allocation6 + $0x18] sm:$0xff] %vm1300_vm5, %v2907_v28  ;;  %v2916_v6 = vpop.permute.xlu0 %2915 }
0x2448   :  { %v2918_v7 = vsel %vm1300_vm5, %v2907_v28, %v2916_v6 }
0x2449   :  { %v2919_v10 = vpack.c.bf16 %v2918_v7, %v2918_v7 }
0x244b   :  { %3986 = vmatmul.mubr.msk.bf16.vlgmr.msra.gmra.mrb[48].mxu0 %vm1198_vm6, %v2919_v10 }
0x244c   :  { %3146 = vmatpush1.bf16.msra.mxu0 %v5458_v5  ;;  %3177 = vmatprep.mubr.bf16.mxu0 %v4792_v1 }
0x244d   :  { %3147 = vmatprep.subr.bf16.mxu0 %v5463_v61 }
0x2450   :  { %3148 = vmatpush1.bf16.msra.mxu0 %v5473_v15 }
0x2451   :  { %3149 = vmatprep.subr.bf16.mxu0 %v5480_v8 }
0x2454   :  { %3150 = vmatpush1.bf16.msra.mxu0 %v5491_v16 }
0x2455   :  { %3151 = vmatprep.subr.bf16.mxu0 %v5498_v4 }
0x2458   :  { %3152 = vmatpush1.bf16.msra.mxu0 %v5507_v27 }
0x251e   :  { %v2957_v11 = vpop.f32.mrb[48].mxu0 }
0x251f   :  { %v2965_v23 = vadd.f32 %v2957_v11, %v5552_v17  ;;  %v2959_v18 = vpop.f32.mrb[49].mxu0 }
0x2520   :  { %v2991_v19 = vadd.f32 %v2959_v18, %v5542_v40  ;;  %v2961_v21 = vpop.f32.mrb[50].mxu0 }
0x2521   :  { %4585 = vtanh.f32 %v2965_v23  ;;  %v2962_v31 = vpop.f32.mrb[51].mxu0  ;;  %v3987_v39 = vmul.f32 -1.442695, %v2965_v23 }
0x2522   :  { %4587 = vtanh.f32 %v2991_v19  ;;  %v3988_v13 = vmul.f32 -1.442695, %v2991_v19 }
0x2523   :  { %4589 = vpow2.f32 %v3987_v39 }
0x2524   :  { %4591 = vpow2.f32 %v3988_v13 }
0x252b   :  { %v4586_v24 = vpop.eup %4585 }
0x252c   :  { %v4588_v26 = vpop.eup %4587  ;;  %2975 = vrot.lane.b32.xlu1 %v4586_v24, %s4787_s0 }
0x252d   :  { %3001 = vrot.lane.b32.xlu0 %v4588_v26, %s4787_s0  ;;  %v4590_v20 = vpop.eup %4589 }
0x252e   :  { %v4592_v30 = vpop.eup %4591  ;;  %v2969_v17 = vadd.f32 1.0, %v4590_v20 }
0x252f   :  { %v2995_v53 = vadd.f32 1.0, %v4592_v30 }
0x2530   :  { %4593 = vrcp.f32 %v2969_v17 }
0x2531   :  { %4595 = vrcp.f32 %v2995_v53 }
0x253a   :  { %v4594_v40 = vpop.eup %4593 }
0x253b   :  { %v4596_v34 = vpop.eup %4595  ;;  %v2973_v58 = vmul.f32 %v4594_v40, %v2872_v56 }
0x253c   :  { %v2999_v12 = vmul.f32 %v4596_v34, %v2898_v25 }
0x259e   :  { %v2976_v0 = vpop.permute.xlu1 %2975 }
0x259f   :  { %v2978_v35 = vmul.f32 %v4594_v40, %v2976_v0  ;;  %v3002_v38 = vpop.permute.xlu0 %3001 }
0x25a0   :  { %v3004_v43 = vmul.f32 %v4596_v34, %v3002_v38 }
0x25a1   :  { %2980 = vrot.lane.b32.xlu1 %v2978_v35, %s4793_s11 }
0x25a2   :  { %3006 = vrot.lane.b32.xlu0 %v3004_v43, %s4793_s11 }
0x2613   :  { %v2981_v37 = vpop.permute.xlu1 %2980 }
0x2614   :  { %v2983_v36 = vadd.f32 %v2981_v37, %v2973_v58  ;;  %v3007_v2 = vpop.permute.xlu0 %3006 }
0x2615   :  { %v3009_v41 = vadd.f32 %v3007_v2, %v2999_v12 }
0x2616   :  { %4597 = vtanh.f32 %v2983_v36 }
0x2617   :  { %4599 = vtanh.f32 %v3009_v41 }
0x2620   :  { %v4598_v42 = vpop.eup %4597 }
0x2621   :  { %v4600_v44 = vpop.eup %4599  ;;  %2986 = vrot.lane.b32.xlu1 %v4598_v42, %s4787_s0 }
0x2622   :  { %3012 = vrot.lane.b32.xlu0 %v4600_v44, %s4787_s0 }
0x2693   :  { %v2987_v46 = vpop.permute.xlu1 %2986 }
0x2694   :  { %v2989_v47 = vmul.f32 %v4594_v40, %v2987_v46  ;;  %v3013_v51 = vpop.permute.xlu0 %3012 }
0x2695   :  { %v5667_v54 = vmul.f32 %v4596_v34, %v3013_v51 }
0x2696   :  { %3017 = vrot.lane.b32.xlu1 %v2989_v47, %s4793_s11 }
0x2697   :  { %3026 = vrot.lane.b32.xlu0 %v5667_v54, %s4787_s0 }
0x2708   :  { %v3018_v55 = vpop.permute.xlu1 %3017 }
0x2709   :  { %3020 = vst.msk [vmem:[#allocation6 + $0x20] sm:$0xff] %vm1300_vm5, %v3018_v55  ;;  %v3027_v32 = vpop.permute.xlu0 %3026 }
0x270a   :  { %v3029_v56 = vsel %vm1300_vm5, %v3018_v55, %v3027_v32 }
0x270b   :  { %v3030_v50 = vpack.c.bf16 %v3029_v56, %v3029_v56 }
0x270d   :  { %3989 = vmatmul.mubr.msk.bf16.vlgmr.msra.gmra.mrb[48].mxu1 %vm1198_vm6, %v3030_v50 }
0x270e   :  { %3257 = vmatpush1.bf16.msra.mxu1 %v5458_v5  ;;  %3288 = vmatprep.mubr.bf16.mxu1 %v4792_v1 }
0x270f   :  { %3258 = vmatprep.subr.bf16.mxu1 %v5463_v61 }
0x2712   :  { %3259 = vmatpush1.bf16.msra.mxu1 %v5473_v15 }
0x2713   :  { %3260 = vmatprep.subr.bf16.mxu1 %v5480_v8 }
0x2716   :  { %3261 = vmatpush1.bf16.msra.mxu1 %v5491_v16 }
0x2717   :  { %3262 = vmatprep.subr.bf16.mxu1 %v5498_v4 }
0x271a   :  { %3263 = vmatpush1.bf16.msra.mxu1 %v5507_v27 }
0x27e0   :  { %v3068_v25 = vpop.f32.mrb[48].mxu1 }
0x27e1   :  { %v3076_v60 = vadd.f32 %v3068_v25, %v5558_v48  ;;  %v3070_v62 = vpop.f32.mrb[49].mxu1 }
0x27e2   :  { %v3102_v5 = vadd.f32 %v3070_v62, %v5536_v14  ;;  %v3072_v63 = vpop.f32.mrb[50].mxu1 }
0x27e3   :  { %4601 = vtanh.f32 %v3076_v60  ;;  %v3073_v1 = vpop.f32.mrb[51].mxu1  ;;  %v3990_v8 = vmul.f32 -1.442695, %v3076_v60 }
0x27e4   :  { %4603 = vtanh.f32 %v3102_v5  ;;  %v3991_v16 = vmul.f32 -1.442695, %v3102_v5 }
0x27e5   :  { %4605 = vpow2.f32 %v3990_v8 }
0x27e6   :  { %4607 = vpow2.f32 %v3991_v16 }
0x27ed   :  { %v4602_v61 = vpop.eup %4601 }
0x27ee   :  { %v4604_v15 = vpop.eup %4603  ;;  %3086 = vrot.lane.b32.xlu1 %v4602_v61, %s4787_s0 }
0x27ef   :  { %3112 = vrot.lane.b32.xlu0 %v4604_v15, %s4787_s0  ;;  %v4606_v4 = vpop.eup %4605 }
0x27f0   :  { %v4608_v27 = vpop.eup %4607  ;;  %v3080_v48 = vadd.f32 1.0, %v4606_v4 }
0x27f1   :  { %v3106_v9 = vadd.f32 1.0, %v4608_v27 }
0x27f2   :  { %4609 = vrcp.f32 %v3080_v48 }
0x27f3   :  { %4611 = vrcp.f32 %v3106_v9 }
0x27fc   :  { %v4610_v14 = vpop.eup %4609 }
0x27fd   :  { %v4612_v28 = vpop.eup %4611  ;;  %v3084_v11 = vmul.f32 %v4610_v14, %v2983_v36 }
0x27fe   :  { %v3110_v18 = vmul.f32 %v4612_v28, %v3009_v41 }
0x2860   :  { %v3087_v49 = vpop.permute.xlu1 %3086 }
0x2861   :  { %v3089_v6 = vmul.f32 %v4610_v14, %v3087_v49  ;;  %v3113_v7 = vpop.permute.xlu0 %3112 }
0x2862   :  { %v3115_v10 = vmul.f32 %v4612_v28, %v3113_v7 }
0x2863   :  { %3091 = vrot.lane.b32.xlu1 %v3089_v6, %s4793_s11 }
0x2864   :  { %3117 = vrot.lane.b32.xlu0 %v3115_v10, %s4793_s11 }
0x28d5   :  { %v3092_v23 = vpop.permute.xlu1 %3091 }
0x28d6   :  { %v3094_v19 = vadd.f32 %v3092_v23, %v3084_v11  ;;  %v3118_v21 = vpop.permute.xlu0 %3117 }
0x28d7   :  { %v3120_v31 = vadd.f32 %v3118_v21, %v3110_v18 }
0x28d8   :  { %4613 = vtanh.f32 %v3094_v19 }
0x28d9   :  { %4615 = vtanh.f32 %v3120_v31 }
0x28e2   :  { %v4614_v24 = vpop.eup %4613 }
0x28e3   :  { %v4616_v26 = vpop.eup %4615  ;;  %3097 = vrot.lane.b32.xlu1 %v4614_v24, %s4787_s0 }
0x28e4   :  { %3123 = vrot.lane.b32.xlu0 %v4616_v26, %s4787_s0 }
0x2955   :  { %v3098_v39 = vpop.permute.xlu1 %3097 }
0x2956   :  { %v3100_v13 = vmul.f32 %v4610_v14, %v3098_v39  ;;  %v3124_v20 = vpop.permute.xlu0 %3123 }
0x2957   :  { %v5691_v30 = vmul.f32 %v4612_v28, %v3124_v20 }
0x2958   :  { %3128 = vrot.lane.b32.xlu1 %v3100_v13, %s4793_s11 }
0x2959   :  { %3137 = vrot.lane.b32.xlu0 %v5691_v30, %s4787_s0 }
0x29ca   :  { %v3129_v17 = vpop.permute.xlu1 %3128 }
0x29cb   :  { %3131 = vst.msk [vmem:[#allocation6 + $0x28] sm:$0xff] %vm1300_vm5, %v3129_v17  ;;  %v3138_v53 = vpop.permute.xlu0 %3137 }
0x29cc   :  { %v3140_v40 = vsel %vm1300_vm5, %v3129_v17, %v3138_v53 }
0x29cd   :  { %v3141_v0 = vpack.c.bf16 %v3140_v40, %v3140_v40 }
0x29cf   :  { %3992 = vmatmul.mubr.msk.bf16.vlgmr.msra.gmra.mrb[52].mxu0 %vm1198_vm6, %v3141_v0 }
0x2aa2   :  { %v3179_v34 = vpop.f32.mrb[52].mxu0 }
0x2aa3   :  { %v3187_v35 = vadd.f32 %v3179_v34, %v5548_v59  ;;  %v3181_v38 = vpop.f32.mrb[53].mxu0 }
0x2aa4   :  { %v3213_v43 = vadd.f32 %v3181_v38, %v5546_v52  ;;  %v3183_v58 = vpop.f32.mrb[54].mxu0 }
0x2aa5   :  { %4617 = vtanh.f32 %v3187_v35  ;;  %v3184_v37 = vpop.f32.mrb[55].mxu0  ;;  %v3993_v2 = vmul.f32 -1.442695, %v3187_v35 }
0x2aa6   :  { %4619 = vtanh.f32 %v3213_v43  ;;  %v3994_v41 = vmul.f32 -1.442695, %v3213_v43 }
0x2aa7   :  { %4621 = vpow2.f32 %v3993_v2 }
0x2aa8   :  { %4623 = vpow2.f32 %v3994_v41 }
0x2aaf   :  { %v4618_v12 = vpop.eup %4617 }
0x2ab0   :  { %v4620_v36 = vpop.eup %4619  ;;  %3197 = vrot.lane.b32.xlu1 %v4618_v12, %s4787_s0 }
0x2ab1   :  { %3223 = vrot.lane.b32.xlu0 %v4620_v36, %s4787_s0  ;;  %v4622_v42 = vpop.eup %4621 }
0x2ab2   :  { %v4624_v44 = vpop.eup %4623  ;;  %v3191_v59 = vadd.f32 1.0, %v4622_v42 }
0x2ab3   :  { %v3217_v46 = vadd.f32 1.0, %v4624_v44 }
0x2ab4   :  { %4625 = vrcp.f32 %v3191_v59 }
0x2ab5   :  { %4627 = vrcp.f32 %v3217_v46 }
0x2abe   :  { %v4626_v52 = vpop.eup %4625 }
0x2abf   :  { %v4628_v51 = vpop.eup %4627  ;;  %v3195_v50 = vmul.f32 %v4626_v52, %v3094_v19 }
0x2ac0   :  { %v3221_v60 = vmul.f32 %v4628_v51, %v3120_v31 }
0x2b22   :  { %v3198_v47 = vpop.permute.xlu1 %3197 }
0x2b23   :  { %v3200_v55 = vmul.f32 %v4626_v52, %v3198_v47  ;;  %v3224_v32 = vpop.permute.xlu0 %3223 }
0x2b24   :  { %v3226_v56 = vmul.f32 %v4628_v51, %v3224_v32 }
0x2b25   :  { %3202 = vrot.lane.b32.xlu1 %v3200_v55, %s4793_s11  ;;  %v3431_v55 = vld [vmem:[#allocation8] sm:$0x1] }
0x2b26   :  { %3228 = vrot.lane.b32.xlu0 %v3226_v56, %s4793_s11  ;;  %4287 = vpush %v3431_v55 }
0x2b97   :  { %v3203_v25 = vpop.permute.xlu1 %3202 }
0x2b98   :  { %v3205_v62 = vadd.f32 %v3203_v25, %v3195_v50  ;;  %v3229_v5 = vpop.permute.xlu0 %3228 }
0x2b99   :  { %v3231_v63 = vadd.f32 %v3229_v5, %v3221_v60 }
0x2b9a   :  { %4629 = vtanh.f32 %v3205_v62 }
0x2b9b   :  { %4631 = vtanh.f32 %v3231_v63 }
0x2ba4   :  { %v4630_v1 = vpop.eup %4629 }
0x2ba5   :  { %v4632_v61 = vpop.eup %4631  ;;  %3208 = vrot.lane.b32.xlu1 %v4630_v1, %s4787_s0 }
0x2ba6   :  { %3234 = vrot.lane.b32.xlu0 %v4632_v61, %s4787_s0  ;;  %v3360_v61 = vld [vmem:[#allocation6 + $0x8] sm:$0xff] }
0x2c17   :  { %v3209_v15 = vpop.permute.xlu1 %3208 }
0x2c18   :  { %v3211_v8 = vmul.f32 %v4626_v52, %v3209_v15  ;;  %v3235_v16 = vpop.permute.xlu0 %3234  ;;  %v3359_v15 = vld [vmem:[#allocation6] sm:$0xff] }
0x2c19   :  { %v3237_v4 = vmul.f32 %v4628_v51, %v3235_v16 }
0x2c1a   :  { %3239 = vrot.lane.b32.xlu1 %v3211_v8, %s4793_s11 }
0x2c1b   :  { %3248 = vrot.lane.b32.xlu0 %v3237_v4, %s4787_s0 }
0x2c8c   :  { %v3240_v27 = vpop.permute.xlu1 %3239 }
0x2c8d   :  { %3242 = vst.msk [vmem:[#allocation6 + $0x30] sm:$0xff] %vm1300_vm5, %v3240_v27  ;;  %v3249_v48 = vpop.permute.xlu0 %3248 }
0x2c8e   :  { %v3251_v9 = vsel %vm1300_vm5, %v3240_v27, %v3249_v48  ;;  %v3361_v48 = vld [vmem:[#allocation6 + $0x10] sm:$0xff] }
0x2c8f   :  { %v3252_v14 = vpack.c.bf16 %v3251_v9, %v3251_v9 }
0x2c91   :  { %3995 = vmatmul.mubr.msk.bf16.vlgmr.msra.gmra.mrb[52].mxu1 %vm1198_vm6, %v3252_v14  ;;  %v3362_v14 = vld [vmem:[#allocation6 + $0x18] sm:$0xff] }
0x2d64   :  { %v3290_v49 = vpop.f32.mrb[52].mxu1 }
0x2d65   :  { %v3298_v28 = vadd.f32 %v3290_v49, %v5556_v45  ;;  %v3292_v6 = vpop.f32.mrb[53].mxu1 }
0x2d66   :  { %v3324_v7 = vadd.f32 %v3292_v6, %v5538_v29  ;;  %v3294_v10 = vpop.f32.mrb[54].mxu1 }
0x2d67   :  { %v3295_v11 = vpop.f32.mrb[55].mxu1  ;;  %v3996_v21 = vmul.f32 -1.442695, %v3298_v28 }
0x2d68   :  { %4633 = vtanh.f32 %v3324_v7  ;;  %v3997_v19 = vmul.f32 -1.442695, %v3324_v7  ;;  %v3363_v11 = vld [vmem:[#allocation6 + $0x20] sm:$0xff] }
0x2d69   :  { %4635 = vtanh.f32 %v3298_v28 }
0x2d6a   :  { %4637 = vpow2.f32 %v3997_v19 }
0x2d6b   :  { %4639 = vpow2.f32 %v3996_v21 }
0x2d72   :  { %v4634_v23 = vpop.eup %4633 }
0x2d73   :  { %3334 = vrot.lane.b32.xlu1 %v4634_v23, %s4787_s0  ;;  %v4636_v18 = vpop.eup %4635  ;;  %v3364_v23 = vld [vmem:[#allocation6 + $0x28] sm:$0xff] }
0x2d74   :  { %v4638_v31 = vpop.eup %4637 }
0x2d75   :  { %v3328_v24 = vadd.f32 1.0, %v4638_v31  ;;  %v4640_v45 = vpop.eup %4639 }
0x2d76   :  { %v3302_v26 = vadd.f32 1.0, %v4640_v45 }
0x2d77   :  { %3308 = vrot.lane.b32.xlu1 %v4636_v18, %s4787_s0  ;;  %4641 = vrcp.f32 %v3328_v24  ;;  %v3365_v24 = vld [vmem:[#allocation6 + $0x30] sm:$0xff] }
0x2d78   :  { %4643 = vrcp.f32 %v3302_v26 }
0x2d81   :  { %v4642_v29 = vpop.eup %4641 }
0x2d82   :  { %v4644_v20 = vpop.eup %4643  ;;  %v3332_v40 = vmul.f32 %v4642_v29, %v3231_v63 }
0x2d83   :  { %v3306_v35 = vmul.f32 %v4644_v20, %v3205_v62 }
0x2de5   :  { %v3335_v39 = vpop.permute.xlu1 %3334 }
0x2de6   :  { %v3337_v13 = vmul.f32 %v4642_v29, %v3335_v39 }
0x2de8   :  { %3339 = vrot.lane.b32.xlu0 %v3337_v13, %s4793_s11 }
0x2de9   :  { %v3309_v17 = vpop.permute.xlu1 %3308 }
0x2dea   :  { %v3311_v53 = vmul.f32 %v4644_v20, %v3309_v17 }
0x2dec   :  { %3313 = vrot.lane.b32.xlu0 %v3311_v53, %s4793_s11 }
0x2df0   :  { %3244 = vrot.lane.b32.xlu0 %v3237_v4, %s4793_s11 }
0x2df4   :  { %3022 = vrot.lane.b32.xlu0 %v5667_v54, %s4793_s11 }
0x2e5a   :  { %v3340_v0 = vpop.permute.xlu0 %3339 }
0x2e5b   :  { %v3342_v34 = vadd.f32 %v3340_v0, %v3332_v40 }
0x2e5d   :  { %4645 = vtanh.f32 %v3342_v34 }
0x2e5e   :  { %v3314_v38 = vpop.permute.xlu0 %3313 }
0x2e5f   :  { %v3316_v43 = vadd.f32 %v3314_v38, %v3306_v35 }
0x2e61   :  { %4647 = vtanh.f32 %v3316_v43 }
0x2e62   :  { %v3245_v58 = vpop.permute.xlu0 %3244 }
0x2e63   :  { %3247 = vst.msk [vmem:[#allocation7 + $0x8] sm:$0xff] %vm1300_vm5, %v3245_v58 }
0x2e66   :  { %v3023_v37 = vpop.permute.xlu0 %3022 }
0x2e67   :  { %v4646_v12 = vpop.eup %4645  ;;  %3025 = vst.msk [vmem:[#allocation7 + $0x18] sm:$0xff] %vm1300_vm5, %v3023_v37 }
0x2e68   :  { %3345 = vrot.lane.b32.xlu1 %v4646_v12, %s4787_s0 }
0x2e6a   :  { %v3368_v54 = vld [vmem:[#allocation7 + $0x8] sm:$0xff] }
0x2e6b   :  { %v4648_v36 = vpop.eup %4647 }
0x2e6c   :  { %3319 = vrot.lane.b32.xlu0 %v4648_v36, %s4787_s0 }
0x2e6e   :  { %v3370_v56 = vld [vmem:[#allocation7 + $0x18] sm:$0xff] }
0x2e70   :  { %2911 = vrot.lane.b32.xlu0 %v5643_v3, %s4793_s11  ;;  %v4383_v3 = vld [vmem:[%s5876_s19] sm:$0xff]  }
0x2e71   :  { %4216 = vmatprep.subr.bf16.mxu0 %v4383_v3 }
0x2e72   :  { %4217 = vmatpush3.bf16.msra.mxu0 %v4383_v3 }
0x2e74   :  { %2689 = vrot.lane.b32.xlu0 %v5593_v33, %s4793_s11  ;;  %v4384_v33 = vld [vmem:[%s5876_s19 + $0x8] sm:$0xff]  }
0x2e75   :  { %4218 = vmatprep.subr.bf16.mxu0 %v4384_v33 }
0x2e76   :  { %4219 = vmatpush3.bf16.msra.mxu0 %v4384_v33 }
0x2e78   :  { %3385 = vrot.lane.b32.xlu0 %v3368_v54, %s4793_s11 }
0x2eda   :  { %v3346_v2 = vpop.permute.xlu1 %3345 }
0x2edb   :  { %v3348_v41 = vmul.f32 %v4642_v29, %v3346_v2 }
0x2edd   :  { %3355 = vrot.lane.b32.xlu1 %v3348_v41, %s4793_s11 }
0x2ede   :  { %v3320_v42 = vpop.permute.xlu0 %3319 }
0x2edf   :  { %v3322_v46 = vmul.f32 %v4644_v20, %v3320_v42 }
0x2ee1   :  { %3133 = vrot.lane.b32.xlu1 %v5691_v30, %s4793_s11  ;;  %v4385_v30 = vld [vmem:[%s5876_s19 + $0x10] sm:$0xff]  }
0x2ee2   :  { %v2912_v44 = vpop.permute.xlu0 %2911  ;;  %4220 = vmatprep.subr.bf16.mxu0 %v4385_v30 }
0x2ee3   :  { %2914 = vst.msk [vmem:[#allocation7 + $0x20] sm:$0xff] %vm1300_vm5, %v2912_v44  ;;  %4221 = vmatpush3.bf16.msra.mxu0 %v4385_v30 }
0x2ee5   :  { %2800 = vrot.lane.b32.xlu1 %v5618_v22, %s4793_s11  ;;  %v4386_v22 = vld [vmem:[%s5876_s19 + $0x18] sm:$0xff]   ;;  %s4288_s19 = spop %4287 }
0x2ee6   :  { %v2690_v59 = vpop.permute.xlu0 %2689  ;;  %4222 = vmatprep.subr.bf16.mxu0 %v4386_v22  ;;  %v3433_v34 = vstv %s4288_s19 }
0x2ee7   :  { %2692 = vst.msk [vmem:[#allocation7 + $0x30] sm:$0xff] %vm1300_vm5, %v2690_v59  ;;  %4223 = vmatpush3.bf16.msra.mxu0 %v4386_v22 }
0x2ee9   :  { %2578 = vrot.lane.b32.xlu1 %v5568_v57, %s4793_s11 }
0x2eea   :  { %v3371_v60 = vld [vmem:[#allocation7 + $0x20] sm:$0xff]  ;;  %v3386_v1 = vpop.permute.xlu0 %3385 }
0x2eeb   :  { %v5765_v16 = vsel %vm1300_vm5, %v3360_v61, %v3386_v1 }
0x2eed   :  { %3350 = vrot.lane.b32.xlu1 %v3322_v46, %s4793_s11 }
0x2eee   :  { %v3373_v5 = vld [vmem:[#allocation7 + $0x30] sm:$0xff] }
0x2f4f   :  { %v3356_v52 = vpop.permute.xlu1 %3355 }
0x2f50   :  { %3358 = vst.msk [vmem:[#allocation7] sm:$0xff] %vm1300_vm5, %v3356_v52 }
0x2f53   :  { %v3134_v47 = vpop.permute.xlu1 %3133 }
0x2f54   :  { %3136 = vst.msk [vmem:[#allocation7 + $0x10] sm:$0xff] %vm1300_vm5, %v3134_v47 }
0x2f57   :  { %v2801_v51 = vpop.permute.xlu1 %2800  ;;  %v3367_v57 = vld [vmem:[#allocation7] sm:$0xff] }
0x2f58   :  { %2803 = vst.msk [vmem:[#allocation7 + $0x28] sm:$0xff] %vm1300_vm5, %v2801_v51  ;;  %3383 = vrot.lane.b32.xlu1 %v3367_v57, %s4793_s11 }
0x2f5b   :  { %v2579_v32 = vpop.permute.xlu1 %2578  ;;  %v3369_v50 = vld [vmem:[#allocation7 + $0x10] sm:$0xff] }
0x2f5c   :  { %2581 = vst.msk [vmem:[#allocation7 + $0x38] sm:$0xff] %vm1300_vm5, %v2579_v32  ;;  %3389 = vrot.lane.b32.xlu1 %v3370_v56, %s4793_s11  ;;  %3387 = vrot.lane.b32.xlu0 %v3369_v50, %s4793_s11 }
0x2f5f   :  { %v3351_v25 = vpop.permute.xlu1 %3350  ;;  %v3372_v62 = vld [vmem:[#allocation7 + $0x28] sm:$0xff] }
0x2f60   :  { %3353 = vst.msk [vmem:[#allocation6 + $0x38] sm:$0xff] %vm1300_vm5, %v3351_v25  ;;  %3391 = vrot.lane.b32.xlu0 %v3371_v60, %s4793_s11  ;;  %3393 = vrot.lane.b32.xlu1 %v3372_v62, %s4793_s11 }
0x2f63   :  { %v3374_v63 = vld [vmem:[#allocation7 + $0x38] sm:$0xff] }
0x2f64   :  { %3395 = vrot.lane.b32.xlu0 %v3373_v5, %s4793_s11  ;;  %3397 = vrot.lane.b32.xlu1 %v3374_v63, %s4793_s11 }
0x2f67   :  { %v3366_v26 = vld [vmem:[#allocation6 + $0x38] sm:$0xff] }
0x2fca   :  { %v3384_v8 = vpop.permute.xlu1 %3383 }
0x2fcb   :  { %v5768_v4 = vsel %vm1300_vm5, %v3359_v15, %v3384_v8 }
0x2fcc   :  { %v4028_v27 = vpack.c.bf16 %v5765_v16, %v5768_v4 }
0x2fce   :  { %v3388_v9 = vpop.permute.xlu0 %3387  ;;  %4224 = vmatprep.mubr.msk.bf16.mxu0 %vm1198_vm6, %v4028_v27  ;;  %v3390_v49 = vpop.permute.xlu1 %3389 }
0x2fcf   :  { %v5774_v28 = vsel %vm1300_vm5, %v3361_v48, %v3388_v9  ;;  %v5777_v6 = vsel %vm1300_vm5, %v3362_v14, %v3390_v49 }
0x2fd0   :  { %v4029_v7 = vpack.c.bf16 %v5777_v6, %v5774_v28 }
0x2fd2   :  { %v3392_v10 = vpop.permute.xlu0 %3391  ;;  %4225 = vmatmul.mubr.msk.bf16.vlgmr.msra.gmra.mrb[56].mxu0 %vm1198_vm6, %v4029_v7  ;;  %v3394_v18 = vpop.permute.xlu1 %3393 }
0x2fd3   :  { %v5783_v19 = vsel %vm1300_vm5, %v3363_v11, %v3392_v10  ;;  %v5786_v21 = vsel %vm1300_vm5, %v3364_v23, %v3394_v18 }
0x2fd4   :  { %v4030_v31 = vpack.c.bf16 %v5786_v21, %v5783_v19 }
0x2fd6   :  { %v3396_v45 = vpop.permute.xlu0 %3395  ;;  %v3398_v29 = vpop.permute.xlu1 %3397  ;;  %4228 = vmatprep.mubr.msk.bf16.mxu0 %vm1198_vm6, %v4030_v31 }
0x2fd7   :  { %v5792_v39 = vsel %vm1300_vm5, %v3365_v24, %v3396_v45  ;;  %v5795_v13 = vsel %vm1300_vm5, %v3366_v26, %v3398_v29 }
0x2fd8   :  { %v4031_v20 = vpack.c.bf16 %v5795_v13, %v5792_v39 }
0x2fda   :  { %4229 = vmatmul.mubr.msk.bf16.gmra.mrb[60].mxu0 %vm1198_vm6, %v4031_v20 }
0x30a5   :  { %v4226_v17 = vpop.f32.mrb[56].mxu0 }
0x30a6   :  { %v3524_v53 = vpop.f32.mrb[57].mxu0  ;;  %v3533_v35 = vadd.f32 %v4226_v17, %v3433_v34 }
0x30a7   :  { %v4227_v40 = vpop.f32.mrb[58].mxu0  ;;  %v3525_v38 = vadd.f32 %v3524_v53, %v3433_v34 }
0x30a8   :  { %v3527_v0 = vpop.f32.mrb[59].mxu0  ;;  %v3536_v58 = vadd.f32 %v4227_v40, %v3433_v34  ;;  %v3558_v41 = vsel %vm3555_vm7, %v3533_v35, -inf }
0x30a9   :  { %v3528_v36 = vadd.f32 %v3527_v0, %v3433_v34  ;;  %v3556_v33 = vsel %vm3555_vm7, %v3525_v38, -inf }
0x30aa   :  { %v3559_v22 = vsel %vm3555_vm7, %v3536_v58, -inf }
0x30ab   :  { %v3557_v51 = vsel %vm3555_vm7, %v3528_v36, -inf }
0x30ad   :  { %v4230_v43 = vpop.f32.mrb[60].mxu0 }
0x30ae   :  { %v3549_v37 = vadd.f32 %v4230_v43, %v3433_v34  ;;  %v3540_v12 = vpop.f32.mrb[61].mxu0 }
0x30af   :  { %v3541_v54 = vadd.f32 %v3540_v12, %v3433_v34  ;;  %v4231_v2 = vpop.f32.mrb[62].mxu0 }
0x30b0   :  { %v3564_v42 = vsel %vm3555_vm7, %v3549_v37, -inf  ;;  %v3552_v44 = vadd.f32 %v4231_v2, %v3433_v34  ;;  %v3543_v3 = vpop.f32.mrb[63].mxu0 }
0x30b1   :  { %v3565_v59 = vmax.f32 %v3558_v41, %v3564_v42  ;;  %v3560_v30 = vsel %vm3555_vm7, %v3541_v54, -inf  ;;  %v3544_v46 = vadd.f32 %v3543_v3, %v3433_v34 }
0x30b2   :  { %v3561_v52 = vmax.f32 %v3556_v33, %v3560_v30  ;;  %v3566_v47 = vsel %vm3555_vm7, %v3552_v44, -inf }
0x30b3   :  { %v3567_v57 = vmax.f32 %v3559_v22, %v3566_v47  ;;  %v3562_v55 = vsel %vm3555_vm7, %v3544_v46, -inf  ;;  %v4387_v47 = vld [vmem:[%s5878_s21] sm:$0xff]  }
0x30b4   :  { %v3563_v32 = vmax.f32 %v3557_v51, %v3562_v55  ;;  %v4794_v51 = vmov 0.0   ;;  %v4389_v55 = vld [vmem:[%s5878_s21 + $0x10] sm:$0xff]  }
0x30b5   :  { %v3569_v56 = vmax.f32 %v3565_v59, %v3567_v57  ;;  %4232 = vmatprep.subr.bf16.mxu1 %v4794_v51  ;;  %v4388_v57 = vld [vmem:[%s5878_s21 + $0x8] sm:$0xff]   ;;  %4240 = vmatprep.mubr.msk.bf16.mxu1 %vm4795_vm8, %v4794_v51 }
0x30b6   :  { %v3568_v50 = vmax.f32 %v3561_v52, %v3563_v32  ;;  %4233 = vmatpush3.bf16.msra.mxu1 %v4387_v47  ;;  %v4390_v32 = vld [vmem:[%s5878_s21 + $0x18] sm:$0xff]  }
0x30b7   :  { %4234 = vmatprep.subr.bf16.mxu1 %v4794_v51 }
0x30b8   :  { %v3570_v25 = vmax.f32 %v3568_v50, %v3569_v56 }
0x30ba   :  { %v3571_v60 = vsub.f32 %v3525_v38, %v3570_v25  ;;  %v3572_v62 = vsub.f32 %v3528_v36, %v3570_v25  ;;  %v3573_v5 = vsub.f32 %v3533_v35, %v3570_v25  ;;  %v3574_v63 = vsub.f32 %v3536_v58, %v3570_v25  ;;  %4235 = vmatpush3.bf16.msra.mxu1 %v4388_v57 }
0x30bb   :  { %v3575_v1 = vsub.f32 %v3541_v54, %v3570_v25  ;;  %v3576_v61 = vsub.f32 %v3544_v46, %v3570_v25  ;;  %v3577_v15 = vsub.f32 %v3549_v37, %v3570_v25  ;;  %v3578_v8 = vsub.f32 %v3552_v44, %v3570_v25  ;;  %4236 = vmatprep.subr.bf16.mxu1 %v4794_v51 }
0x30bc   :  { %v3579_v27 = vmul.f32 1.442695, %v3571_v60  ;;  %v3581_v48 = vmul.f32 1.442695, %v3572_v62  ;;  %v3583_v9 = vmul.f32 1.442695, %v3573_v5 }
0x30bd   :  { %v3585_v14 = vmul.f32 1.442695, %v3574_v63  ;;  %v3587_v49 = vmul.f32 1.442695, %v3575_v1  ;;  %v3589_v7 = vmul.f32 1.442695, %v3576_v61 }
0x30be   :  { %4649 = vpow2.f32 %v3579_v27  ;;  %v3591_v10 = vmul.f32 1.442695, %v3577_v15  ;;  %v3593_v11 = vmul.f32 1.442695, %v3578_v8  ;;  %4237 = vmatpush3.bf16.msra.mxu1 %v4389_v55 }
0x30bf   :  { %4651 = vpow2.f32 %v3581_v48  ;;  %4238 = vmatprep.subr.bf16.mxu1 %v4794_v51 }
0x30c0   :  { %4653 = vpow2.f32 %v3583_v9 }
0x30c1   :  { %4655 = vpow2.f32 %v3585_v14 }
0x30c2   :  { %4657 = vpow2.f32 %v3587_v49  ;;  %4239 = vmatpush3.bf16.msra.mxu1 %v4390_v32 }
0x30c3   :  { %4659 = vpow2.f32 %v3589_v7  ;;  %4244 = vmatprep.subr.bf16.mxu1 %v4794_v51 }
0x30c4   :  { %4661 = vpow2.f32 %v3591_v10 }
0x30c5   :  { %4663 = vpow2.f32 %v3593_v11 }
0x30c8   :  { %v4650_v23 = vpop.eup %4649 }
0x30c9   :  { %v4652_v18 = vpop.eup %4651  ;;  %v3595_v31 = vsel %vm3555_vm7, %v4650_v23, 0.0 }
0x30ca   :  { %v4654_v24 = vpop.eup %4653  ;;  %v3596_v45 = vsel %vm3555_vm7, %v4652_v18, 0.0 }
0x30cb   :  { %v4656_v26 = vpop.eup %4655  ;;  %v3597_v29 = vadd.f32 %v3596_v45, %v3595_v31  ;;  %v3598_v20 = vsel %vm3555_vm7, %v4654_v24, 0.0 }
0x30cc   :  { %v4658_v17 = vpop.eup %4657  ;;  %v3600_v40 = vsel %vm3555_vm7, %v4656_v26, 0.0 }
0x30cd   :  { %v3599_v53 = vadd.f32 %v3598_v20, %v3597_v29  ;;  %v4660_v0 = vpop.eup %4659  ;;  %v3602_v35 = vsel %vm3555_vm7, %v4658_v17, 0.0  ;;  %v4391_v20 = vld [vmem:[#allocation16] sm:$0xff]  }
0x30ce   :  { %v4662_v38 = vpop.eup %4661  ;;  %v3604_v58 = vsel %vm3555_vm7, %v4660_v0, 0.0 }
0x30cf   :  { %v3601_v34 = vadd.f32 %v3600_v40, %v3599_v53  ;;  %v4664_v37 = vpop.eup %4663  ;;  %v3606_v36 = vsel %vm3555_vm7, %v4662_v38, 0.0 }
0x30d0   :  { %v3608_v2 = vsel %vm3555_vm7, %v4664_v37, 0.0 }
0x30d1   :  { %v3603_v43 = vadd.f32 %v3602_v35, %v3601_v34 }
0x30d3   :  { %v3605_v12 = vadd.f32 %v3604_v58, %v3603_v43 }
0x30d5   :  { %v3607_v54 = vadd.f32 %v3606_v36, %v3605_v12  ;;  %v4016_v36 = vld [vmem:[%s5881_s24] ss:$0 sm:$0xff] }
0x30d7   :  { %v3609_v41 = vadd.f32 %v3608_v2, %v3607_v54 }
0x30d9   :  { %4665 = vrcp.f32 %v3609_v41 }
0x30e3   :  { %v4666_v42 = vpop.eup %4665 }
0x30e4   :  { %v3612_v44 = vmul.f32 %v4666_v42, %v4652_v18  ;;  %v3611_v3 = vmul.f32 %v4666_v42, %v4650_v23  ;;  %v3613_v33 = vmul.f32 %v4666_v42, %v4654_v24  ;;  %v3614_v59 = vmul.f32 %v4666_v42, %v4656_v26 }
0x30e5   :  { %v3615_v30 = vmul.f32 %v4666_v42, %v4658_v17  ;;  %v3616_v46 = vmul.f32 %v4666_v42, %v4660_v0  ;;  %v3617_v22 = vmul.f32 %v4666_v42, %v4662_v38  ;;  %v3618_v52 = vmul.f32 %v4666_v42, %v4664_v37  ;;  %v4392_v17 = vld [vmem:[#allocation16 + $0x8] sm:$0xff]  }
0x30e6   :  { %3626 = vperm.xlu1 %4321, %v3612_v44   ;;  %3621 = vperm.xlu0 %4320, %v3611_v3  }
0x30ea   :  { %3631 = vperm.xlu1 %4321, %v3613_v33   ;;  %3636 = vperm.xlu0 %4320, %v3614_v59  }
0x30ee   :  { %3641 = vperm.xlu1 %4321, %v3615_v30   ;;  %3646 = vperm.xlu0 %4320, %v3616_v46  }
0x30f2   :  { %3651 = vperm.xlu1 %4321, %v3617_v22   ;;  %3656 = vperm.xlu0 %4320, %v3618_v52  }
0x3165   :  { %v3627_v56 = vpop.permute.xlu1 %3626  ;;  %v3622_v50 = vpop.permute.xlu0 %3621 }
0x3166   :  { %v3660_v25 = vmul.f32 %v3627_v56, %v5765_v16  ;;  %v3659_v60 = vmul.f32 %v3622_v50, %v5768_v4 }
0x3168   :  { %v3668_v62 = vsel %vm1198_vm6, %v3660_v25, 0.0  ;;  %v3667_v5 = vsel %vm1198_vm6, %v3659_v60, 0.0 }
0x3169   :  { %v3632_v63 = vpop.permute.xlu1 %3631  ;;  %v3637_v1 = vpop.permute.xlu0 %3636  ;;  %v3669_v8 = vadd.f32 %v3668_v62, %v3667_v5 }
0x316a   :  { %v3661_v61 = vmul.f32 %v3632_v63, %v5774_v28  ;;  %v3662_v15 = vmul.f32 %v3637_v1, %v5777_v6 }
0x316c   :  { %v3670_v27 = vsel %vm1198_vm6, %v3661_v61, 0.0  ;;  %v3672_v16 = vsel %vm1198_vm6, %v3662_v15, 0.0 }
0x316d   :  { %v3671_v48 = vadd.f32 %v3670_v27, %v3669_v8  ;;  %v3642_v9 = vpop.permute.xlu1 %3641  ;;  %v3647_v14 = vpop.permute.xlu0 %3646 }
0x316e   :  { %v3663_v4 = vmul.f32 %v3642_v9, %v5783_v19  ;;  %v3664_v49 = vmul.f32 %v3647_v14, %v5786_v21 }
0x316f   :  { %v3673_v7 = vadd.f32 %v3672_v16, %v3671_v48 }
0x3170   :  { %v3674_v10 = vsel %vm1198_vm6, %v3663_v4, 0.0  ;;  %v3676_v6 = vsel %vm1198_vm6, %v3664_v49, 0.0 }
0x3171   :  { %v3675_v11 = vadd.f32 %v3674_v10, %v3673_v7  ;;  %v3652_v23 = vpop.permute.xlu1 %3651  ;;  %v3657_v28 = vpop.permute.xlu0 %3656 }
0x3172   :  { %v3665_v18 = vmul.f32 %v3652_v23, %v5792_v39  ;;  %v3666_v31 = vmul.f32 %v3657_v28, %v5795_v13  ;;  %v4010_v39 = vld [vmem:[%s5879_s22] ss:$0 sm:$0xff] }
0x3173   :  { %v3677_v24 = vadd.f32 %v3676_v6, %v3675_v11 }
0x3174   :  { %v3678_v45 = vsel %vm1198_vm6, %v3665_v18, 0.0  ;;  %v3680_v19 = vsel %vm1198_vm6, %v3666_v31, 0.0 }
0x3175   :  { %v3679_v26 = vadd.f32 %v3678_v45, %v3677_v24 }
0x3177   :  { %v3681_v29 = vadd.f32 %v3680_v19, %v3679_v26 }
0x3179   :  { %v3682_v21 = vpack.c.bf16 %v3681_v29, %v3681_v29 }
0x317b   :  { %4241 = vmatmul.mubr.msk.bf16.vlgmr.msra.gmra.mrb[56].mxu1 %vm1198_vm6, %v3682_v21 }
0x317c   :  { %4248 = vmatprep.mubr.msk.bf16.mxu1 %vm4795_vm8, %v4794_v51  ;;  %4245 = vmatpush3.bf16.msra.mxu1 %v4391_v20 }
0x317d   :  { %4246 = vmatprep.subr.bf16.mxu1 %v4794_v51 }
0x3180   :  { %4247 = vmatpush3.bf16.msra.mxu1 %v4392_v17 }
0x324e   :  { %v3759_v13 = vpop.f32.mrb[56].mxu1 }
0x324f   :  { %v3760_v53 = vadd.f32 %v4010_v39, %v3759_v13  ;;  %v4242_v40 = vpop.f32.mrb[57].mxu1 }
0x3250   :  { %v3762_v0 = vpop.f32.mrb[58].mxu1 }
0x3251   :  { %v3766_v34 = vmul.f32 0.70710677, %v3760_v53  ;;  %v4243_v35 = vpop.f32.mrb[59].mxu1  ;;  %v3765_v43 = vmul.f32 0.5, %v3760_v53 }
0x3253   :  { %4667 = verf.f32 %v3766_v34 }
0x325d   :  { %v4668_v38 = vpop.eup %4667 }
0x325e   :  { %v3768_v58 = vadd.f32 1.0, %v4668_v38 }
0x3260   :  { %v3769_v37 = vmul.f32 %v3768_v58, %v3765_v43 }
0x3262   :  { %v3770_v12 = vpack.c.bf16 %v3769_v37, %v3769_v37 }
0x3264   :  { %4249 = vmatmul.mubr.msk.bf16.vlgmr.msra.gmra.mrb[60].mxu1 %vm1300_vm5, %v3770_v12 }
0x3337   :  { %v3831_v54 = vpop.f32.mrb[60].mxu1 }
0x3338   :  { %v3832_v2 = vadd.f32 %v4016_v36, %v3831_v54  ;;  %v4250_v41 = vpop.f32.mrb[61].mxu1 }
0x3339   :  { %v3834_v42 = vpop.f32.mrb[62].mxu1 }
0x333a   :  { %3837 = vst [vmem:[%s5908_s10] sm:$0xff] %v3832_v2  ;;  %v4251_v44 = vpop.f32.mrb[63].mxu1 }
0x333b   :  { %3842 = vsyncpa [#allocation10], 1 }
0x333c   :  { %3843 = vsyncpa [#allocation12], 1 }
0x333d   :  { %3844 = vsyncpa [#allocation15], 1 }

</bundles_post_ra>
